<compile_context>
chip_gen: v7x
topology: tpu7x:2x2x1
jax: 0.10.0
libtpu: 0.0.40
codegen_flags: <defaults>
</compile_context>

<pallas_src>
import functools
import math

import jax
import jax.numpy as jnp
from jax.experimental import pallas as pl
from jax.experimental.pallas import tpu as pltpu


# ------------------------------ configuration -------------------------------

NC_PAD = 128  # lane-dense logits width


class Cfg:
    image_size = 16
    patch_size = 8
    num_channels = 3
    hidden_size = 32
    num_heads = 4
    num_layers = 2
    intermediate_size = 64
    num_classes = 10
    layer_norm_eps = 1e-12

    @property
    def num_patches(self):
        return (self.image_size // self.patch_size) ** 2

    @property
    def seq_len(self):
        return self.num_patches + 1  # + CLS

    @property
    def seq_pad(self):
        return ((self.seq_len + 7) // 8) * 8  # pad to a sublane tile

    @property
    def head_dim(self):
        return self.hidden_size // self.num_heads


# ------------------------------ fused kernel --------------------------------

def _vit_fused_kernel(
    x_ref, patch_w_ref, tok_bias_ref,
    ln1_g_ref, ln1_b_ref, qkv_w_ref, qkv_b_ref, o_w_ref, o_b_ref,
    ln2_g_ref, ln2_b_ref, fc1_w_ref, fc1_b_ref, fc2_w_ref, fc2_b_ref,
    fin_g_ref, fin_b_ref, cls_w_ref, cls_b_ref,
    logits_ref,
    *, num_layers, num_heads, head_dim, hidden, seq_real, seq_pad,
    batch_tile, eps, scale):
    """Full ViT forward for one batch tile (Bt images) per grid step.

    x_ref:        (Bt*Sp, Cpp)  padded patch pixels (row 0 of each image = CLS
                                slot, rows >= seq_real are zero padding)
    tok_bias_ref: (Bt*Sp, D)    per-row bias = cls_token/patch_bias + pos emb
                                (zero for padding rows), pre-tiled over Bt.
    per-layer weights are stacked along a leading L axis; matmul weights bf16.
    """
    D, dh, Hh = hidden, head_dim, num_heads
    S, Sp, Bt = seq_real, seq_pad, batch_tile
    f32 = jnp.float32
    bf16 = jnp.bfloat16

    def ln(x, g, b):
        mu = jnp.mean(x, axis=-1, keepdims=True)
        var = jnp.mean(jnp.square(x - mu), axis=-1, keepdims=True)
        return (x - mu) * jax.lax.rsqrt(var + eps) * g + b

    def gelu(x):
        # HF ViT uses exact (erf) GELU.
        return 0.5 * x * (1.0 + jax.lax.erf(x * (1.0 / math.sqrt(2.0))))

    def mm(a, w):
        # bf16 MXU inputs, f32 accumulation.
        return jnp.dot(a.astype(bf16), w, preferred_element_type=f32)

    # Key-padding mask (positions >= S are invalid keys), hoisted out of loops.
    key_ids = jax.lax.broadcasted_iota(jnp.int32, (1, 1, Sp), 2)
    key_mask = jnp.where(key_ids < S, jnp.float32(0.0), jnp.float32(-1e30))

    # Patch embedding + CLS + position embeddings: one (Bt*Sp, Cpp)x(Cpp, D)
    # matmul + pre-folded token bias.
    h = mm(x_ref[...], patch_w_ref[...]) + tok_bias_ref[...]        # (Bt*Sp, D)

    # TODO(synk): for L=12 use a layer grid axis / lax.fori_loop instead of a
    # Python unroll (bounded vreg live ranges, streamed weights).
    for l in range(num_layers):
        # ---- self-attention block (pre-LN) ----
        x1 = ln(h, ln1_g_ref[l], ln1_b_ref[l])                      # (Bt*Sp, D)
        qkv = mm(x1, qkv_w_ref[l]) + qkv_b_ref[l]                   # (Bt*Sp, 3D)
        qkv = qkv.reshape(Bt, Sp, 3 * D).astype(bf16)               # (Bt, Sp, 3D)

        ctx_heads = []
        for hh in range(Hh):
            q = qkv[:, :, hh * dh:(hh + 1) * dh]                    # (Bt, Sp, dh)
            k = qkv[:, :, D + hh * dh:D + (hh + 1) * dh]
            v = qkv[:, :, 2 * D + hh * dh:2 * D + (hh + 1) * dh]
            # Image-batched Q.K^T and P.V (same pattern as flash attention).
            s = jnp.einsum("bqd,bkd->bqk", q, k,
                           preferred_element_type=f32) * scale      # (Bt, Sp, Sp)
            s = s + key_mask
            m = jnp.max(s, axis=-1, keepdims=True)
            p = jnp.exp(s - m)
            p = p * pl.reciprocal(jnp.sum(p, axis=-1, keepdims=True),
                                  approx=True)
            ctx_heads.append(
                jnp.einsum("bqk,bkd->bqd", p.astype(bf16), v,
                           preferred_element_type=f32))             # (Bt, Sp, dh)

        ctx = jnp.concatenate(ctx_heads, axis=-1).reshape(Bt * Sp, D)
        h = h + mm(ctx, o_w_ref[l]) + o_b_ref[l]                    # residual

        # ---- MLP block (pre-LN) ----
        x2 = ln(h, ln2_g_ref[l], ln2_b_ref[l])
        m1 = gelu(mm(x2, fc1_w_ref[l]) + fc1_b_ref[l])
        h = h + mm(m1, fc2_w_ref[l]) + fc2_b_ref[l]

    # Final LayerNorm on CLS rows only (row b*Sp of each image) -> classifier.
    cls_rows = jnp.concatenate(
        [h[b * Sp:b * Sp + 1, :] for b in range(Bt)], axis=0)       # (Bt, D)
    hf = ln(cls_rows, fin_g_ref[...], fin_b_ref[...])
    logits = mm(hf, cls_w_ref[...]) + cls_b_ref[...]                # (Bt, NC_PAD)
    logits_ref[0] = logits.astype(logits_ref.dtype)


# ------------------------------- ViT wrapper --------------------------------

def extract_patches(x, cfg: Cfg):
    """x: (B, C, H, W) NCHW -> (B, num_patches, C*ps*ps) in (C, ph, pw) order
    (matches flattening of the PyTorch Conv2d patch-embedding kernel)."""
    B, C, H, W = x.shape
    ps = cfg.patch_size
    x = x.reshape(B, C, H // ps, ps, W // ps, ps)
    x = jnp.transpose(x, (0, 2, 4, 1, 3, 5))            # (B, Hp, Wp, C, ps, ps)
    return x.reshape(B, (H // ps) * (W // ps), C * ps * ps)


def vit_forward(params, x, cfg: Cfg, batch_tile=4):
    B = x.shape[0]
    D, Hh, dh = cfg.hidden_size, cfg.num_heads, cfg.head_dim
    S, Sp, P, L = cfg.seq_len, cfg.seq_pad, cfg.num_patches, cfg.num_layers
    I, nc = cfg.intermediate_size, cfg.num_classes
    Cpp = cfg.num_channels * cfg.patch_size * cfg.patch_size
    Bt = batch_tile
    assert B % Bt == 0
    num_tiles = B // Bt
    bf16 = jnp.bfloat16

    # ---- one-time prep (pure-JAX glue; fuses / constant-folds under jit) ----
    patches = extract_patches(x, cfg)                               # (B, P, Cpp)
    x_seq = jnp.concatenate(
        [jnp.zeros((B, 1, Cpp), patches.dtype),                     # CLS slot
         patches,
         jnp.zeros((B, Sp - 1 - P, Cpp), patches.dtype)], axis=1)   # (B, Sp, Cpp)
    x_flat = x_seq.reshape(B * Sp, Cpp)

    pos = params["pos_emb"][0]                                      # (S, D)
    tok_bias = jnp.concatenate(
        [params["cls_token"].reshape(1, D) + pos[0:1],
         pos[1:] + params["patch_b"].reshape(1, D),
         jnp.zeros((Sp - S, D), jnp.float32)], axis=0)              # (Sp, D)
    tok_bias_tiled = jnp.tile(tok_bias, (Bt, 1))                    # (Bt*Sp, D)

    layers = params["layers"]

    def stk(name, shape):
        return jnp.stack([lp[name] for lp in layers]).reshape((L,) + shape)

    ln1_g = stk("ln1_g", (1, D)); ln1_b = stk("ln1_b", (1, D))
    ln2_g = stk("ln2_g", (1, D)); ln2_b = stk("ln2_b", (1, D))
    qkv_w = jnp.stack([jnp.concatenate([lp["q_w"], lp["k_w"], lp["v_w"]], axis=1)
                       for lp in layers]).astype(bf16)              # (L, D, 3D)
    qkv_b = jnp.stack([jnp.concatenate([lp["q_b"], lp["k_b"], lp["v_b"]])
                       for lp in layers]).reshape(L, 1, 3 * D)
    o_w = stk("o_w", (D, D)).astype(bf16); o_b = stk("o_b", (1, D))
    fc1_w = stk("fc1_w", (D, I)).astype(bf16); fc1_b = stk("fc1_b", (1, I))
    fc2_w = stk("fc2_w", (I, D)).astype(bf16); fc2_b = stk("fc2_b", (1, D))

    patch_w = params["patch_w"].astype(bf16)                        # (Cpp, D)
    fin_g = params["final_ln_g"].reshape(1, D)
    fin_b = params["final_ln_b"].reshape(1, D)
    # Lane-dense classifier: pad num_classes -> 128.
    cls_w = jnp.zeros((D, NC_PAD), jnp.float32).at[:, :nc].set(
        params["cls_w"]).astype(bf16)
    cls_b = jnp.zeros((1, NC_PAD), jnp.float32).at[0, :nc].set(params["cls_b"])

    kernel = functools.partial(
        _vit_fused_kernel, num_layers=L, num_heads=Hh, head_dim=dh,
        hidden=D, seq_real=S, seq_pad=Sp, batch_tile=Bt,
        eps=cfg.layer_norm_eps, scale=1.0 / math.sqrt(dh))

    def fixed(shape):
        # Whole array, same block for every grid step -> resident in VMEM.
        n = len(shape)
        return pl.BlockSpec(shape, lambda i, _n=n: (0,) * _n)

    out = pl.pallas_call(
        kernel,
        out_shape=jax.ShapeDtypeStruct((num_tiles, Bt, NC_PAD), jnp.float32),
        grid=(num_tiles,),
        in_specs=[
            pl.BlockSpec((Bt * Sp, Cpp), lambda i: (i, 0)),          # x_flat
            fixed((Cpp, D)),                                         # patch_w
            fixed((Bt * Sp, D)),                                     # tok_bias
            fixed((L, 1, D)), fixed((L, 1, D)),                      # ln1 g/b
            fixed((L, D, 3 * D)), fixed((L, 1, 3 * D)),              # qkv w/b
            fixed((L, D, D)), fixed((L, 1, D)),                      # out-proj w/b
            fixed((L, 1, D)), fixed((L, 1, D)),                      # ln2 g/b
            fixed((L, D, I)), fixed((L, 1, I)),                      # fc1 w/b
            fixed((L, I, D)), fixed((L, 1, D)),                      # fc2 w/b
            fixed((1, D)), fixed((1, D)),                            # final LN
            fixed((D, NC_PAD)), fixed((1, NC_PAD)),                  # classifier
        ],
        out_specs=pl.BlockSpec((1, Bt, NC_PAD), lambda i: (i, 0, 0)),
        compiler_params=pltpu.CompilerParams(
            dimension_semantics=("parallel",)),
    )(x_flat, patch_w, tok_bias_tiled,
      ln1_g, ln1_b, qkv_w, qkv_b, o_w, o_b, ln2_g, ln2_b,
      fc1_w, fc1_b, fc2_w, fc2_b, fin_g, fin_b, cls_w, cls_b)

    return out.reshape(B, NC_PAD)[:, :nc]


# ----------------------------- parameter init --------------------------------

def init_params(key, cfg: Cfg):
    def nrm(k, shape, scale=0.02):
        return scale * jax.random.normal(k, shape, dtype=jnp.float32)

    ks = iter(jax.random.split(key, 8 + 12 * cfg.num_layers))
    D, I, C, P = cfg.hidden_size, cfg.intermediate_size, cfg.num_channels, cfg.patch_size
    params = {
        "patch_w": nrm(next(ks), (C * P * P, D)),
        "patch_b": nrm(next(ks), (D,)),
        "cls_token": nrm(next(ks), (1, 1, D)),
        "pos_emb": nrm(next(ks), (1, cfg.seq_len, D)),
        "final_ln_g": jnp.ones((D,), jnp.float32),
        "final_ln_b": jnp.zeros((D,), jnp.float32),
        "cls_w": nrm(next(ks), (D, cfg.num_classes)),
        "cls_b": nrm(next(ks), (cfg.num_classes,)),
        "layers": [],
    }
    for _ in range(cfg.num_layers):
        layer = {
            "ln1_g": jnp.ones((D,), jnp.float32), "ln1_b": jnp.zeros((D,), jnp.float32),
            "q_w": nrm(next(ks), (D, D)), "q_b": nrm(next(ks), (D,)),
            "k_w": nrm(next(ks), (D, D)), "k_b": nrm(next(ks), (D,)),
            "v_w": nrm(next(ks), (D, D)), "v_b": nrm(next(ks), (D,)),
            "o_w": nrm(next(ks), (D, D)), "o_b": nrm(next(ks), (D,)),
            "ln2_g": jnp.ones((D,), jnp.float32), "ln2_b": jnp.zeros((D,), jnp.float32),
            "fc1_w": nrm(next(ks), (D, I)), "fc1_b": nrm(next(ks), (I,)),
            "fc2_w": nrm(next(ks), (I, D)), "fc2_b": nrm(next(ks), (D,)),
        }
        params["layers"].append(layer)
    return params


# --------------------------- pure-JAX reference ------------------------------

def vit_forward_ref(params, x, cfg: Cfg):
    B = x.shape[0]
    D, Hh, dh, S = cfg.hidden_size, cfg.num_heads, cfg.head_dim, cfg.seq_len
    eps = cfg.layer_norm_eps

    def ln(t, g, b):
        m = jnp.mean(t, -1, keepdims=True)
        v = jnp.mean(jnp.square(t - m), -1, keepdims=True)
        return (t - m) * jax.lax.rsqrt(v + eps) * g + b

    def gelu(t):
        return 0.5 * t * (1.0 + jax.lax.erf(t / math.sqrt(2.0)))

    emb = extract_patches(x, cfg) @ params["patch_w"] + params["patch_b"]
    cls = jnp.broadcast_to(params["cls_token"], (B, 1, D))
    h = jnp.concatenate([cls, emb], axis=1) + params["pos_emb"]
    scale = 1.0 / math.sqrt(dh)
    for lp in params["layers"]:
        x1 = ln(h, lp["ln1_g"], lp["ln1_b"])
        q = (x1 @ lp["q_w"] + lp["q_b"]).reshape(B, S, Hh, dh).transpose(0, 2, 1, 3)
        k = (x1 @ lp["k_w"] + lp["k_b"]).reshape(B, S, Hh, dh).transpose(0, 2, 1, 3)
        v = (x1 @ lp["v_w"] + lp["v_b"]).reshape(B, S, Hh, dh).transpose(0, 2, 1, 3)
        p = jax.nn.softmax(jnp.einsum("bhqd,bhkd->bhqk", q, k) * scale, axis=-1)
        ctx = jnp.einsum("bhqk,bhkd->bhqd", p, v).transpose(0, 2, 1, 3).reshape(B, S, D)
        h = h + (ctx @ lp["o_w"] + lp["o_b"])
        x2 = ln(h, lp["ln2_g"], lp["ln2_b"])
        h = h + (gelu(x2 @ lp["fc1_w"] + lp["fc1_b"]) @ lp["fc2_w"] + lp["fc2_b"])
    h = ln(h, params["final_ln_g"], params["final_ln_b"])
    return h[:, 0, :] @ params["cls_w"] + params["cls_b"]


# ---------------------------------- main -------------------------------------

if __name__ == "__main__":
    cfg = Cfg()
    key = jax.random.PRNGKey(0)
    kx, kp = jax.random.split(key)

    B = 8  # 2 grid steps of Bt=4 -> still megacore-parallel on v7x
    x = jax.random.normal(kx, (B, cfg.num_channels, cfg.image_size, cfg.image_size),
                          dtype=jnp.float32)              # NCHW, like PyTorch
    params = init_params(kp, cfg)

    fwd = jax.jit(lambda p, xx: vit_forward(p, xx, cfg, batch_tile=4))
    logits = jax.block_until_ready(fwd(params, x))

    ref = jax.block_until_ready(vit_forward_ref(params, x, cfg))
    assert logits.shape == (B, cfg.num_classes)
    # bf16 MXU inputs (f32 accumulation) -> slightly looser tolerance vs f32 ref.
    assert jnp.allclose(logits, ref, rtol=2e-2, atol=2e-2), "mismatch vs reference"

    print("KERNEL_OK")
</pallas_src>

<mosaic_0001>
module attributes {stable_mosaic.version = 11 : i64} {
  func.func @_vit_fused_kernel(%arg0: i32, %arg1: memref<32x192xf32, #tpu.memory_space<vmem>>, %arg2: memref<192x32xbf16, #tpu.memory_space<vmem>>, %arg3: memref<32x32xf32, #tpu.memory_space<vmem>>, %arg4: memref<2x1x32xf32, #tpu.memory_space<vmem>>, %arg5: memref<2x1x32xf32, #tpu.memory_space<vmem>>, %arg6: memref<2x32x96xbf16, #tpu.memory_space<vmem>>, %arg7: memref<2x1x96xf32, #tpu.memory_space<vmem>>, %arg8: memref<2x32x32xbf16, #tpu.memory_space<vmem>>, %arg9: memref<2x1x32xf32, #tpu.memory_space<vmem>>, %arg10: memref<2x1x32xf32, #tpu.memory_space<vmem>>, %arg11: memref<2x1x32xf32, #tpu.memory_space<vmem>>, %arg12: memref<2x32x64xbf16, #tpu.memory_space<vmem>>, %arg13: memref<2x1x64xf32, #tpu.memory_space<vmem>>, %arg14: memref<2x64x32xbf16, #tpu.memory_space<vmem>>, %arg15: memref<2x1x32xf32, #tpu.memory_space<vmem>>, %arg16: memref<1x32xf32, #tpu.memory_space<vmem>>, %arg17: memref<1x32xf32, #tpu.memory_space<vmem>>, %arg18: memref<32x128xbf16, #tpu.memory_space<vmem>>, %arg19: memref<1x128xf32, #tpu.memory_space<vmem>>, %arg20: memref<1x4x128xf32, #tpu.memory_space<vmem>>) attributes {dimension_semantics = [#tpu.dimension_semantics<parallel>], iteration_bounds = array<i64: 2>, scalar_prefetch = 0 : i64, scratch_operands = 0 : i64, tpu.core_type = #tpu.core_type<tc>, window_params = [{transform_indices = @transform_0, window_bounds = array<i64: 32, 192>}, {pipeline_mode = #tpu.pipeline_mode<synchronous>, transform_indices = @transform_1, window_bounds = array<i64: 192, 32>}, {pipeline_mode = #tpu.pipeline_mode<synchronous>, transform_indices = @transform_2, window_bounds = array<i64: 32, 32>}, {pipeline_mode = #tpu.pipeline_mode<synchronous>, transform_indices = @transform_3, window_bounds = array<i64: 2, 1, 32>}, {pipeline_mode = #tpu.pipeline_mode<synchronous>, transform_indices = @transform_4, window_bounds = array<i64: 2, 1, 32>}, {pipeline_mode = #tpu.pipeline_mode<synchronous>, transform_indices = @transform_5, window_bounds = array<i64: 2, 32, 96>}, {pipeline_mode = #tpu.pipeline_mode<synchronous>, transform_indices = @transform_6, window_bounds = array<i64: 2, 1, 96>}, {pipeline_mode = #tpu.pipeline_mode<synchronous>, transform_indices = @transform_7, window_bounds = array<i64: 2, 32, 32>}, {pipeline_mode = #tpu.pipeline_mode<synchronous>, transform_indices = @transform_8, window_bounds = array<i64: 2, 1, 32>}, {pipeline_mode = #tpu.pipeline_mode<synchronous>, transform_indices = @transform_9, window_bounds = array<i64: 2, 1, 32>}, {pipeline_mode = #tpu.pipeline_mode<synchronous>, transform_indices = @transform_10, window_bounds = array<i64: 2, 1, 32>}, {pipeline_mode = #tpu.pipeline_mode<synchronous>, transform_indices = @transform_11, window_bounds = array<i64: 2, 32, 64>}, {pipeline_mode = #tpu.pipeline_mode<synchronous>, transform_indices = @transform_12, window_bounds = array<i64: 2, 1, 64>}, {pipeline_mode = #tpu.pipeline_mode<synchronous>, transform_indices = @transform_13, window_bounds = array<i64: 2, 64, 32>}, {pipeline_mode = #tpu.pipeline_mode<synchronous>, transform_indices = @transform_14, window_bounds = array<i64: 2, 1, 32>}, {pipeline_mode = #tpu.pipeline_mode<synchronous>, transform_indices = @transform_15, window_bounds = array<i64: 1, 32>}, {pipeline_mode = #tpu.pipeline_mode<synchronous>, transform_indices = @transform_16, window_bounds = array<i64: 1, 32>}, {pipeline_mode = #tpu.pipeline_mode<synchronous>, transform_indices = @transform_17, window_bounds = array<i64: 32, 128>}, {pipeline_mode = #tpu.pipeline_mode<synchronous>, transform_indices = @transform_18, window_bounds = array<i64: 1, 128>}, {transform_indices = @transform_19, window_bounds = array<i64: 1, 4, 128>}]} {
    %0 = tpu.iota {dimensions = array<i32: 2>} : vector<1x1x8xi32>
    %c5_i32 = arith.constant 5 : i32
    %1 = vector.broadcast %c5_i32 : i32 to vector<1x1x8xi32>
    %2 = arith.cmpi slt, %0, %1 : vector<1x1x8xi32>
    %cst = arith.constant 0.000000e+00 : f32
    %cst_0 = arith.constant -1.000000e+30 : f32
    %3 = vector.broadcast %cst : f32 to vector<1x1x8xf32>
    %4 = vector.broadcast %cst_0 : f32 to vector<1x1x8xf32>
    %5 = arith.select %2, %3, %4 : vector<1x1x8xi1>, vector<1x1x8xf32>
    %c0 = arith.constant 0 : index
    %c0_1 = arith.constant 0 : index
    %6 = vector.load %arg1[%c0, %c0_1] : memref<32x192xf32, #tpu.memory_space<vmem>>, vector<32x192xf32>
    %c0_2 = arith.constant 0 : index
    %c0_3 = arith.constant 0 : index
    %7 = vector.load %arg2[%c0_2, %c0_3] : memref<192x32xbf16, #tpu.memory_space<vmem>>, vector<192x32xbf16>
    %8 = arith.truncf %6 : vector<32x192xf32> to vector<32x192xbf16>
    %cst_4 = arith.constant dense<0.000000e+00> : vector<32x32xf32>
    %9 = tpu.matmul %8, %7, %cst_4 {dimension_numbers = #tpu.dot_dimension_numbers<[1], [0], [0], [1], [0, 0, 1, 1], [], []>} : vector<32x192xbf16>, vector<192x32xbf16>, vector<32x32xf32> -> vector<32x32xf32>
    %c0_5 = arith.constant 0 : index
    %c0_6 = arith.constant 0 : index
    %10 = vector.load %arg3[%c0_5, %c0_6] : memref<32x32xf32, #tpu.memory_space<vmem>>, vector<32x32xf32>
    %11 = arith.addf %9, %10 : vector<32x32xf32>
    %c0_7 = arith.constant 0 : index
    %c0_8 = arith.constant 0 : index
    %c0_9 = arith.constant 0 : index
    %12 = vector.load %arg4[%c0_7, %c0_8, %c0_9] : memref<2x1x32xf32, #tpu.memory_space<vmem>>, vector<1x1x32xf32>
    %13 = vector.shape_cast %12 : vector<1x1x32xf32> to vector<1x32xf32>
    %c0_10 = arith.constant 0 : index
    %c0_11 = arith.constant 0 : index
    %c0_12 = arith.constant 0 : index
    %14 = vector.load %arg5[%c0_10, %c0_11, %c0_12] : memref<2x1x32xf32, #tpu.memory_space<vmem>>, vector<1x1x32xf32>
    %15 = vector.shape_cast %14 : vector<1x1x32xf32> to vector<1x32xf32>
    %cst_13 = arith.constant dense<0.000000e+00> : vector<32xf32>
    %16 = vector.multi_reduction <add>, %11, %cst_13 [1] : vector<32x32xf32> to vector<32xf32>
    %17 = vector.shape_cast %16 : vector<32xf32> to vector<32x1xf32>
    %cst_14 = arith.constant 3.200000e+01 : f32
    %18 = vector.broadcast %cst_14 : f32 to vector<32x1xf32>
    %19 = arith.divf %17, %18 : vector<32x1xf32>
    %20 = vector.broadcast %19 : vector<32x1xf32> to vector<32x32xf32>
    %21 = arith.subf %11, %20 : vector<32x32xf32>
    %22 = arith.mulf %21, %21 : vector<32x32xf32>
    %cst_15 = arith.constant dense<0.000000e+00> : vector<32xf32>
    %23 = vector.multi_reduction <add>, %22, %cst_15 [1] : vector<32x32xf32> to vector<32xf32>
    %24 = vector.shape_cast %23 : vector<32xf32> to vector<32x1xf32>
    %cst_16 = arith.constant 3.200000e+01 : f32
    %25 = vector.broadcast %cst_16 : f32 to vector<32x1xf32>
    %26 = arith.divf %24, %25 : vector<32x1xf32>
    %27 = vector.broadcast %19 : vector<32x1xf32> to vector<32x32xf32>
    %28 = arith.subf %11, %27 : vector<32x32xf32>
    %cst_17 = arith.constant 9.99999996E-13 : f32
    %29 = vector.broadcast %cst_17 : f32 to vector<32x1xf32>
    %30 = arith.addf %26, %29 : vector<32x1xf32>
    %31 = math.rsqrt %30 : vector<32x1xf32>
    %32 = vector.broadcast %31 : vector<32x1xf32> to vector<32x32xf32>
    %33 = arith.mulf %28, %32 : vector<32x32xf32>
    %34 = vector.broadcast %13 : vector<1x32xf32> to vector<32x32xf32>
    %35 = arith.mulf %33, %34 : vector<32x32xf32>
    %36 = vector.broadcast %15 : vector<1x32xf32> to vector<32x32xf32>
    %37 = arith.addf %35, %36 : vector<32x32xf32>
    %c0_18 = arith.constant 0 : index
    %c0_19 = arith.constant 0 : index
    %c0_20 = arith.constant 0 : index
    %38 = vector.load %arg6[%c0_18, %c0_19, %c0_20] : memref<2x32x96xbf16, #tpu.memory_space<vmem>>, vector<1x32x96xbf16>
    %39 = vector.shape_cast %38 : vector<1x32x96xbf16> to vector<32x96xbf16>
    %40 = arith.truncf %37 : vector<32x32xf32> to vector<32x32xbf16>
    %cst_21 = arith.constant dense<0.000000e+00> : vector<32x96xf32>
    %41 = tpu.matmul %40, %39, %cst_21 {dimension_numbers = #tpu.dot_dimension_numbers<[1], [0], [0], [1], [0, 0, 1, 1], [], []>} : vector<32x32xbf16>, vector<32x96xbf16>, vector<32x96xf32> -> vector<32x96xf32>
    %c0_22 = arith.constant 0 : index
    %c0_23 = arith.constant 0 : index
    %c0_24 = arith.constant 0 : index
    %42 = vector.load %arg7[%c0_22, %c0_23, %c0_24] : memref<2x1x96xf32, #tpu.memory_space<vmem>>, vector<1x1x96xf32>
    %43 = vector.shape_cast %42 : vector<1x1x96xf32> to vector<1x96xf32>
    %44 = vector.broadcast %43 : vector<1x96xf32> to vector<32x96xf32>
    %45 = arith.addf %41, %44 : vector<32x96xf32>
    %46 = vector.shape_cast %45 : vector<32x96xf32> to vector<4x8x96xf32>
    %47 = arith.truncf %46 : vector<4x8x96xf32> to vector<4x8x96xbf16>
    %48 = vector.extract_strided_slice %47 {offsets = [0, 0, 0], sizes = [4, 8, 8], strides = [1, 1, 1]} : vector<4x8x96xbf16> to vector<4x8x8xbf16>
    %49 = vector.extract_strided_slice %47 {offsets = [0, 0, 32], sizes = [4, 8, 8], strides = [1, 1, 1]} : vector<4x8x96xbf16> to vector<4x8x8xbf16>
    %50 = vector.extract_strided_slice %47 {offsets = [0, 0, 64], sizes = [4, 8, 8], strides = [1, 1, 1]} : vector<4x8x96xbf16> to vector<4x8x8xbf16>
    "tpu.trace_start"() <{level = 10 : i32, message = "bqd,bkd->bqk"}> : () -> ()
    %cst_25 = arith.constant dense<0.000000e+00> : vector<4x8x8xf32>
    %51 = tpu.matmul %48, %49, %cst_25 {dimension_numbers = #tpu.dot_dimension_numbers<[2], [2], [1], [1], [0, 0, 0, 1, 1, 1], [0], [0]>} : vector<4x8x8xbf16>, vector<4x8x8xbf16>, vector<4x8x8xf32> -> vector<4x8x8xf32>
    "tpu.trace_stop"() : () -> ()
    %cst_26 = arith.constant 0.353553385 : f32
    %52 = vector.broadcast %cst_26 : f32 to vector<4x8x8xf32>
    %53 = arith.mulf %51, %52 : vector<4x8x8xf32>
    %54 = vector.broadcast %5 : vector<1x1x8xf32> to vector<4x8x8xf32>
    %55 = arith.addf %53, %54 : vector<4x8x8xf32>
    %cst_27 = arith.constant dense<0xFF800000> : vector<4x8xf32>
    %56 = vector.multi_reduction <maximumf>, %55, %cst_27 [2] : vector<4x8x8xf32> to vector<4x8xf32>
    %57 = vector.shape_cast %56 : vector<4x8xf32> to vector<4x8x1xf32>
    %58 = vector.broadcast %57 : vector<4x8x1xf32> to vector<4x8x8xf32>
    %59 = arith.subf %55, %58 : vector<4x8x8xf32>
    %60 = math.exp %59 : vector<4x8x8xf32>
    %cst_28 = arith.constant dense<0.000000e+00> : vector<4x8xf32>
    %61 = vector.multi_reduction <add>, %60, %cst_28 [2] : vector<4x8x8xf32> to vector<4x8xf32>
    %62 = vector.shape_cast %61 : vector<4x8xf32> to vector<4x8x1xf32>
    %63 = tpu.reciprocal %62 {approx = true} : vector<4x8x1xf32> -> vector<4x8x1xf32>
    %64 = vector.broadcast %63 : vector<4x8x1xf32> to vector<4x8x8xf32>
    %65 = arith.mulf %60, %64 : vector<4x8x8xf32>
    %66 = arith.truncf %65 : vector<4x8x8xf32> to vector<4x8x8xbf16>
    "tpu.trace_start"() <{level = 10 : i32, message = "bqk,bkd->bqd"}> : () -> ()
    %cst_29 = arith.constant dense<0.000000e+00> : vector<4x8x8xf32>
    %67 = tpu.matmul %66, %50, %cst_29 {dimension_numbers = #tpu.dot_dimension_numbers<[2], [1], [1], [2], [0, 0, 0, 1, 1, 2], [0], [0]>} : vector<4x8x8xbf16>, vector<4x8x8xbf16>, vector<4x8x8xf32> -> vector<4x8x8xf32>
    "tpu.trace_stop"() : () -> ()
    %68 = vector.extract_strided_slice %47 {offsets = [0, 0, 8], sizes = [4, 8, 8], strides = [1, 1, 1]} : vector<4x8x96xbf16> to vector<4x8x8xbf16>
    %69 = vector.extract_strided_slice %47 {offsets = [0, 0, 40], sizes = [4, 8, 8], strides = [1, 1, 1]} : vector<4x8x96xbf16> to vector<4x8x8xbf16>
    %70 = vector.extract_strided_slice %47 {offsets = [0, 0, 72], sizes = [4, 8, 8], strides = [1, 1, 1]} : vector<4x8x96xbf16> to vector<4x8x8xbf16>
    "tpu.trace_start"() <{level = 10 : i32, message = "bqd,bkd->bqk"}> : () -> ()
    %cst_30 = arith.constant dense<0.000000e+00> : vector<4x8x8xf32>
    %71 = tpu.matmul %68, %69, %cst_30 {dimension_numbers = #tpu.dot_dimension_numbers<[2], [2], [1], [1], [0, 0, 0, 1, 1, 1], [0], [0]>} : vector<4x8x8xbf16>, vector<4x8x8xbf16>, vector<4x8x8xf32> -> vector<4x8x8xf32>
    "tpu.trace_stop"() : () -> ()
    %cst_31 = arith.constant 0.353553385 : f32
    %72 = vector.broadcast %cst_31 : f32 to vector<4x8x8xf32>
    %73 = arith.mulf %71, %72 : vector<4x8x8xf32>
    %74 = vector.broadcast %5 : vector<1x1x8xf32> to vector<4x8x8xf32>
    %75 = arith.addf %73, %74 : vector<4x8x8xf32>
    %cst_32 = arith.constant dense<0xFF800000> : vector<4x8xf32>
    %76 = vector.multi_reduction <maximumf>, %75, %cst_32 [2] : vector<4x8x8xf32> to vector<4x8xf32>
    %77 = vector.shape_cast %76 : vector<4x8xf32> to vector<4x8x1xf32>
    %78 = vector.broadcast %77 : vector<4x8x1xf32> to vector<4x8x8xf32>
    %79 = arith.subf %75, %78 : vector<4x8x8xf32>
    %80 = math.exp %79 : vector<4x8x8xf32>
    %cst_33 = arith.constant dense<0.000000e+00> : vector<4x8xf32>
    %81 = vector.multi_reduction <add>, %80, %cst_33 [2] : vector<4x8x8xf32> to vector<4x8xf32>
    %82 = vector.shape_cast %81 : vector<4x8xf32> to vector<4x8x1xf32>
    %83 = tpu.reciprocal %82 {approx = true} : vector<4x8x1xf32> -> vector<4x8x1xf32>
    %84 = vector.broadcast %83 : vector<4x8x1xf32> to vector<4x8x8xf32>
    %85 = arith.mulf %80, %84 : vector<4x8x8xf32>
    %86 = arith.truncf %85 : vector<4x8x8xf32> to vector<4x8x8xbf16>
    "tpu.trace_start"() <{level = 10 : i32, message = "bqk,bkd->bqd"}> : () -> ()
    %cst_34 = arith.constant dense<0.000000e+00> : vector<4x8x8xf32>
    %87 = tpu.matmul %86, %70, %cst_34 {dimension_numbers = #tpu.dot_dimension_numbers<[2], [1], [1], [2], [0, 0, 0, 1, 1, 2], [0], [0]>} : vector<4x8x8xbf16>, vector<4x8x8xbf16>, vector<4x8x8xf32> -> vector<4x8x8xf32>
    "tpu.trace_stop"() : () -> ()
    %88 = vector.extract_strided_slice %47 {offsets = [0, 0, 16], sizes = [4, 8, 8], strides = [1, 1, 1]} : vector<4x8x96xbf16> to vector<4x8x8xbf16>
    %89 = vector.extract_strided_slice %47 {offsets = [0, 0, 48], sizes = [4, 8, 8], strides = [1, 1, 1]} : vector<4x8x96xbf16> to vector<4x8x8xbf16>
    %90 = vector.extract_strided_slice %47 {offsets = [0, 0, 80], sizes = [4, 8, 8], strides = [1, 1, 1]} : vector<4x8x96xbf16> to vector<4x8x8xbf16>
    "tpu.trace_start"() <{level = 10 : i32, message = "bqd,bkd->bqk"}> : () -> ()
    %cst_35 = arith.constant dense<0.000000e+00> : vector<4x8x8xf32>
    %91 = tpu.matmul %88, %89, %cst_35 {dimension_numbers = #tpu.dot_dimension_numbers<[2], [2], [1], [1], [0, 0, 0, 1, 1, 1], [0], [0]>} : vector<4x8x8xbf16>, vector<4x8x8xbf16>, vector<4x8x8xf32> -> vector<4x8x8xf32>
    "tpu.trace_stop"() : () -> ()
    %cst_36 = arith.constant 0.353553385 : f32
    %92 = vector.broadcast %cst_36 : f32 to vector<4x8x8xf32>
    %93 = arith.mulf %91, %92 : vector<4x8x8xf32>
    %94 = vector.broadcast %5 : vector<1x1x8xf32> to vector<4x8x8xf32>
    %95 = arith.addf %93, %94 : vector<4x8x8xf32>
    %cst_37 = arith.constant dense<0xFF800000> : vector<4x8xf32>
    %96 = vector.multi_reduction <maximumf>, %95, %cst_37 [2] : vector<4x8x8xf32> to vector<4x8xf32>
    %97 = vector.shape_cast %96 : vector<4x8xf32> to vector<4x8x1xf32>
    %98 = vector.broadcast %97 : vector<4x8x1xf32> to vector<4x8x8xf32>
    %99 = arith.subf %95, %98 : vector<4x8x8xf32>
    %100 = math.exp %99 : vector<4x8x8xf32>
    %cst_38 = arith.constant dense<0.000000e+00> : vector<4x8xf32>
    %101 = vector.multi_reduction <add>, %100, %cst_38 [2] : vector<4x8x8xf32> to vector<4x8xf32>
    %102 = vector.shape_cast %101 : vector<4x8xf32> to vector<4x8x1xf32>
    %103 = tpu.reciprocal %102 {approx = true} : vector<4x8x1xf32> -> vector<4x8x1xf32>
    %104 = vector.broadcast %103 : vector<4x8x1xf32> to vector<4x8x8xf32>
    %105 = arith.mulf %100, %104 : vector<4x8x8xf32>
    %106 = arith.truncf %105 : vector<4x8x8xf32> to vector<4x8x8xbf16>
    "tpu.trace_start"() <{level = 10 : i32, message = "bqk,bkd->bqd"}> : () -> ()
    %cst_39 = arith.constant dense<0.000000e+00> : vector<4x8x8xf32>
    %107 = tpu.matmul %106, %90, %cst_39 {dimension_numbers = #tpu.dot_dimension_numbers<[2], [1], [1], [2], [0, 0, 0, 1, 1, 2], [0], [0]>} : vector<4x8x8xbf16>, vector<4x8x8xbf16>, vector<4x8x8xf32> -> vector<4x8x8xf32>
    "tpu.trace_stop"() : () -> ()
    %108 = vector.extract_strided_slice %47 {offsets = [0, 0, 24], sizes = [4, 8, 8], strides = [1, 1, 1]} : vector<4x8x96xbf16> to vector<4x8x8xbf16>
    %109 = vector.extract_strided_slice %47 {offsets = [0, 0, 56], sizes = [4, 8, 8], strides = [1, 1, 1]} : vector<4x8x96xbf16> to vector<4x8x8xbf16>
    %110 = vector.extract_strided_slice %47 {offsets = [0, 0, 88], sizes = [4, 8, 8], strides = [1, 1, 1]} : vector<4x8x96xbf16> to vector<4x8x8xbf16>
    "tpu.trace_start"() <{level = 10 : i32, message = "bqd,bkd->bqk"}> : () -> ()
    %cst_40 = arith.constant dense<0.000000e+00> : vector<4x8x8xf32>
    %111 = tpu.matmul %108, %109, %cst_40 {dimension_numbers = #tpu.dot_dimension_numbers<[2], [2], [1], [1], [0, 0, 0, 1, 1, 1], [0], [0]>} : vector<4x8x8xbf16>, vector<4x8x8xbf16>, vector<4x8x8xf32> -> vector<4x8x8xf32>
    "tpu.trace_stop"() : () -> ()
    %cst_41 = arith.constant 0.353553385 : f32
    %112 = vector.broadcast %cst_41 : f32 to vector<4x8x8xf32>
    %113 = arith.mulf %111, %112 : vector<4x8x8xf32>
    %114 = vector.broadcast %5 : vector<1x1x8xf32> to vector<4x8x8xf32>
    %115 = arith.addf %113, %114 : vector<4x8x8xf32>
    %cst_42 = arith.constant dense<0xFF800000> : vector<4x8xf32>
    %116 = vector.multi_reduction <maximumf>, %115, %cst_42 [2] : vector<4x8x8xf32> to vector<4x8xf32>
    %117 = vector.shape_cast %116 : vector<4x8xf32> to vector<4x8x1xf32>
    %118 = vector.broadcast %117 : vector<4x8x1xf32> to vector<4x8x8xf32>
    %119 = arith.subf %115, %118 : vector<4x8x8xf32>
    %120 = math.exp %119 : vector<4x8x8xf32>
    %cst_43 = arith.constant dense<0.000000e+00> : vector<4x8xf32>
    %121 = vector.multi_reduction <add>, %120, %cst_43 [2] : vector<4x8x8xf32> to vector<4x8xf32>
    %122 = vector.shape_cast %121 : vector<4x8xf32> to vector<4x8x1xf32>
    %123 = tpu.reciprocal %122 {approx = true} : vector<4x8x1xf32> -> vector<4x8x1xf32>
    %124 = vector.broadcast %123 : vector<4x8x1xf32> to vector<4x8x8xf32>
    %125 = arith.mulf %120, %124 : vector<4x8x8xf32>
    %126 = arith.truncf %125 : vector<4x8x8xf32> to vector<4x8x8xbf16>
    "tpu.trace_start"() <{level = 10 : i32, message = "bqk,bkd->bqd"}> : () -> ()
    %cst_44 = arith.constant dense<0.000000e+00> : vector<4x8x8xf32>
    %127 = tpu.matmul %126, %110, %cst_44 {dimension_numbers = #tpu.dot_dimension_numbers<[2], [1], [1], [2], [0, 0, 0, 1, 1, 2], [0], [0]>} : vector<4x8x8xbf16>, vector<4x8x8xbf16>, vector<4x8x8xf32> -> vector<4x8x8xf32>
    "tpu.trace_stop"() : () -> ()
    %128 = tpu.concatenate %67, %87, %107, %127 in 2 : vector<4x8x8xf32>, vector<4x8x8xf32>, vector<4x8x8xf32>, vector<4x8x8xf32> -> vector<4x8x32xf32>
    %129 = vector.shape_cast %128 : vector<4x8x32xf32> to vector<32x32xf32>
    %c0_45 = arith.constant 0 : index
    %c0_46 = arith.constant 0 : index
    %c0_47 = arith.constant 0 : index
    %130 = vector.load %arg8[%c0_45, %c0_46, %c0_47] : memref<2x32x32xbf16, #tpu.memory_space<vmem>>, vector<1x32x32xbf16>
    %131 = vector.shape_cast %130 : vector<1x32x32xbf16> to vector<32x32xbf16>
    %132 = arith.truncf %129 : vector<32x32xf32> to vector<32x32xbf16>
    %cst_48 = arith.constant dense<0.000000e+00> : vector<32x32xf32>
    %133 = tpu.matmul %132, %131, %cst_48 {dimension_numbers = #tpu.dot_dimension_numbers<[1], [0], [0], [1], [0, 0, 1, 1], [], []>} : vector<32x32xbf16>, vector<32x32xbf16>, vector<32x32xf32> -> vector<32x32xf32>
    %134 = arith.addf %11, %133 : vector<32x32xf32>
    %c0_49 = arith.constant 0 : index
    %c0_50 = arith.constant 0 : index
    %c0_51 = arith.constant 0 : index
    %135 = vector.load %arg9[%c0_49, %c0_50, %c0_51] : memref<2x1x32xf32, #tpu.memory_space<vmem>>, vector<1x1x32xf32>
    %136 = vector.shape_cast %135 : vector<1x1x32xf32> to vector<1x32xf32>
    %137 = vector.broadcast %136 : vector<1x32xf32> to vector<32x32xf32>
    %138 = arith.addf %134, %137 : vector<32x32xf32>
    %c0_52 = arith.constant 0 : index
    %c0_53 = arith.constant 0 : index
    %c0_54 = arith.constant 0 : index
    %139 = vector.load %arg10[%c0_52, %c0_53, %c0_54] : memref<2x1x32xf32, #tpu.memory_space<vmem>>, vector<1x1x32xf32>
    %140 = vector.shape_cast %139 : vector<1x1x32xf32> to vector<1x32xf32>
    %c0_55 = arith.constant 0 : index
    %c0_56 = arith.constant 0 : index
    %c0_57 = arith.constant 0 : index
    %141 = vector.load %arg11[%c0_55, %c0_56, %c0_57] : memref<2x1x32xf32, #tpu.memory_space<vmem>>, vector<1x1x32xf32>
    %142 = vector.shape_cast %141 : vector<1x1x32xf32> to vector<1x32xf32>
    %cst_58 = arith.constant dense<0.000000e+00> : vector<32xf32>
    %143 = vector.multi_reduction <add>, %138, %cst_58 [1] : vector<32x32xf32> to vector<32xf32>
    %144 = vector.shape_cast %143 : vector<32xf32> to vector<32x1xf32>
    %cst_59 = arith.constant 3.200000e+01 : f32
    %145 = vector.broadcast %cst_59 : f32 to vector<32x1xf32>
    %146 = arith.divf %144, %145 : vector<32x1xf32>
    %147 = vector.broadcast %146 : vector<32x1xf32> to vector<32x32xf32>
    %148 = arith.subf %138, %147 : vector<32x32xf32>
    %149 = arith.mulf %148, %148 : vector<32x32xf32>
    %cst_60 = arith.constant dense<0.000000e+00> : vector<32xf32>
    %150 = vector.multi_reduction <add>, %149, %cst_60 [1] : vector<32x32xf32> to vector<32xf32>
    %151 = vector.shape_cast %150 : vector<32xf32> to vector<32x1xf32>
    %cst_61 = arith.constant 3.200000e+01 : f32
    %152 = vector.broadcast %cst_61 : f32 to vector<32x1xf32>
    %153 = arith.divf %151, %152 : vector<32x1xf32>
    %154 = vector.broadcast %146 : vector<32x1xf32> to vector<32x32xf32>
    %155 = arith.subf %138, %154 : vector<32x32xf32>
    %cst_62 = arith.constant 9.99999996E-13 : f32
    %156 = vector.broadcast %cst_62 : f32 to vector<32x1xf32>
    %157 = arith.addf %153, %156 : vector<32x1xf32>
    %158 = math.rsqrt %157 : vector<32x1xf32>
    %159 = vector.broadcast %158 : vector<32x1xf32> to vector<32x32xf32>
    %160 = arith.mulf %155, %159 : vector<32x32xf32>
    %161 = vector.broadcast %140 : vector<1x32xf32> to vector<32x32xf32>
    %162 = arith.mulf %160, %161 : vector<32x32xf32>
    %163 = vector.broadcast %142 : vector<1x32xf32> to vector<32x32xf32>
    %164 = arith.addf %162, %163 : vector<32x32xf32>
    %c0_63 = arith.constant 0 : index
    %c0_64 = arith.constant 0 : index
    %c0_65 = arith.constant 0 : index
    %165 = vector.load %arg12[%c0_63, %c0_64, %c0_65] : memref<2x32x64xbf16, #tpu.memory_space<vmem>>, vector<1x32x64xbf16>
    %166 = vector.shape_cast %165 : vector<1x32x64xbf16> to vector<32x64xbf16>
    %167 = arith.truncf %164 : vector<32x32xf32> to vector<32x32xbf16>
    %cst_66 = arith.constant dense<0.000000e+00> : vector<32x64xf32>
    %168 = tpu.matmul %167, %166, %cst_66 {dimension_numbers = #tpu.dot_dimension_numbers<[1], [0], [0], [1], [0, 0, 1, 1], [], []>} : vector<32x32xbf16>, vector<32x64xbf16>, vector<32x64xf32> -> vector<32x64xf32>
    %c0_67 = arith.constant 0 : index
    %c0_68 = arith.constant 0 : index
    %c0_69 = arith.constant 0 : index
    %169 = vector.load %arg13[%c0_67, %c0_68, %c0_69] : memref<2x1x64xf32, #tpu.memory_space<vmem>>, vector<1x1x64xf32>
    %170 = vector.shape_cast %169 : vector<1x1x64xf32> to vector<1x64xf32>
    %171 = vector.broadcast %170 : vector<1x64xf32> to vector<32x64xf32>
    %172 = arith.addf %168, %171 : vector<32x64xf32>
    %cst_70 = arith.constant 5.000000e-01 : f32
    %173 = vector.broadcast %cst_70 : f32 to vector<32x64xf32>
    %174 = arith.mulf %173, %172 : vector<32x64xf32>
    %cst_71 = arith.constant 0.707106769 : f32
    %175 = vector.broadcast %cst_71 : f32 to vector<32x64xf32>
    %176 = arith.mulf %172, %175 : vector<32x64xf32>
    %177 = math.erf %176 : vector<32x64xf32>
    %cst_72 = arith.constant 1.000000e+00 : f32
    %178 = vector.broadcast %cst_72 : f32 to vector<32x64xf32>
    %179 = arith.addf %178, %177 : vector<32x64xf32>
    %180 = arith.mulf %174, %179 : vector<32x64xf32>
    %c0_73 = arith.constant 0 : index
    %c0_74 = arith.constant 0 : index
    %c0_75 = arith.constant 0 : index
    %181 = vector.load %arg14[%c0_73, %c0_74, %c0_75] : memref<2x64x32xbf16, #tpu.memory_space<vmem>>, vector<1x64x32xbf16>
    %182 = vector.shape_cast %181 : vector<1x64x32xbf16> to vector<64x32xbf16>
    %183 = arith.truncf %180 : vector<32x64xf32> to vector<32x64xbf16>
    %cst_76 = arith.constant dense<0.000000e+00> : vector<32x32xf32>
    %184 = tpu.matmul %183, %182, %cst_76 {dimension_numbers = #tpu.dot_dimension_numbers<[1], [0], [0], [1], [0, 0, 1, 1], [], []>} : vector<32x64xbf16>, vector<64x32xbf16>, vector<32x32xf32> -> vector<32x32xf32>
    %185 = arith.addf %138, %184 : vector<32x32xf32>
    %c0_77 = arith.constant 0 : index
    %c0_78 = arith.constant 0 : index
    %c0_79 = arith.constant 0 : index
    %186 = vector.load %arg15[%c0_77, %c0_78, %c0_79] : memref<2x1x32xf32, #tpu.memory_space<vmem>>, vector<1x1x32xf32>
    %187 = vector.shape_cast %186 : vector<1x1x32xf32> to vector<1x32xf32>
    %188 = vector.broadcast %187 : vector<1x32xf32> to vector<32x32xf32>
    %189 = arith.addf %185, %188 : vector<32x32xf32>
    %c1 = arith.constant 1 : index
    %c0_80 = arith.constant 0 : index
    %c0_81 = arith.constant 0 : index
    %190 = vector.load %arg4[%c1, %c0_80, %c0_81] : memref<2x1x32xf32, #tpu.memory_space<vmem>>, vector<1x1x32xf32>
    %191 = vector.shape_cast %190 : vector<1x1x32xf32> to vector<1x32xf32>
    %c1_82 = arith.constant 1 : index
    %c0_83 = arith.constant 0 : index
    %c0_84 = arith.constant 0 : index
    %192 = vector.load %arg5[%c1_82, %c0_83, %c0_84] : memref<2x1x32xf32, #tpu.memory_space<vmem>>, vector<1x1x32xf32>
    %193 = vector.shape_cast %192 : vector<1x1x32xf32> to vector<1x32xf32>
    %cst_85 = arith.constant dense<0.000000e+00> : vector<32xf32>
    %194 = vector.multi_reduction <add>, %189, %cst_85 [1] : vector<32x32xf32> to vector<32xf32>
    %195 = vector.shape_cast %194 : vector<32xf32> to vector<32x1xf32>
    %cst_86 = arith.constant 3.200000e+01 : f32
    %196 = vector.broadcast %cst_86 : f32 to vector<32x1xf32>
    %197 = arith.divf %195, %196 : vector<32x1xf32>
    %198 = vector.broadcast %197 : vector<32x1xf32> to vector<32x32xf32>
    %199 = arith.subf %189, %198 : vector<32x32xf32>
    %200 = arith.mulf %199, %199 : vector<32x32xf32>
    %cst_87 = arith.constant dense<0.000000e+00> : vector<32xf32>
    %201 = vector.multi_reduction <add>, %200, %cst_87 [1] : vector<32x32xf32> to vector<32xf32>
    %202 = vector.shape_cast %201 : vector<32xf32> to vector<32x1xf32>
    %cst_88 = arith.constant 3.200000e+01 : f32
    %203 = vector.broadcast %cst_88 : f32 to vector<32x1xf32>
    %204 = arith.divf %202, %203 : vector<32x1xf32>
    %205 = vector.broadcast %197 : vector<32x1xf32> to vector<32x32xf32>
    %206 = arith.subf %189, %205 : vector<32x32xf32>
    %cst_89 = arith.constant 9.99999996E-13 : f32
    %207 = vector.broadcast %cst_89 : f32 to vector<32x1xf32>
    %208 = arith.addf %204, %207 : vector<32x1xf32>
    %209 = math.rsqrt %208 : vector<32x1xf32>
    %210 = vector.broadcast %209 : vector<32x1xf32> to vector<32x32xf32>
    %211 = arith.mulf %206, %210 : vector<32x32xf32>
    %212 = vector.broadcast %191 : vector<1x32xf32> to vector<32x32xf32>
    %213 = arith.mulf %211, %212 : vector<32x32xf32>
    %214 = vector.broadcast %193 : vector<1x32xf32> to vector<32x32xf32>
    %215 = arith.addf %213, %214 : vector<32x32xf32>
    %c1_90 = arith.constant 1 : index
    %c0_91 = arith.constant 0 : index
    %c0_92 = arith.constant 0 : index
    %216 = vector.load %arg6[%c1_90, %c0_91, %c0_92] : memref<2x32x96xbf16, #tpu.memory_space<vmem>>, vector<1x32x96xbf16>
    %217 = vector.shape_cast %216 : vector<1x32x96xbf16> to vector<32x96xbf16>
    %218 = arith.truncf %215 : vector<32x32xf32> to vector<32x32xbf16>
    %cst_93 = arith.constant dense<0.000000e+00> : vector<32x96xf32>
    %219 = tpu.matmul %218, %217, %cst_93 {dimension_numbers = #tpu.dot_dimension_numbers<[1], [0], [0], [1], [0, 0, 1, 1], [], []>} : vector<32x32xbf16>, vector<32x96xbf16>, vector<32x96xf32> -> vector<32x96xf32>
    %c1_94 = arith.constant 1 : index
    %c0_95 = arith.constant 0 : index
    %c0_96 = arith.constant 0 : index
    %220 = vector.load %arg7[%c1_94, %c0_95, %c0_96] : memref<2x1x96xf32, #tpu.memory_space<vmem>>, vector<1x1x96xf32>
    %221 = vector.shape_cast %220 : vector<1x1x96xf32> to vector<1x96xf32>
    %222 = vector.broadcast %221 : vector<1x96xf32> to vector<32x96xf32>
    %223 = arith.addf %219, %222 : vector<32x96xf32>
    %224 = vector.shape_cast %223 : vector<32x96xf32> to vector<4x8x96xf32>
    %225 = arith.truncf %224 : vector<4x8x96xf32> to vector<4x8x96xbf16>
    %226 = vector.extract_strided_slice %225 {offsets = [0, 0, 0], sizes = [4, 8, 8], strides = [1, 1, 1]} : vector<4x8x96xbf16> to vector<4x8x8xbf16>
    %227 = vector.extract_strided_slice %225 {offsets = [0, 0, 32], sizes = [4, 8, 8], strides = [1, 1, 1]} : vector<4x8x96xbf16> to vector<4x8x8xbf16>
    %228 = vector.extract_strided_slice %225 {offsets = [0, 0, 64], sizes = [4, 8, 8], strides = [1, 1, 1]} : vector<4x8x96xbf16> to vector<4x8x8xbf16>
    "tpu.trace_start"() <{level = 10 : i32, message = "bqd,bkd->bqk"}> : () -> ()
    %cst_97 = arith.constant dense<0.000000e+00> : vector<4x8x8xf32>
    %229 = tpu.matmul %226, %227, %cst_97 {dimension_numbers = #tpu.dot_dimension_numbers<[2], [2], [1], [1], [0, 0, 0, 1, 1, 1], [0], [0]>} : vector<4x8x8xbf16>, vector<4x8x8xbf16>, vector<4x8x8xf32> -> vector<4x8x8xf32>
    "tpu.trace_stop"() : () -> ()
    %cst_98 = arith.constant 0.353553385 : f32
    %230 = vector.broadcast %cst_98 : f32 to vector<4x8x8xf32>
    %231 = arith.mulf %229, %230 : vector<4x8x8xf32>
    %232 = vector.broadcast %5 : vector<1x1x8xf32> to vector<4x8x8xf32>
    %233 = arith.addf %231, %232 : vector<4x8x8xf32>
    %cst_99 = arith.constant dense<0xFF800000> : vector<4x8xf32>
    %234 = vector.multi_reduction <maximumf>, %233, %cst_99 [2] : vector<4x8x8xf32> to vector<4x8xf32>
    %235 = vector.shape_cast %234 : vector<4x8xf32> to vector<4x8x1xf32>
    %236 = vector.broadcast %235 : vector<4x8x1xf32> to vector<4x8x8xf32>
    %237 = arith.subf %233, %236 : vector<4x8x8xf32>
    %238 = math.exp %237 : vector<4x8x8xf32>
    %cst_100 = arith.constant dense<0.000000e+00> : vector<4x8xf32>
    %239 = vector.multi_reduction <add>, %238, %cst_100 [2] : vector<4x8x8xf32> to vector<4x8xf32>
    %240 = vector.shape_cast %239 : vector<4x8xf32> to vector<4x8x1xf32>
    %241 = tpu.reciprocal %240 {approx = true} : vector<4x8x1xf32> -> vector<4x8x1xf32>
    %242 = vector.broadcast %241 : vector<4x8x1xf32> to vector<4x8x8xf32>
    %243 = arith.mulf %238, %242 : vector<4x8x8xf32>
    %244 = arith.truncf %243 : vector<4x8x8xf32> to vector<4x8x8xbf16>
    "tpu.trace_start"() <{level = 10 : i32, message = "bqk,bkd->bqd"}> : () -> ()
    %cst_101 = arith.constant dense<0.000000e+00> : vector<4x8x8xf32>
    %245 = tpu.matmul %244, %228, %cst_101 {dimension_numbers = #tpu.dot_dimension_numbers<[2], [1], [1], [2], [0, 0, 0, 1, 1, 2], [0], [0]>} : vector<4x8x8xbf16>, vector<4x8x8xbf16>, vector<4x8x8xf32> -> vector<4x8x8xf32>
    "tpu.trace_stop"() : () -> ()
    %246 = vector.extract_strided_slice %225 {offsets = [0, 0, 8], sizes = [4, 8, 8], strides = [1, 1, 1]} : vector<4x8x96xbf16> to vector<4x8x8xbf16>
    %247 = vector.extract_strided_slice %225 {offsets = [0, 0, 40], sizes = [4, 8, 8], strides = [1, 1, 1]} : vector<4x8x96xbf16> to vector<4x8x8xbf16>
    %248 = vector.extract_strided_slice %225 {offsets = [0, 0, 72], sizes = [4, 8, 8], strides = [1, 1, 1]} : vector<4x8x96xbf16> to vector<4x8x8xbf16>
    "tpu.trace_start"() <{level = 10 : i32, message = "bqd,bkd->bqk"}> : () -> ()
    %cst_102 = arith.constant dense<0.000000e+00> : vector<4x8x8xf32>
    %249 = tpu.matmul %246, %247, %cst_102 {dimension_numbers = #tpu.dot_dimension_numbers<[2], [2], [1], [1], [0, 0, 0, 1, 1, 1], [0], [0]>} : vector<4x8x8xbf16>, vector<4x8x8xbf16>, vector<4x8x8xf32> -> vector<4x8x8xf32>
    "tpu.trace_stop"() : () -> ()
    %cst_103 = arith.constant 0.353553385 : f32
    %250 = vector.broadcast %cst_103 : f32 to vector<4x8x8xf32>
    %251 = arith.mulf %249, %250 : vector<4x8x8xf32>
    %252 = vector.broadcast %5 : vector<1x1x8xf32> to vector<4x8x8xf32>
    %253 = arith.addf %251, %252 : vector<4x8x8xf32>
    %cst_104 = arith.constant dense<0xFF800000> : vector<4x8xf32>
    %254 = vector.multi_reduction <maximumf>, %253, %cst_104 [2] : vector<4x8x8xf32> to vector<4x8xf32>
    %255 = vector.shape_cast %254 : vector<4x8xf32> to vector<4x8x1xf32>
    %256 = vector.broadcast %255 : vector<4x8x1xf32> to vector<4x8x8xf32>
    %257 = arith.subf %253, %256 : vector<4x8x8xf32>
    %258 = math.exp %257 : vector<4x8x8xf32>
    %cst_105 = arith.constant dense<0.000000e+00> : vector<4x8xf32>
    %259 = vector.multi_reduction <add>, %258, %cst_105 [2] : vector<4x8x8xf32> to vector<4x8xf32>
    %260 = vector.shape_cast %259 : vector<4x8xf32> to vector<4x8x1xf32>
    %261 = tpu.reciprocal %260 {approx = true} : vector<4x8x1xf32> -> vector<4x8x1xf32>
    %262 = vector.broadcast %261 : vector<4x8x1xf32> to vector<4x8x8xf32>
    %263 = arith.mulf %258, %262 : vector<4x8x8xf32>
    %264 = arith.truncf %263 : vector<4x8x8xf32> to vector<4x8x8xbf16>
    "tpu.trace_start"() <{level = 10 : i32, message = "bqk,bkd->bqd"}> : () -> ()
    %cst_106 = arith.constant dense<0.000000e+00> : vector<4x8x8xf32>
    %265 = tpu.matmul %264, %248, %cst_106 {dimension_numbers = #tpu.dot_dimension_numbers<[2], [1], [1], [2], [0, 0, 0, 1, 1, 2], [0], [0]>} : vector<4x8x8xbf16>, vector<4x8x8xbf16>, vector<4x8x8xf32> -> vector<4x8x8xf32>
    "tpu.trace_stop"() : () -> ()
    %266 = vector.extract_strided_slice %225 {offsets = [0, 0, 16], sizes = [4, 8, 8], strides = [1, 1, 1]} : vector<4x8x96xbf16> to vector<4x8x8xbf16>
    %267 = vector.extract_strided_slice %225 {offsets = [0, 0, 48], sizes = [4, 8, 8], strides = [1, 1, 1]} : vector<4x8x96xbf16> to vector<4x8x8xbf16>
    %268 = vector.extract_strided_slice %225 {offsets = [0, 0, 80], sizes = [4, 8, 8], strides = [1, 1, 1]} : vector<4x8x96xbf16> to vector<4x8x8xbf16>
    "tpu.trace_start"() <{level = 10 : i32, message = "bqd,bkd->bqk"}> : () -> ()
    %cst_107 = arith.constant dense<0.000000e+00> : vector<4x8x8xf32>
    %269 = tpu.matmul %266, %267, %cst_107 {dimension_numbers = #tpu.dot_dimension_numbers<[2], [2], [1], [1], [0, 0, 0, 1, 1, 1], [0], [0]>} : vector<4x8x8xbf16>, vector<4x8x8xbf16>, vector<4x8x8xf32> -> vector<4x8x8xf32>
    "tpu.trace_stop"() : () -> ()
    %cst_108 = arith.constant 0.353553385 : f32
    %270 = vector.broadcast %cst_108 : f32 to vector<4x8x8xf32>
    %271 = arith.mulf %269, %270 : vector<4x8x8xf32>
    %272 = vector.broadcast %5 : vector<1x1x8xf32> to vector<4x8x8xf32>
    %273 = arith.addf %271, %272 : vector<4x8x8xf32>
    %cst_109 = arith.constant dense<0xFF800000> : vector<4x8xf32>
    %274 = vector.multi_reduction <maximumf>, %273, %cst_109 [2] : vector<4x8x8xf32> to vector<4x8xf32>
    %275 = vector.shape_cast %274 : vector<4x8xf32> to vector<4x8x1xf32>
    %276 = vector.broadcast %275 : vector<4x8x1xf32> to vector<4x8x8xf32>
    %277 = arith.subf %273, %276 : vector<4x8x8xf32>
    %278 = math.exp %277 : vector<4x8x8xf32>
    %cst_110 = arith.constant dense<0.000000e+00> : vector<4x8xf32>
    %279 = vector.multi_reduction <add>, %278, %cst_110 [2] : vector<4x8x8xf32> to vector<4x8xf32>
    %280 = vector.shape_cast %279 : vector<4x8xf32> to vector<4x8x1xf32>
    %281 = tpu.reciprocal %280 {approx = true} : vector<4x8x1xf32> -> vector<4x8x1xf32>
    %282 = vector.broadcast %281 : vector<4x8x1xf32> to vector<4x8x8xf32>
    %283 = arith.mulf %278, %282 : vector<4x8x8xf32>
    %284 = arith.truncf %283 : vector<4x8x8xf32> to vector<4x8x8xbf16>
    "tpu.trace_start"() <{level = 10 : i32, message = "bqk,bkd->bqd"}> : () -> ()
    %cst_111 = arith.constant dense<0.000000e+00> : vector<4x8x8xf32>
    %285 = tpu.matmul %284, %268, %cst_111 {dimension_numbers = #tpu.dot_dimension_numbers<[2], [1], [1], [2], [0, 0, 0, 1, 1, 2], [0], [0]>} : vector<4x8x8xbf16>, vector<4x8x8xbf16>, vector<4x8x8xf32> -> vector<4x8x8xf32>
    "tpu.trace_stop"() : () -> ()
    %286 = vector.extract_strided_slice %225 {offsets = [0, 0, 24], sizes = [4, 8, 8], strides = [1, 1, 1]} : vector<4x8x96xbf16> to vector<4x8x8xbf16>
    %287 = vector.extract_strided_slice %225 {offsets = [0, 0, 56], sizes = [4, 8, 8], strides = [1, 1, 1]} : vector<4x8x96xbf16> to vector<4x8x8xbf16>
    %288 = vector.extract_strided_slice %225 {offsets = [0, 0, 88], sizes = [4, 8, 8], strides = [1, 1, 1]} : vector<4x8x96xbf16> to vector<4x8x8xbf16>
    "tpu.trace_start"() <{level = 10 : i32, message = "bqd,bkd->bqk"}> : () -> ()
    %cst_112 = arith.constant dense<0.000000e+00> : vector<4x8x8xf32>
    %289 = tpu.matmul %286, %287, %cst_112 {dimension_numbers = #tpu.dot_dimension_numbers<[2], [2], [1], [1], [0, 0, 0, 1, 1, 1], [0], [0]>} : vector<4x8x8xbf16>, vector<4x8x8xbf16>, vector<4x8x8xf32> -> vector<4x8x8xf32>
    "tpu.trace_stop"() : () -> ()
    %cst_113 = arith.constant 0.353553385 : f32
    %290 = vector.broadcast %cst_113 : f32 to vector<4x8x8xf32>
    %291 = arith.mulf %289, %290 : vector<4x8x8xf32>
    %292 = vector.broadcast %5 : vector<1x1x8xf32> to vector<4x8x8xf32>
    %293 = arith.addf %291, %292 : vector<4x8x8xf32>
    %cst_114 = arith.constant dense<0xFF800000> : vector<4x8xf32>
    %294 = vector.multi_reduction <maximumf>, %293, %cst_114 [2] : vector<4x8x8xf32> to vector<4x8xf32>
    %295 = vector.shape_cast %294 : vector<4x8xf32> to vector<4x8x1xf32>
    %296 = vector.broadcast %295 : vector<4x8x1xf32> to vector<4x8x8xf32>
    %297 = arith.subf %293, %296 : vector<4x8x8xf32>
    %298 = math.exp %297 : vector<4x8x8xf32>
    %cst_115 = arith.constant dense<0.000000e+00> : vector<4x8xf32>
    %299 = vector.multi_reduction <add>, %298, %cst_115 [2] : vector<4x8x8xf32> to vector<4x8xf32>
    %300 = vector.shape_cast %299 : vector<4x8xf32> to vector<4x8x1xf32>
    %301 = tpu.reciprocal %300 {approx = true} : vector<4x8x1xf32> -> vector<4x8x1xf32>
    %302 = vector.broadcast %301 : vector<4x8x1xf32> to vector<4x8x8xf32>
    %303 = arith.mulf %298, %302 : vector<4x8x8xf32>
    %304 = arith.truncf %303 : vector<4x8x8xf32> to vector<4x8x8xbf16>
    "tpu.trace_start"() <{level = 10 : i32, message = "bqk,bkd->bqd"}> : () -> ()
    %cst_116 = arith.constant dense<0.000000e+00> : vector<4x8x8xf32>
    %305 = tpu.matmul %304, %288, %cst_116 {dimension_numbers = #tpu.dot_dimension_numbers<[2], [1], [1], [2], [0, 0, 0, 1, 1, 2], [0], [0]>} : vector<4x8x8xbf16>, vector<4x8x8xbf16>, vector<4x8x8xf32> -> vector<4x8x8xf32>
    "tpu.trace_stop"() : () -> ()
    %306 = tpu.concatenate %245, %265, %285, %305 in 2 : vector<4x8x8xf32>, vector<4x8x8xf32>, vector<4x8x8xf32>, vector<4x8x8xf32> -> vector<4x8x32xf32>
    %307 = vector.shape_cast %306 : vector<4x8x32xf32> to vector<32x32xf32>
    %c1_117 = arith.constant 1 : index
    %c0_118 = arith.constant 0 : index
    %c0_119 = arith.constant 0 : index
    %308 = vector.load %arg8[%c1_117, %c0_118, %c0_119] : memref<2x32x32xbf16, #tpu.memory_space<vmem>>, vector<1x32x32xbf16>
    %309 = vector.shape_cast %308 : vector<1x32x32xbf16> to vector<32x32xbf16>
    %310 = arith.truncf %307 : vector<32x32xf32> to vector<32x32xbf16>
    %cst_120 = arith.constant dense<0.000000e+00> : vector<32x32xf32>
    %311 = tpu.matmul %310, %309, %cst_120 {dimension_numbers = #tpu.dot_dimension_numbers<[1], [0], [0], [1], [0, 0, 1, 1], [], []>} : vector<32x32xbf16>, vector<32x32xbf16>, vector<32x32xf32> -> vector<32x32xf32>
    %312 = arith.addf %189, %311 : vector<32x32xf32>
    %c1_121 = arith.constant 1 : index
    %c0_122 = arith.constant 0 : index
    %c0_123 = arith.constant 0 : index
    %313 = vector.load %arg9[%c1_121, %c0_122, %c0_123] : memref<2x1x32xf32, #tpu.memory_space<vmem>>, vector<1x1x32xf32>
    %314 = vector.shape_cast %313 : vector<1x1x32xf32> to vector<1x32xf32>
    %315 = vector.broadcast %314 : vector<1x32xf32> to vector<32x32xf32>
    %316 = arith.addf %312, %315 : vector<32x32xf32>
    %c1_124 = arith.constant 1 : index
    %c0_125 = arith.constant 0 : index
    %c0_126 = arith.constant 0 : index
    %317 = vector.load %arg10[%c1_124, %c0_125, %c0_126] : memref<2x1x32xf32, #tpu.memory_space<vmem>>, vector<1x1x32xf32>
    %318 = vector.shape_cast %317 : vector<1x1x32xf32> to vector<1x32xf32>
    %c1_127 = arith.constant 1 : index
    %c0_128 = arith.constant 0 : index
    %c0_129 = arith.constant 0 : index
    %319 = vector.load %arg11[%c1_127, %c0_128, %c0_129] : memref<2x1x32xf32, #tpu.memory_space<vmem>>, vector<1x1x32xf32>
    %320 = vector.shape_cast %319 : vector<1x1x32xf32> to vector<1x32xf32>
    %cst_130 = arith.constant dense<0.000000e+00> : vector<32xf32>
    %321 = vector.multi_reduction <add>, %316, %cst_130 [1] : vector<32x32xf32> to vector<32xf32>
    %322 = vector.shape_cast %321 : vector<32xf32> to vector<32x1xf32>
    %cst_131 = arith.constant 3.200000e+01 : f32
    %323 = vector.broadcast %cst_131 : f32 to vector<32x1xf32>
    %324 = arith.divf %322, %323 : vector<32x1xf32>
    %325 = vector.broadcast %324 : vector<32x1xf32> to vector<32x32xf32>
    %326 = arith.subf %316, %325 : vector<32x32xf32>
    %327 = arith.mulf %326, %326 : vector<32x32xf32>
    %cst_132 = arith.constant dense<0.000000e+00> : vector<32xf32>
    %328 = vector.multi_reduction <add>, %327, %cst_132 [1] : vector<32x32xf32> to vector<32xf32>
    %329 = vector.shape_cast %328 : vector<32xf32> to vector<32x1xf32>
    %cst_133 = arith.constant 3.200000e+01 : f32
    %330 = vector.broadcast %cst_133 : f32 to vector<32x1xf32>
    %331 = arith.divf %329, %330 : vector<32x1xf32>
    %332 = vector.broadcast %324 : vector<32x1xf32> to vector<32x32xf32>
    %333 = arith.subf %316, %332 : vector<32x32xf32>
    %cst_134 = arith.constant 9.99999996E-13 : f32
    %334 = vector.broadcast %cst_134 : f32 to vector<32x1xf32>
    %335 = arith.addf %331, %334 : vector<32x1xf32>
    %336 = math.rsqrt %335 : vector<32x1xf32>
    %337 = vector.broadcast %336 : vector<32x1xf32> to vector<32x32xf32>
    %338 = arith.mulf %333, %337 : vector<32x32xf32>
    %339 = vector.broadcast %318 : vector<1x32xf32> to vector<32x32xf32>
    %340 = arith.mulf %338, %339 : vector<32x32xf32>
    %341 = vector.broadcast %320 : vector<1x32xf32> to vector<32x32xf32>
    %342 = arith.addf %340, %341 : vector<32x32xf32>
    %c1_135 = arith.constant 1 : index
    %c0_136 = arith.constant 0 : index
    %c0_137 = arith.constant 0 : index
    %343 = vector.load %arg12[%c1_135, %c0_136, %c0_137] : memref<2x32x64xbf16, #tpu.memory_space<vmem>>, vector<1x32x64xbf16>
    %344 = vector.shape_cast %343 : vector<1x32x64xbf16> to vector<32x64xbf16>
    %345 = arith.truncf %342 : vector<32x32xf32> to vector<32x32xbf16>
    %cst_138 = arith.constant dense<0.000000e+00> : vector<32x64xf32>
    %346 = tpu.matmul %345, %344, %cst_138 {dimension_numbers = #tpu.dot_dimension_numbers<[1], [0], [0], [1], [0, 0, 1, 1], [], []>} : vector<32x32xbf16>, vector<32x64xbf16>, vector<32x64xf32> -> vector<32x64xf32>
    %c1_139 = arith.constant 1 : index
    %c0_140 = arith.constant 0 : index
    %c0_141 = arith.constant 0 : index
    %347 = vector.load %arg13[%c1_139, %c0_140, %c0_141] : memref<2x1x64xf32, #tpu.memory_space<vmem>>, vector<1x1x64xf32>
    %348 = vector.shape_cast %347 : vector<1x1x64xf32> to vector<1x64xf32>
    %349 = vector.broadcast %348 : vector<1x64xf32> to vector<32x64xf32>
    %350 = arith.addf %346, %349 : vector<32x64xf32>
    %cst_142 = arith.constant 5.000000e-01 : f32
    %351 = vector.broadcast %cst_142 : f32 to vector<32x64xf32>
    %352 = arith.mulf %351, %350 : vector<32x64xf32>
    %cst_143 = arith.constant 0.707106769 : f32
    %353 = vector.broadcast %cst_143 : f32 to vector<32x64xf32>
    %354 = arith.mulf %350, %353 : vector<32x64xf32>
    %355 = math.erf %354 : vector<32x64xf32>
    %cst_144 = arith.constant 1.000000e+00 : f32
    %356 = vector.broadcast %cst_144 : f32 to vector<32x64xf32>
    %357 = arith.addf %356, %355 : vector<32x64xf32>
    %358 = arith.mulf %352, %357 : vector<32x64xf32>
    %c1_145 = arith.constant 1 : index
    %c0_146 = arith.constant 0 : index
    %c0_147 = arith.constant 0 : index
    %359 = vector.load %arg14[%c1_145, %c0_146, %c0_147] : memref<2x64x32xbf16, #tpu.memory_space<vmem>>, vector<1x64x32xbf16>
    %360 = vector.shape_cast %359 : vector<1x64x32xbf16> to vector<64x32xbf16>
    %361 = arith.truncf %358 : vector<32x64xf32> to vector<32x64xbf16>
    %cst_148 = arith.constant dense<0.000000e+00> : vector<32x32xf32>
    %362 = tpu.matmul %361, %360, %cst_148 {dimension_numbers = #tpu.dot_dimension_numbers<[1], [0], [0], [1], [0, 0, 1, 1], [], []>} : vector<32x64xbf16>, vector<64x32xbf16>, vector<32x32xf32> -> vector<32x32xf32>
    %363 = arith.addf %316, %362 : vector<32x32xf32>
    %c1_149 = arith.constant 1 : index
    %c0_150 = arith.constant 0 : index
    %c0_151 = arith.constant 0 : index
    %364 = vector.load %arg15[%c1_149, %c0_150, %c0_151] : memref<2x1x32xf32, #tpu.memory_space<vmem>>, vector<1x1x32xf32>
    %365 = vector.shape_cast %364 : vector<1x1x32xf32> to vector<1x32xf32>
    %366 = vector.broadcast %365 : vector<1x32xf32> to vector<32x32xf32>
    %367 = arith.addf %363, %366 : vector<32x32xf32>
    %368 = vector.extract_strided_slice %367 {offsets = [0, 0], sizes = [1, 32], strides = [1, 1]} : vector<32x32xf32> to vector<1x32xf32>
    %369 = vector.extract_strided_slice %367 {offsets = [8, 0], sizes = [1, 32], strides = [1, 1]} : vector<32x32xf32> to vector<1x32xf32>
    %370 = vector.extract_strided_slice %367 {offsets = [16, 0], sizes = [1, 32], strides = [1, 1]} : vector<32x32xf32> to vector<1x32xf32>
    %371 = vector.extract_strided_slice %367 {offsets = [24, 0], sizes = [1, 32], strides = [1, 1]} : vector<32x32xf32> to vector<1x32xf32>
    %372 = tpu.concatenate %368, %369, %370, %371 in 0 : vector<1x32xf32>, vector<1x32xf32>, vector<1x32xf32>, vector<1x32xf32> -> vector<4x32xf32>
    %c0_152 = arith.constant 0 : index
    %c0_153 = arith.constant 0 : index
    %373 = vector.load %arg16[%c0_152, %c0_153] : memref<1x32xf32, #tpu.memory_space<vmem>>, vector<1x32xf32>
    %c0_154 = arith.constant 0 : index
    %c0_155 = arith.constant 0 : index
    %374 = vector.load %arg17[%c0_154, %c0_155] : memref<1x32xf32, #tpu.memory_space<vmem>>, vector<1x32xf32>
    %cst_156 = arith.constant dense<0.000000e+00> : vector<4xf32>
    %375 = vector.multi_reduction <add>, %372, %cst_156 [1] : vector<4x32xf32> to vector<4xf32>
    %376 = vector.shape_cast %375 : vector<4xf32> to vector<4x1xf32>
    %cst_157 = arith.constant 3.200000e+01 : f32
    %377 = vector.broadcast %cst_157 : f32 to vector<4x1xf32>
    %378 = arith.divf %376, %377 : vector<4x1xf32>
    %379 = vector.broadcast %378 : vector<4x1xf32> to vector<4x32xf32>
    %380 = arith.subf %372, %379 : vector<4x32xf32>
    %381 = arith.mulf %380, %380 : vector<4x32xf32>
    %cst_158 = arith.constant dense<0.000000e+00> : vector<4xf32>
    %382 = vector.multi_reduction <add>, %381, %cst_158 [1] : vector<4x32xf32> to vector<4xf32>
    %383 = vector.shape_cast %382 : vector<4xf32> to vector<4x1xf32>
    %cst_159 = arith.constant 3.200000e+01 : f32
    %384 = vector.broadcast %cst_159 : f32 to vector<4x1xf32>
    %385 = arith.divf %383, %384 : vector<4x1xf32>
    %386 = vector.broadcast %378 : vector<4x1xf32> to vector<4x32xf32>
    %387 = arith.subf %372, %386 : vector<4x32xf32>
    %cst_160 = arith.constant 9.99999996E-13 : f32
    %388 = vector.broadcast %cst_160 : f32 to vector<4x1xf32>
    %389 = arith.addf %385, %388 : vector<4x1xf32>
    %390 = math.rsqrt %389 : vector<4x1xf32>
    %391 = vector.broadcast %390 : vector<4x1xf32> to vector<4x32xf32>
    %392 = arith.mulf %387, %391 : vector<4x32xf32>
    %393 = vector.broadcast %373 : vector<1x32xf32> to vector<4x32xf32>
    %394 = arith.mulf %392, %393 : vector<4x32xf32>
    %395 = vector.broadcast %374 : vector<1x32xf32> to vector<4x32xf32>
    %396 = arith.addf %394, %395 : vector<4x32xf32>
    %c0_161 = arith.constant 0 : index
    %c0_162 = arith.constant 0 : index
    %397 = vector.load %arg18[%c0_161, %c0_162] : memref<32x128xbf16, #tpu.memory_space<vmem>>, vector<32x128xbf16>
    %398 = arith.truncf %396 : vector<4x32xf32> to vector<4x32xbf16>
    %cst_163 = arith.constant dense<0.000000e+00> : vector<4x128xf32>
    %399 = tpu.matmul %398, %397, %cst_163 {dimension_numbers = #tpu.dot_dimension_numbers<[1], [0], [0], [1], [0, 0, 1, 1], [], []>} : vector<4x32xbf16>, vector<32x128xbf16>, vector<4x128xf32> -> vector<4x128xf32>
    %c0_164 = arith.constant 0 : index
    %c0_165 = arith.constant 0 : index
    %400 = vector.load %arg19[%c0_164, %c0_165] : memref<1x128xf32, #tpu.memory_space<vmem>>, vector<1x128xf32>
    %401 = vector.broadcast %400 : vector<1x128xf32> to vector<4x128xf32>
    %402 = arith.addf %399, %401 : vector<4x128xf32>
    %c0_166 = arith.constant 0 : index
    %c0_167 = arith.constant 0 : index
    %c0_168 = arith.constant 0 : index
    %403 = vector.load %arg20[%c0_166, %c0_167, %c0_168] : memref<1x4x128xf32, #tpu.memory_space<vmem>>, vector<1x4x128xf32>
    %404 = vector.shape_cast %403 : vector<1x4x128xf32> to vector<4x128xf32>
    %405 = vector.shape_cast %402 : vector<4x128xf32> to vector<1x4x128xf32>
    tpu.vector_store %arg20[%c0_166, %c0_167, %c0_168], %405 {strides = array<i32>} : memref<1x4x128xf32, #tpu.memory_space<vmem>>, vector<1x4x128xf32>,
    return
  }
  func.func @transform_0(%arg0: i32) -> (i32, i32) {
    %c0_i32 = arith.constant 0 : i32
    %c0_i32_0 = arith.constant 0 : i32
    return %arg0, %c0_i32 : i32, i32
  }
  func.func @transform_1(%arg0: i32) -> (i32, i32) {
    %c0_i32 = arith.constant 0 : i32
    %c0_i32_0 = arith.constant 0 : i32
    %c0_i32_1 = arith.constant 0 : i32
    return %c0_i32, %c0_i32_0 : i32, i32
  }
  func.func @transform_2(%arg0: i32) -> (i32, i32) {
    %c0_i32 = arith.constant 0 : i32
    %c0_i32_0 = arith.constant 0 : i32
    %c0_i32_1 = arith.constant 0 : i32
    return %c0_i32, %c0_i32_0 : i32, i32
  }
  func.func @transform_3(%arg0: i32) -> (i32, i32, i32) {
    %c0_i32 = arith.constant 0 : i32
    %c0_i32_0 = arith.constant 0 : i32
    %c0_i32_1 = arith.constant 0 : i32
    %c0_i32_2 = arith.constant 0 : i32
    return %c0_i32, %c0_i32_0, %c0_i32_1 : i32, i32, i32
  }
  func.func @transform_4(%arg0: i32) -> (i32, i32, i32) {
    %c0_i32 = arith.constant 0 : i32
    %c0_i32_0 = arith.constant 0 : i32
    %c0_i32_1 = arith.constant 0 : i32
    %c0_i32_2 = arith.constant 0 : i32
    return %c0_i32, %c0_i32_0, %c0_i32_1 : i32, i32, i32
  }
  func.func @transform_5(%arg0: i32) -> (i32, i32, i32) {
    %c0_i32 = arith.constant 0 : i32
    %c0_i32_0 = arith.constant 0 : i32
    %c0_i32_1 = arith.constant 0 : i32
    %c0_i32_2 = arith.constant 0 : i32
    return %c0_i32, %c0_i32_0, %c0_i32_1 : i32, i32, i32
  }
  func.func @transform_6(%arg0: i32) -> (i32, i32, i32) {
    %c0_i32 = arith.constant 0 : i32
    %c0_i32_0 = arith.constant 0 : i32
    %c0_i32_1 = arith.constant 0 : i32
    %c0_i32_2 = arith.constant 0 : i32
    return %c0_i32, %c0_i32_0, %c0_i32_1 : i32, i32, i32
  }
  func.func @transform_7(%arg0: i32) -> (i32, i32, i32) {
    %c0_i32 = arith.constant 0 : i32
    %c0_i32_0 = arith.constant 0 : i32
    %c0_i32_1 = arith.constant 0 : i32
    %c0_i32_2 = arith.constant 0 : i32
    return %c0_i32, %c0_i32_0, %c0_i32_1 : i32, i32, i32
  }
  func.func @transform_8(%arg0: i32) -> (i32, i32, i32) {
    %c0_i32 = arith.constant 0 : i32
    %c0_i32_0 = arith.constant 0 : i32
    %c0_i32_1 = arith.constant 0 : i32
    %c0_i32_2 = arith.constant 0 : i32
    return %c0_i32, %c0_i32_0, %c0_i32_1 : i32, i32, i32
  }
  func.func @transform_9(%arg0: i32) -> (i32, i32, i32) {
    %c0_i32 = arith.constant 0 : i32
    %c0_i32_0 = arith.constant 0 : i32
    %c0_i32_1 = arith.constant 0 : i32
    %c0_i32_2 = arith.constant 0 : i32
    return %c0_i32, %c0_i32_0, %c0_i32_1 : i32, i32, i32
  }
  func.func @transform_10(%arg0: i32) -> (i32, i32, i32) {
    %c0_i32 = arith.constant 0 : i32
    %c0_i32_0 = arith.constant 0 : i32
    %c0_i32_1 = arith.constant 0 : i32
    %c0_i32_2 = arith.constant 0 : i32
    return %c0_i32, %c0_i32_0, %c0_i32_1 : i32, i32, i32
  }
  func.func @transform_11(%arg0: i32) -> (i32, i32, i32) {
    %c0_i32 = arith.constant 0 : i32
    %c0_i32_0 = arith.constant 0 : i32
    %c0_i32_1 = arith.constant 0 : i32
    %c0_i32_2 = arith.constant 0 : i32
    return %c0_i32, %c0_i32_0, %c0_i32_1 : i32, i32, i32
  }
  func.func @transform_12(%arg0: i32) -> (i32, i32, i32) {
    %c0_i32 = arith.constant 0 : i32
    %c0_i32_0 = arith.constant 0 : i32
    %c0_i32_1 = arith.constant 0 : i32
    %c0_i32_2 = arith.constant 0 : i32
    return %c0_i32, %c0_i32_0, %c0_i32_1 : i32, i32, i32
  }
  func.func @transform_13(%arg0: i32) -> (i32, i32, i32) {
    %c0_i32 = arith.constant 0 : i32
    %c0_i32_0 = arith.constant 0 : i32
    %c0_i32_1 = arith.constant 0 : i32
    %c0_i32_2 = arith.constant 0 : i32
    return %c0_i32, %c0_i32_0, %c0_i32_1 : i32, i32, i32
  }
  func.func @transform_14(%arg0: i32) -> (i32, i32, i32) {
    %c0_i32 = arith.constant 0 : i32
    %c0_i32_0 = arith.constant 0 : i32
    %c0_i32_1 = arith.constant 0 : i32
    %c0_i32_2 = arith.constant 0 : i32
    return %c0_i32, %c0_i32_0, %c0_i32_1 : i32, i32, i32
  }
  func.func @transform_15(%arg0: i32) -> (i32, i32) {
    %c0_i32 = arith.constant 0 : i32
    %c0_i32_0 = arith.constant 0 : i32
    %c0_i32_1 = arith.constant 0 : i32
    return %c0_i32, %c0_i32_0 : i32, i32
  }
  func.func @transform_16(%arg0: i32) -> (i32, i32) {
    %c0_i32 = arith.constant 0 : i32
    %c0_i32_0 = arith.constant 0 : i32
    %c0_i32_1 = arith.constant 0 : i32
    return %c0_i32, %c0_i32_0 : i32, i32
  }
  func.func @transform_17(%arg0: i32) -> (i32, i32) {
    %c0_i32 = arith.constant 0 : i32
    %c0_i32_0 = arith.constant 0 : i32
    %c0_i32_1 = arith.constant 0 : i32
    return %c0_i32, %c0_i32_0 : i32, i32
  }
  func.func @transform_18(%arg0: i32) -> (i32, i32) {
    %c0_i32 = arith.constant 0 : i32
    %c0_i32_0 = arith.constant 0 : i32
    %c0_i32_1 = arith.constant 0 : i32
    return %c0_i32, %c0_i32_0 : i32, i32
  }
  func.func @transform_19(%arg0: i32) -> (i32, i32, i32) {
    %c0_i32 = arith.constant 0 : i32
    %c0_i32_0 = arith.constant 0 : i32
    %c0_i32_1 = arith.constant 0 : i32
    return %arg0, %c0_i32, %c0_i32_0 : i32, i32, i32
  }
}

</mosaic_0001>

<bundles_post_ra>
// kernel: _lambda_.1
= control target key start
LH: loop header
LB: loop body
LE: loop exit
PB: predicated region body
PF: predicated region fallthrough
CT: control target
= control target key end

     0   :  { %s8212_s0 = inlined_call_operand.vmem [shape: f32[64,192], index: 0, kind: input, shape index: {}]   ;;  %s8213_s1 = inlined_call_operand.vmem [shape: bf16[192,32], index: 1, kind: input, shape index: {}]   ;;  %s8214_s2 = inlined_call_operand.vmem [shape: f32[32,32], index: 2, kind: input, shape index: {}]   ;;  %s8215_s3 = inlined_call_operand.vmem [shape: f32[2,1,32], index: 3, kind: input, shape index: {}]   ;;  %s8216_s4 = inlined_call_operand.vmem [shape: f32[2,1,32], index: 4, kind: input, shape index: {}]   ;;  %s8217_s5 = inlined_call_operand.vmem [shape: bf16[2,32,96], index: 5, kind: input, shape index: {}]   ;;  %s8218_s6 = inlined_call_operand.vmem [shape: f32[2,1,96], index: 6, kind: input, shape index: {}]   ;;  %s8219_s7 = inlined_call_operand.vmem [shape: bf16[2,32,32], index: 7, kind: input, shape index: {}]   ;;  %s8220_s8 = inlined_call_operand.vmem [shape: f32[2,1,32], index: 8, kind: input, shape index: {}]   ;;  %s8221_s9 = inlined_call_operand.vmem [shape: f32[2,1,32], index: 9, kind: input, shape index: {}]   ;;  %s8222_s10 = inlined_call_operand.vmem [shape: f32[2,1,32], index: 10, kind: input, shape index: {}]   ;;  %s8223_s11 = inlined_call_operand.vmem [shape: bf16[2,32,64], index: 11, kind: input, shape index: {}]   ;;  %s8224_s12 = inlined_call_operand.vmem [shape: f32[2,1,64], index: 12, kind: input, shape index: {}]   ;;  %s8225_s13 = inlined_call_operand.vmem [shape: bf16[2,64,32], index: 13, kind: input, shape index: {}]   ;;  %s8226_s14 = inlined_call_operand.vmem [shape: f32[2,1,32], index: 14, kind: input, shape index: {}]   ;;  %s8227_s15 = inlined_call_operand.vmem [shape: f32[1,32], index: 15, kind: input, shape index: {}]   ;;  %s8228_s16 = inlined_call_operand.vmem [shape: f32[1,32], index: 16, kind: input, shape index: {}]   ;;  %s8229_s17 = inlined_call_operand.vmem [shape: bf16[32,128], index: 17, kind: input, shape index: {}]   ;;  %s8230_s18 = inlined_call_operand.vmem [shape: f32[1,128], index: 18, kind: input, shape index: {}]   ;;  %s8231_s19 = inlined_call_operand.hbm [shape: f32[2,4,128], index: 19, kind: output, shape index: {}]  }
   0x1   :  { %8268 = sst [smem:[#allocation10_spill]] %s8212_s0 }
   0x2   :  { %8269 = sst [smem:[#allocation11_spill]] %s8213_s1 }
   0x3   :  { %8270 = sst [smem:[#allocation12_spill]] %s8214_s2 }
   0x4   :  { %8271 = sst [smem:[#allocation13_spill]] %s8215_s3 }
   0x5   :  { %8272 = sst [smem:[#allocation14_spill]] %s8216_s4 }
   0x6   :  { %8273 = sst [smem:[#allocation15_spill]] %s8217_s5 }
   0x7   :  { %24 = vsyncpa [#allocation3], 0 }
   0x8   :  { %26 = vsyncpa [#allocation3 + $0x1], 0  ;;  %s7047_s0 = smov 0   ;;  %s7049_s30 = smov 0  }
   0x9   :  { %s7051_s20 = smov 0   ;;  %s7053_s21 = smov 0  }
   0xa LB: > { %8274 = sst [smem:[#allocation5_spill]] %s6914_s0  ;;  %s7068_s1 = sadd.s32 4294967295, %s6926_s21   ;;  %s6926_s21 = sphi %s7053_s21, %s8304_s21   ;;  %s6922_s20 = sphi %s7051_s20, %s8306_s20   ;;  %s6918_s30 = sphi %s7049_s30, %s8308_s30   ;;  %s6914_s0 = sphi %s7047_s0, %s8307_s0  }
   0xb   : > { %8275 = sst [smem:[#allocation6_spill]] %s6922_s20  ;;  %s5727_s22 = sadd.s32 4294967294, %s6926_s21  }
   0xc   : > { %s7072_s2 = sadd.s32 1, %s6926_s21   ;;  %s443_s23 = sadd.s32 1, %s6922_s20 }
   0xd   : > { %8276 = sst [smem:[#allocation7_spill]] %s7072_s2  ;;  %s440_s24 = ssub.s32 %s6926_s21, %s7072_s2 }
   0xe   : > { %p453_p0 = scmp.ne.s32.totalorder %s6922_s20, %s6918_s30  ;;  %p441_p1 = scmp.eq.s32.totalorder %s440_s24, 0 }
   0xf   : > { %p454_p2 = scmp.eq.s32.totalorder %s7068_s1, 1  ;;  %p459_p3 = scmp.ne.s32.totalorder %s6918_s30, %s6914_s0 }
  0x10   : > { %p460_p4 = scmp.eq.s32.totalorder %s5727_s22, 1  ;;  %p5730_p7 = scmp.ge.s32.totalorder %s6926_s21, 1 }
  0x11   : > { %s7083_s25 = scalar_select %p441_p1, %s6922_s20, %s443_s23  }
  0x12   : > { %p7085_p5 = por %p454_p2, %p453_p0  ;;  %p7089_p6 = por %p460_p4, %p459_p3 }
  0x13   : > { %8277 = sst [smem:[#allocation8_spill]] %s7083_s25  ;;  %p542_p8 = scmp.lt.s32.totalorder %s6926_s21, 3 }
  0x14   : > { %s8279_s26 = scalar_select %p7089_p6, 1, 0 }
  0x15   : > { %p543_p9 = pnand %p5730_p7, %p542_p8 }
  0x16   : > { %8280 = sst [smem:[#allocation9_spill]] %s8279_s26  ;;  %s8281_s29 = sld [smem:[#allocation11_spill]] (!%p543_p9)  ;;  %v6928_v1 = vmov (!%p543_p9), 0   ;;  %vm723_vm0 = vcmask (!%p543_p9), 523264   ;;  %vm781_vm1 = vcmask (!%p543_p9), 261120   ;;  %vm6930_vm2 = vmmov (!%p543_p9), 0  }
  0x17   : > { %546 = sbr.rel (%p543_p9) target bundleno = 9571 (0x2563), region = 96  ;;  %730 = vmatprep.subr.bf16.mxu0 (!%p543_p9), %v6928_v1  ;;  %s5732_s22 = sshll.u32 (!%p543_p9), %s7068_s1, 2  ;;  %vm942_vm3 = vcmask (!%p543_p9), 64512   ;;  %vm1197_vm5 = vcmask (!%p543_p9), 1043456   ;;  %vm2781_vm6 = vcmask (!%p543_p9), 130048   ;;  %vm2786_vm7 = vcmask (!%p543_p9), 195584  }
  0x18   : > { %p600_p10 = scmp.lt.s32.totalorder (!%p543_p9), %s5732_s22, 7  ;;  %s8282_s26 = sld [smem:[#allocation10_spill]] (!%p543_p9)  ;;  %vm5550_vm8 = vcmask (!%p543_p9), 1040384   ;;  %vm5552_vm9 = vcmask (!%p543_p9), 1041408   ;;  %vm5554_vm10 = vcmask (!%p543_p9), 1042432   ;;  %vm5558_vm11 = vcmask (!%p543_p9), 257024  }
  0x19   : > { %s8283_s20 = sld [smem:[#allocation12_spill]] (!%p543_p9)  ;;  %s8285_s5 = sld [smem:[#allocation15_spill]] (!%p543_p9) }
  0x1a   : > { %s8287_s4 = sld [smem:[#allocation14_spill]] (!%p543_p9)  ;;  %s8256_s27 = smov (!%p543_p9), 56  }
  0x1b   : > { %s8248_s28 = smov (!%p543_p9), 80   ;;  %s8240_s23 = smov (!%p543_p9), 112  }
  0x1c   : > { %v6652_v0 = vld [vmem:[%s8281_s29] sm:$0xff] (!%p543_p9)   ;;  %v6653_v2 = vld [vmem:[%s8281_s29 + $0x8] sm:$0xff] (!%p543_p9)   ;;  %v6654_v3 = vld [vmem:[%s8281_s29 + $0x10] sm:$0xff] (!%p543_p9)   ;;  %s8242_s24 = smov (!%p543_p9), 48  }
  0x1d   : > { %731 = vmatpush1.bf16.msra.mxu0 (!%p543_p9), %v6652_v0  ;;  %v6655_v4 = vld [vmem:[%s8281_s29 + $0x18] sm:$0xff] (!%p543_p9)   ;;  %v6656_v8 = vld [vmem:[%s8281_s29 + $0x20] sm:$0xff] (!%p543_p9)   ;;  %v6657_v9 = vld [vmem:[%s8281_s29 + $0x28] sm:$0xff] (!%p543_p9)  }
  0x1e   : > { %732 = vmatprep.subr.bf16.mxu0 %v6928_v1  ;;  %s8310_s22 = smov (!%p600_p10, %s5732_s22), 7  ;;  %v6658_v10 = vld [vmem:[%s8281_s29 + $0x30] sm:$0xff]   ;;  %v6659_v11 = vld [vmem:[%s8281_s29 + $0x38] sm:$0xff]   ;;  %v6660_v12 = vld [vmem:[%s8281_s29 + $0x40] sm:$0xff]  }
  0x1f   : > { %s5903_s2 = sshll.u32 %s8310_s22, 4  ;;  %v6661_v13 = vld [vmem:[%s8281_s29 + $0x48] sm:$0xff]   ;;  %v6662_v14 = vld [vmem:[%s8281_s29 + $0x50] sm:$0xff]   ;;  %v6663_v15 = vld [vmem:[%s8281_s29 + $0x58] sm:$0xff]   ;;  %s8284_s25 = smov %s8283_s20 }
  0x20   : > { %s7108_s0 = scalar_lea.vmem %s8282_s26, %s5903_s2  ;;  %v647_v25 = vld [vmem:[%s8283_s20] sm:$0xff]  ;;  %v648_v27 = vld [vmem:[%s8284_s25 + $0x8] sm:$0xff]  ;;  %v649_v34 = vld [vmem:[%s8284_s25 + $0x10] sm:$0xff]  ;;  %s8286_s22 = sld [smem:[#allocation13_spill]] }
  0x21   : > { %733 = vmatpush1.bf16.msra.mxu0 %v6653_v2  ;;  %v612_v5 = vld [vmem:[%s7108_s0 + $0x8] sm:$0xff]  ;;  %v614_v6 = vld [vmem:[%s7108_s0 + $0x18] sm:$0xff]  ;;  %v611_v16 = vld [vmem:[%s7108_s0] sm:$0xff]  ;;  %s8266_s20 = smov 96   ;;  %s8264_s2 = smov 64  }
  0x22   : > { %734 = vmatprep.subr.bf16.mxu0 %v6928_v1  ;;  %v644_v7 = vpack.c.bf16 %v614_v6, %v612_v5  ;;  %v613_v17 = vld [vmem:[%s7108_s0 + $0x10] sm:$0xff]  ;;  %v616_v18 = vld [vmem:[%s7108_s0 + $0x28] sm:$0xff]  ;;  %v618_v19 = vld [vmem:[%s7108_s0 + $0x38] sm:$0xff]  ;;  %s8262_s26 = smov 88  }
  0x23   : > { %v643_v20 = vpack.c.bf16 %v613_v17, %v611_v16  ;;  %v646_v21 = vpack.c.bf16 %v618_v19, %v616_v18  ;;  %v615_v22 = vld [vmem:[%s7108_s0 + $0x20] sm:$0xff]  ;;  %v617_v23 = vld [vmem:[%s7108_s0 + $0x30] sm:$0xff]  ;;  %v650_v37 = vld [vmem:[%s8284_s25 + $0x18] sm:$0xff]  ;;  %s8258_s0 = smov 120  }
  0x24   : > { %5747 = vmatprep.mubr.msk.bf16.mxu0 %vm723_vm0, %v644_v7  ;;  %v645_v24 = vpack.c.bf16 %v617_v23, %v615_v22  ;;  %v6665_v2 = vld [vmem:[%s8285_s5 + $0x8] sm:$0xff]  }
  0x25   : > { %735 = vmatpush1.bf16.msra.mxu0 %v6654_v3 }
  0x26   : > { %736 = vmatprep.subr.bf16.mxu0 %v6928_v1  ;;  %v5749_v17 = vld [vmem:[%s8286_s22] ss:$0 sm:$0xff] }
  0x29   : > { %737 = vmatpush1.bf16.msra.mxu0 %v6655_v4 }
  0x2a   : > { %738 = vmatprep.subr.bf16.mxu0 %v6928_v1 }
  0x2d   : > { %739 = vmatpush1.bf16.msra.mxu0 %v6656_v8 }
  0x2e   : > { %740 = vmatprep.subr.bf16.mxu0 %v6928_v1 }
  0x31   : > { %741 = vmatpush1.bf16.msra.mxu0 %v6657_v9 }
  0x32   : > { %742 = vmatprep.subr.bf16.mxu0 %v6928_v1 }
  0x35   : > { %743 = vmatpush1.bf16.msra.mxu0 %v6658_v10 }
  0x36   : > { %744 = vmatprep.subr.bf16.mxu0 %v6928_v1 }
  0x39   : > { %745 = vmatpush1.bf16.msra.mxu0 %v6659_v11 }
  0x3a   : > { %746 = vmatprep.subr.bf16.mxu0 %v6928_v1 }
  0x3d   : > { %747 = vmatpush1.bf16.msra.mxu0 %v6660_v12 }
  0x3e   : > { %748 = vmatprep.subr.bf16.mxu0 %v6928_v1 }
  0x41   : > { %749 = vmatpush1.bf16.msra.mxu0 %v6661_v13 }
  0x42   : > { %750 = vmatprep.subr.bf16.mxu0 %v6928_v1 }
  0x45   : > { %751 = vmatpush1.bf16.msra.mxu0 %v6662_v14 }
  0x46   : > { %752 = vmatprep.subr.bf16.mxu0 %v6928_v1  ;;  %v6664_v1 = vld [vmem:[%s8285_s5] sm:$0xff]  }
  0x47   : > { %6071 = vmatprep.subr.bf16.mxu1 %v6664_v1 }
  0x48   : > { %6072 = vmatpush3.bf16.msra.mxu1 %v6664_v1 }
  0x49   : > { %753 = vmatpush1.bf16.msra.mxu0 %v6663_v15  ;;  %6073 = vmatprep.subr.bf16.mxu1 %v6665_v2 }
  0x4c   : > { %763 = vmatmul.mubr.bf16.vlgmr.msra.gmra.mrb[0].mxu0 %v643_v20  ;;  %6074 = vmatpush3.bf16.msra.mxu1 %v6665_v2 }
  0x4d   : > { %5748 = vmatprep.mubr.msk.bf16.mxu0 %vm723_vm0, %v646_v21  ;;  %v5750_v21 = vld [vmem:[%s8287_s4] ss:$0 sm:$0xff] }
  0x54   : > { %771 = vmatmul.mubr.bf16.gmra.mrb[4].mxu0 %v645_v24 }
 0x11f   : > { %v764_v26 = vpop.f32.mrb[0].mxu0 }
 0x120   : > { %v7153_v28 = vadd.f32 %v764_v26, %v647_v25  ;;  %v766_v29 = vpop.f32.mrb[1].mxu0 }
 0x121   : > { %v767_v30 = vpop.f32.mrb[2].mxu0 }
 0x122   : > { %v7155_v31 = vadd.f32 %v767_v30, %v648_v27  ;;  %v769_v32 = vpop.f32.mrb[3].mxu0  ;;  %v782_v33 = vsel %vm781_vm1, %v7153_v28, 0.0 }
 0x123   : > { %783 = vadd.xlane.f32.xlu0 %v782_v33 }
 0x124   : > { %v785_v35 = vsel %vm781_vm1, %v7155_v31, 0.0 }
 0x127   : > { %v772_v36 = vpop.f32.mrb[4].mxu0  ;;  %786 = vadd.xlane.f32.xlu0 %v785_v35 }
 0x128   : > { %v7167_v38 = vadd.f32 %v772_v36, %v649_v34  ;;  %v774_v39 = vpop.f32.mrb[5].mxu0 }
 0x129   : > { %v775_v40 = vpop.f32.mrb[6].mxu0  ;;  %v5751_v39 = vld [vmem:[%s8218_s6] ss:$0 sm:$0xff] }
 0x12a   : > { %v7169_v41 = vadd.f32 %v775_v40, %v650_v37  ;;  %v777_v42 = vpop.f32.mrb[7].mxu0  ;;  %v788_v43 = vsel %vm781_vm1, %v7167_v38, 0.0  ;;  %v6929_v37 = vmov 0.0  }
 0x12b   : > { %789 = vadd.xlane.f32.xlu1 %v788_v43  ;;  %6079 = vmatprep.subr.bf16.mxu1 %v6929_v37 }
 0x12c   : > { %v791_v44 = vsel %vm781_vm1, %v7169_v41, 0.0  ;;  %6115 = vmatprep.subr.bf16.mxu0 %v6929_v37  ;;  %6117 = vmatprep.mubr.msk.bf16.mxu0 %vm6930_vm2, %v6929_v37 }
 0x12f   : > { %792 = vadd.xlane.f32.xlu1 %v791_v44 }
 0x1b0   : > { %v784_v45 = vpop.xlane.xlu0 %783 }
 0x1b1   : > { %v795_v46 = vmul.f32 0.03125, %v784_v45 }
 0x1b3   : > { %v799_v47 = vsub.f32 %v7153_v28, %v795_v46 }
 0x1b4   : > { %v787_v48 = vpop.xlane.xlu0 %786 }
 0x1b5   : > { %v796_v49 = vmul.f32 0.03125, %v787_v48  ;;  %v803_v50 = vmul.f32 %v799_v47, %v799_v47 }
 0x1b7   : > { %v800_v51 = vsub.f32 %v7155_v31, %v796_v49  ;;  %v807_v52 = vsel %vm781_vm1, %v803_v50, 0.0 }
 0x1b8   : > { %v790_v53 = vpop.xlane.xlu1 %789  ;;  %808 = vadd.xlane.f32.xlu0 %v807_v52 }
 0x1b9   : > { %v797_v54 = vmul.f32 0.03125, %v790_v53  ;;  %v804_v55 = vmul.f32 %v800_v51, %v800_v51 }
 0x1bb   : > { %v801_v56 = vsub.f32 %v7167_v38, %v797_v54  ;;  %v810_v57 = vsel %vm781_vm1, %v804_v55, 0.0 }
 0x1bc   : > { %v793_v58 = vpop.xlane.xlu1 %792  ;;  %811 = vadd.xlane.f32.xlu1 %v810_v57 }
 0x1bd   : > { %v798_v59 = vmul.f32 0.03125, %v793_v58  ;;  %v805_v60 = vmul.f32 %v801_v56, %v801_v56 }
 0x1bf   : > { %v802_v61 = vsub.f32 %v7169_v41, %v798_v59  ;;  %v813_v62 = vsel %vm781_vm1, %v805_v60, 0.0 }
 0x1c0   : > { %814 = vadd.xlane.f32.xlu0 %v813_v62 }
 0x1c1   : > { %v806_v63 = vmul.f32 %v802_v61, %v802_v61 }
 0x1c3   : > { %v816_v0 = vsel %vm781_vm1, %v806_v63, 0.0 }
 0x1c4   : > { %817 = vadd.xlane.f32.xlu1 %v816_v0  ;;  %v6932_v0 = vmov -1e+30  }
 0x245   : > { %v809_v3 = vpop.xlane.xlu0 %808 }
 0x246   : > { %v819_v4 = vmul.f32 0.03125, %v809_v3 }
 0x248   : > { %v823_v5 = vadd.f32 1e-12, %v819_v4 }
 0x249   : > { %v812_v6 = vpop.xlane.xlu1 %811 }
 0x24a   : > { %6686 = vrsqrt.f32 %v823_v5  ;;  %v820_v7 = vmul.f32 0.03125, %v812_v6 }
 0x24c   : > { %v824_v8 = vadd.f32 1e-12, %v820_v7 }
 0x24d   : > { %v815_v9 = vpop.xlane.xlu0 %814 }
 0x24e   : > { %6688 = vrsqrt.f32 %v824_v8  ;;  %v821_v10 = vmul.f32 0.03125, %v815_v9 }
 0x250   : > { %v825_v11 = vadd.f32 1e-12, %v821_v10 }
 0x251   : > { %v818_v12 = vpop.xlane.xlu1 %817 }
 0x252   : > { %6690 = vrsqrt.f32 %v825_v11  ;;  %v822_v13 = vmul.f32 0.03125, %v818_v12 }
 0x254   : > { %v6687_v14 = vpop.eup %6686  ;;  %v826_v15 = vadd.f32 1e-12, %v822_v13 }
 0x255   : > { %v831_v16 = vmul.f32 %v6687_v14, %v799_v47 }
 0x256   : > { %6692 = vrsqrt.f32 %v826_v15 }
 0x257   : > { %v841_v20 = vmul.f32 %v5749_v17, %v831_v16 }
 0x258   : > { %v6689_v18 = vpop.eup %6688 }
 0x259   : > { %v832_v19 = vmul.f32 %v6689_v18, %v800_v51  ;;  %v851_v24 = vadd.f32 %v5750_v21, %v841_v20 }
 0x25b   : > { %v842_v22 = vmul.f32 %v5749_v17, %v832_v19 }
 0x25c   : > { %v6691_v23 = vpop.eup %6690 }
 0x25d   : > { %v852_v25 = vadd.f32 %v5750_v21, %v842_v22  ;;  %v833_v26 = vmul.f32 %v6691_v23, %v801_v56 }
 0x25f   : > { %v859_v27 = vpack.c.bf16 %v852_v25, %v851_v24  ;;  %v843_v32 = vmul.f32 %v5749_v17, %v833_v26 }
 0x260   : > { %v6693_v29 = vpop.eup %6692 }
 0x261   : > { %6075 = vmatprep.mubr.msk.bf16.mxu1 %vm781_vm1, %v859_v27  ;;  %v834_v30 = vmul.f32 %v6693_v29, %v802_v61  ;;  %v853_v34 = vadd.f32 %v5750_v21, %v843_v32  ;;  %v607_v61 = vlaneseq }
 0x263   : > { %v844_v33 = vmul.f32 %v5749_v17, %v834_v30  ;;  %v608_v62 = vand.u32 127, %v607_v61 }
 0x265   : > { %v854_v35 = vadd.f32 %v5750_v21, %v844_v33  ;;  %vm609_vm4 = vcmp.lt.s32.totalorder %v608_v62, 5 }
 0x266   : > { %v7246_v1 = vsel %vm609_vm4, 0.0, %v6932_v0 }
 0x267   : > { %v860_v36 = vpack.c.bf16 %v854_v35, %v853_v34 }
 0x269   : > { %6076 = vmatmul.mubr.msk.bf16.vlgmr.msra.gmra.mrb[0].mxu1 %vm781_vm1, %v860_v36 }
 0x26a   : > { %6081 = vmatprep.mubr.msk.bf16.mxu1 %vm6930_vm2, %v6929_v37 }
 0x33c   : > { %v6077_v40 = vpop.f32.mrb[0].mxu1 }
 0x33d   : > { %v920_v42 = vpop.f32.mrb[1].mxu1  ;;  %v929_v48 = vadd.f32 %v6077_v40, %v5751_v39 }
 0x33e   : > { %v921_v43 = vadd.f32 %v5751_v39, %v920_v42  ;;  %v6078_v44 = vpop.f32.mrb[2].mxu1 }
 0x33f   : > { %v923_v45 = vpop.f32.mrb[3].mxu1  ;;  %v7214_v50 = vpack.c.bf16 %v929_v48, %v929_v48  ;;  %v932_v51 = vadd.f32 %v6078_v44, %v5751_v39 }
 0x340   : > { %v7206_v46 = vpack.c.bf16 %v921_v43, %v921_v43  ;;  %v924_v47 = vadd.f32 %v5751_v39, %v923_v45 }
 0x341   : > { %v7218_v52 = vpack.c.bf16 %v932_v51, %v932_v51 }
 0x342   : > { %v7208_v49 = vpack.c.bf16 %v924_v47, %v924_v47  ;;  %940 = vrot.lane.b32.xlu0 %v7206_v46, %s8266_s20 }
 0x344   : > { %990 = vrot.lane.b32.xlu1 %v7208_v49, %s8266_s20 }
 0x348   : > { %1039 = vrot.lane.b32.xlu1 %v7214_v50, %s8266_s20 }
 0x34c   : > { %1088 = vrot.lane.b32.xlu1 %v7218_v52, %s8266_s20  ;;  %s8292_s20 = smov 56  }
 0x3b4   : > { %v941_v53 = vpop.permute.xlu0 %940 }
 0x3b5   : > { %v947_v54 = vsel %vm942_vm3, %v941_v53, 0 }
 0x3b6   : > { %6080 = vmatpush3.bf16.xpose.msra.mxu1 %v947_v54  ;;  %v991_v55 = vpop.permute.xlu1 %990 }
 0x3b7   : > { %6085 = vmatprep.subr.bf16.mxu1 %v6929_v37  ;;  %v996_v56 = vsel %vm942_vm3, %v991_v55, 0 }
 0x3ba   : > { %v1040_v57 = vpop.permute.xlu1 %1039 }
 0x3bb   : > { %v1045_v58 = vsel %vm942_vm3, %v1040_v57, 0 }
 0x3bd   : > { %6082 = vmatmul.mubr.msk.bf16.vlgmr.msra.gmra.mrb[4].mxu1 %vm942_vm3, %v7206_v46 }
 0x3be   : > { %6086 = vmatpush3.bf16.xpose.msra.mxu1 %v996_v56  ;;  %6087 = vmatprep.mubr.msk.bf16.mxu1 %vm6930_vm2, %v6929_v37  ;;  %v1089_v59 = vpop.permute.xlu1 %1088 }
 0x3bf   : > { %6091 = vmatprep.subr.bf16.mxu1 %v6929_v37  ;;  %v1094_v60 = vsel %vm942_vm3, %v1089_v59, 0 }
 0x3c5   : > { %6088 = vmatmul.mubr.msk.bf16.vlgmr.msra.gmra.mrb[8].mxu1 %vm942_vm3, %v7208_v49 }
 0x3c6   : > { %6092 = vmatpush3.bf16.xpose.msra.mxu1 %v1045_v58  ;;  %6093 = vmatprep.mubr.msk.bf16.mxu1 %vm6930_vm2, %v6929_v37 }
 0x3c7   : > { %6097 = vmatprep.subr.bf16.mxu1 %v6929_v37 }
 0x3cd   : > { %6094 = vmatmul.mubr.msk.bf16.vlgmr.msra.gmra.mrb[12].mxu1 %vm942_vm3, %v7214_v50 }
 0x3ce   : > { %6098 = vmatpush3.bf16.xpose.msra.mxu1 %v1094_v60  ;;  %6099 = vmatprep.mubr.msk.bf16.mxu1 %vm6930_vm2, %v6929_v37 }
 0x3cf   : > { %6103 = vmatprep.subr.bf16.mxu1 %v6929_v37 }
 0x3d5   : > { %6100 = vmatmul.mubr.msk.bf16.vlgmr.msra.gmra.mrb[16].mxu1 %vm942_vm3, %v7218_v52 }
 0x3d6   : > { %6105 = vmatprep.mubr.msk.bf16.mxu1 %vm6930_vm2, %v6929_v37 }
 0x490   : > { %v983_v63 = vpop.f32.mrb[4].mxu1 }
 0x491   : > { %v1136_v2 = vmul.f32 0.35355338, %v983_v63  ;;  %v6083_v3 = vpop.f32.mrb[5].mxu1 }
 0x492   : > { %v986_v4 = vpop.f32.mrb[6].mxu1 }
 0x493   : > { %v6084_v5 = vpop.f32.mrb[7].mxu1  ;;  %v1140_v6 = vadd.f32 %v1136_v2, %v7246_v1 }
 0x495   : > { %v1144_v7 = vsel %vm942_vm3, %v1140_v6, -inf }
 0x496   : > { %1145 = vmax.xlane.f32.xlu0 %v1144_v7 }
 0x498   : > { %v1032_v8 = vpop.f32.mrb[8].mxu1 }
 0x499   : > { %v1137_v9 = vmul.f32 0.35355338, %v1032_v8  ;;  %v6089_v10 = vpop.f32.mrb[9].mxu1 }
 0x49a   : > { %v1035_v11 = vpop.f32.mrb[10].mxu1 }
 0x49b   : > { %v6090_v12 = vpop.f32.mrb[11].mxu1  ;;  %v1141_v13 = vadd.f32 %v1137_v9, %v7246_v1 }
 0x49d   : > { %v1147_v14 = vsel %vm942_vm3, %v1141_v13, -inf }
 0x49e   : > { %1148 = vmax.xlane.f32.xlu1 %v1147_v14 }
 0x4a0   : > { %v1081_v15 = vpop.f32.mrb[12].mxu1 }
 0x4a1   : > { %v1138_v16 = vmul.f32 0.35355338, %v1081_v15  ;;  %v6095_v17 = vpop.f32.mrb[13].mxu1 }
 0x4a2   : > { %v1084_v18 = vpop.f32.mrb[14].mxu1 }
 0x4a3   : > { %v6096_v19 = vpop.f32.mrb[15].mxu1  ;;  %v1142_v20 = vadd.f32 %v1138_v16, %v7246_v1 }
 0x4a5   : > { %v1150_v21 = vsel %vm942_vm3, %v1142_v20, -inf }
 0x4a6   : > { %1151 = vmax.xlane.f32.xlu0 %v1150_v21 }
 0x4a8   : > { %v1130_v22 = vpop.f32.mrb[16].mxu1 }
 0x4a9   : > { %v1139_v23 = vmul.f32 0.35355338, %v1130_v22  ;;  %v6101_v24 = vpop.f32.mrb[17].mxu1 }
 0x4aa   : > { %v1133_v25 = vpop.f32.mrb[18].mxu1 }
 0x4ab   : > { %v6102_v26 = vpop.f32.mrb[19].mxu1  ;;  %v1143_v27 = vadd.f32 %v1139_v23, %v7246_v1 }
 0x4ad   : > { %v1153_v29 = vsel %vm942_vm3, %v1143_v27, -inf }
 0x4ae   : > { %1154 = vmax.xlane.f32.xlu0 %v1153_v29 }
 0x4af   : > { %1241 = vrot.lane.b32.xlu1 %v7208_v49, %s8264_s2 }
 0x4b3   : > { %1289 = vrot.lane.b32.xlu1 %v7214_v50, %s8264_s2 }
 0x4b7   : > { %1337 = vrot.lane.b32.xlu1 %v7218_v52, %s8264_s2 }
 0x523   : > { %v1146_v30 = vpop.xlane.xlu0 %1145 }
 0x524   : > { %v1156_v32 = vsub.f32 %v1140_v6, %v1146_v30 }
 0x526   : > { %v1160_v33 = vmul.f32 1.442695, %v1156_v32 }
 0x528   : > { %6694 = vpow2.f32 %v1160_v33 }
 0x52b   : > { %v1149_v34 = vpop.xlane.xlu1 %1148 }
 0x52c   : > { %v1157_v35 = vsub.f32 %v1141_v13, %v1149_v34 }
 0x52e   : > { %v1162_v36 = vmul.f32 1.442695, %v1157_v35 }
 0x52f   : > { %v1242_v39 = vpop.permute.xlu1 %1241 }
 0x530   : > { %6696 = vpow2.f32 %v1162_v36  ;;  %v1247_v6 = vsel %vm1197_vm5, %v1242_v39, 0 }
 0x532   : > { %v6695_v40 = vpop.eup %6694 }
 0x533   : > { %v1290_v42 = vpop.permute.xlu1 %1289  ;;  %v1168_v43 = vsel %vm942_vm3, %v6695_v40, 0.0  ;;  %v1152_v48 = vpop.xlane.xlu0 %1151 }
 0x534   : > { %v1295_v44 = vsel %vm1197_vm5, %v1290_v42, 0  ;;  %1169 = vadd.xlane.f32.xlu0 %v1168_v43  ;;  %v1158_v51 = vsub.f32 %v1142_v20, %v1152_v48 }
 0x535   : > { %6116 = vmatpush3.bf16.msra.mxu0 %v1295_v44 }
 0x536   : > { %6127 = vmatprep.subr.bf16.mxu0 %v6929_v37  ;;  %v1164_v53 = vmul.f32 1.442695, %v1158_v51 }
 0x537   : > { %v1338_v62 = vpop.permute.xlu1 %1337 }
 0x538   : > { %6698 = vpow2.f32 %v1164_v53  ;;  %v1343_v10 = vsel %vm1197_vm5, %v1338_v62, 0 }
 0x53a   : > { %v6697_v45 = vpop.eup %6696 }
 0x53b   : > { %v1171_v47 = vsel %vm942_vm3, %v6697_v45, 0.0  ;;  %v1155_v54 = vpop.xlane.xlu0 %1154 }
 0x53c   : > { %1172 = vadd.xlane.f32.xlu1 %v1171_v47  ;;  %v1159_v55 = vsub.f32 %v1143_v27, %v1155_v54 }
 0x53e   : > { %v1166_v56 = vmul.f32 1.442695, %v1159_v55 }
 0x540   : > { %6700 = vpow2.f32 %v1166_v56 }
 0x542   : > { %v6699_v57 = vpop.eup %6698 }
 0x543   : > { %v1174_v58 = vsel %vm942_vm3, %v6699_v57, 0.0 }
 0x54a   : > { %1192 = vrot.lane.b32.xlu0 %v7206_v46, %s8264_s2  ;;  %v6701_v59 = vpop.eup %6700  ;;  %s8293_s2 = smov 80  }
 0x54b   : > { %v1177_v60 = vsel %vm942_vm3, %v6701_v59, 0.0 }
 0x54d   : > { %1437 = vrot.lane.b32.xlu1 %v7208_v49, %s8262_s26 }
 0x569   : > { %1175 = vadd.xlane.f32.xlu0 %v1174_v58 }
 0x571   : > { %1178 = vadd.xlane.f32.xlu1 %v1177_v60 }
 0x57f   : > { %1387 = vrot.lane.b32.xlu0 %v7206_v46, %s8262_s26 }
 0x582   : > { %1435 = vrot.lane.b32.xlu1 %v7208_v49, %s8258_s0 }
 0x583   : > { %1385 = vrot.lane.b32.xlu0 %v7206_v46, %s8258_s0 }
 0x586   : > { %1537 = vrot.lane.b32.xlu1 %v7218_v52, %s8262_s26 }
 0x587   : > { %1487 = vrot.lane.b32.xlu0 %v7214_v50, %s8262_s26  ;;  %s8294_s26 = smov 112  }
 0x58a   : > { %1535 = vrot.lane.b32.xlu1 %v7218_v52, %s8258_s0 }
 0x58b   : > { %1485 = vrot.lane.b32.xlu0 %v7214_v50, %s8258_s0  ;;  %s8288_s0 = smov 96  }
 0x5c1   : > { %v1170_v61 = vpop.xlane.xlu0 %1169 }
 0x5c2   : > { %6702 = vrcp.f32 %v1170_v61 }
 0x5c5   : > { %v1193_v63 = vpop.permute.xlu0 %1192 }
 0x5c6   : > { %v1199_v0 = vsel %vm1197_vm5, %v1193_v63, 0 }
 0x5c7   : > { %6104 = vmatpush3.bf16.msra.mxu1 %v1199_v0 }
 0x5c8   : > { %6109 = vmatprep.subr.bf16.mxu1 %v6929_v37 }
 0x5c9   : > { %v1173_v2 = vpop.xlane.xlu1 %1172 }
 0x5ca   : > { %6704 = vrcp.f32 %v1173_v2 }
 0x5cc   : > { %v6703_v3 = vpop.eup %6702 }
 0x5cd   : > { %v1184_v4 = vmul.f32 %v6703_v3, %v6695_v40  ;;  %v1438_v12 = vpop.permute.xlu1 %1437 }
 0x5ce   : > { %v1443_v25 = vsel %vm942_vm3, %v1438_v12, 0 }
 0x5cf   : > { %v1188_v5 = vpack.c.bf16 %v1184_v4, %v1184_v4 }
 0x5d1   : > { %6106 = vmatmul.mubr.msk.bf16.vlgmr.msra.gmra.mrb[20].mxu1 %vm942_vm3, %v1188_v5 }
 0x5d2   : > { %6110 = vmatpush3.bf16.msra.mxu1 %v1247_v6  ;;  %6111 = vmatprep.mubr.msk.bf16.mxu1 %vm6930_vm2, %v6929_v37 }
 0x5d3   : > { %6121 = vmatprep.subr.bf16.mxu1 %v6929_v37 }
 0x5d4   : > { %v6705_v7 = vpop.eup %6704 }
 0x5d5   : > { %v1185_v8 = vmul.f32 %v6705_v7, %v6697_v45 }
 0x5d7   : > { %v1189_v9 = vpack.c.bf16 %v1185_v8, %v1185_v8 }
 0x5d9   : > { %6112 = vmatmul.mubr.msk.bf16.vlgmr.msra.gmra.mrb[24].mxu1 %vm942_vm3, %v1189_v9 }
 0x5da   : > { %6122 = vmatpush3.bf16.msra.mxu1 %v1343_v10  ;;  %6123 = vmatprep.mubr.msk.bf16.mxu1 %vm6930_vm2, %v6929_v37 }
 0x5db   : > { %6133 = vmatprep.subr.bf16.mxu1 %v6929_v37 }
 0x5f6   : > { %v1176_v11 = vpop.xlane.xlu0 %1175 }
 0x5f7   : > { %6706 = vrcp.f32 %v1176_v11 }
 0x5fa   : > { %v1388_v14 = vpop.permute.xlu0 %1387 }
 0x5fb   : > { %v1393_v19 = vsel %vm942_vm3, %v1388_v14, 0 }
 0x5fe   : > { %v1179_v13 = vpop.xlane.xlu1 %1178  ;;  %v1386_v18 = vpop.permute.xlu0 %1385 }
 0x5ff   : > { %6708 = vrcp.f32 %v1179_v13 }
 0x601   : > { %v6707_v15 = vpop.eup %6706 }
 0x602   : > { %v1186_v16 = vmul.f32 %v6707_v15, %v6699_v57  ;;  %v1488_v22 = vpop.permute.xlu0 %1487  ;;  %v1436_v24 = vpop.permute.xlu1 %1435 }
 0x603   : > { %v1493_v26 = vsel %vm942_vm3, %v1488_v22, 0 }
 0x604   : > { %v1190_v17 = vpack.c.bf16 %v1186_v16, %v1186_v16 }
 0x606   : > { %6118 = vmatmul.mubr.msk.bf16.vlgmr.msra.gmra.mrb[8].mxu0 %vm942_vm3, %v1190_v17  ;;  %v1538_v27 = vpop.permute.xlu1 %1537  ;;  %v1486_v29 = vpop.permute.xlu0 %1485 }
 0x607   : > { %6128 = vmatpush3.bf16.xpose.msra.mxu0 %v1393_v19  ;;  %6129 = vmatprep.mubr.msk.bf16.mxu0 %vm6930_vm2, %v6929_v37  ;;  %v1543_v30 = vsel %vm942_vm3, %v1538_v27, 0 }
 0x608   : > { %6139 = vmatprep.subr.bf16.mxu0 %v6929_v37 }
 0x609   : > { %v6709_v20 = vpop.eup %6708 }
 0x60a   : > { %v1187_v21 = vmul.f32 %v6709_v20, %v6701_v59  ;;  %v1536_v32 = vpop.permute.xlu1 %1535 }
 0x60c   : > { %v1191_v23 = vpack.c.bf16 %v1187_v21, %v1187_v21 }
 0x60e   : > { %6124 = vmatmul.mubr.msk.bf16.vlgmr.msra.gmra.mrb[28].mxu1 %vm942_vm3, %v1191_v23  ;;  %6130 = vmatmul.mubr.msk.bf16.vlgmr.msra.gmra.mrb[12].mxu0 %vm942_vm3, %v1386_v18 }
 0x60f   : > { %6134 = vmatpush3.bf16.xpose.msra.mxu1 %v1443_v25  ;;  %6140 = vmatpush3.bf16.xpose.msra.mxu0 %v1493_v26 }
 0x610   : > { %6135 = vmatprep.mubr.msk.bf16.mxu1 %vm6930_vm2, %v6929_v37  ;;  %6141 = vmatprep.mubr.msk.bf16.mxu0 %vm6930_vm2, %v6929_v37 }
 0x611   : > { %6145 = vmatprep.subr.bf16.mxu1 %v6929_v37  ;;  %6151 = vmatprep.subr.bf16.mxu0 %v6929_v37 }
 0x616   : > { %6136 = vmatmul.mubr.msk.bf16.vlgmr.msra.gmra.mrb[32].mxu1 %vm942_vm3, %v1436_v24  ;;  %6142 = vmatmul.mubr.msk.bf16.vlgmr.msra.gmra.mrb[16].mxu0 %vm942_vm3, %v1486_v29 }
 0x617   : > { %6146 = vmatpush3.bf16.xpose.msra.mxu1 %v1543_v30  ;;  %6147 = vmatprep.mubr.msk.bf16.mxu1 %vm6930_vm2, %v6929_v37 }
 0x618   : > { %6157 = vmatprep.subr.bf16.mxu1 %v6929_v37  ;;  %6153 = vmatprep.mubr.msk.bf16.mxu0 %vm6930_vm2, %v6929_v37 }
 0x61e   : > { %6148 = vmatmul.mubr.msk.bf16.vlgmr.msra.gmra.mrb[36].mxu1 %vm942_vm3, %v1536_v32 }
 0x61f   : > { %6159 = vmatprep.mubr.msk.bf16.mxu1 %vm6930_vm2, %v6929_v37 }
 0x6a4   : > { %v7324_v33 = vpop.f32.mrb[20].mxu1 }
 0x6a5   : > { %v6107_v34 = vpop.f32.mrb[21].mxu1 }
 0x6a6   : > { %v1238_v35 = vpop.f32.mrb[22].mxu1 }
 0x6a7   : > { %v6108_v36 = vpop.f32.mrb[23].mxu1 }
 0x6ac   : > { %v7326_v39 = vpop.f32.mrb[24].mxu1 }
 0x6ad   : > { %v6113_v40 = vpop.f32.mrb[25].mxu1 }
 0x6ae   : > { %v1286_v42 = vpop.f32.mrb[26].mxu1 }
 0x6af   : > { %v6114_v43 = vpop.f32.mrb[27].mxu1 }
 0x6d9   : > { %v7328_v44 = vpop.f32.mrb[8].mxu0 }
 0x6da   : > { %v6119_v45 = vpop.f32.mrb[9].mxu0 }
 0x6db   : > { %v1334_v47 = vpop.f32.mrb[10].mxu0 }
 0x6dc   : > { %v6120_v48 = vpop.f32.mrb[11].mxu0 }
 0x6e1   : > { %v7330_v51 = vpop.f32.mrb[28].mxu1  ;;  %v1429_v53 = vpop.f32.mrb[12].mxu0 }
 0x6e2   : > { %v1585_v54 = vmul.f32 0.35355338, %v1429_v53  ;;  %v6125_v55 = vpop.f32.mrb[29].mxu1  ;;  %v6131_v56 = vpop.f32.mrb[13].mxu0 }
 0x6e3   : > { %v1382_v57 = vpop.f32.mrb[30].mxu1  ;;  %v1432_v58 = vpop.f32.mrb[14].mxu0 }
 0x6e4   : > { %v6126_v59 = vpop.f32.mrb[31].mxu1  ;;  %v6132_v60 = vpop.f32.mrb[15].mxu0  ;;  %v1589_v61 = vadd.f32 %v1585_v54, %v7246_v1 }
 0x6e6   : > { %v1593_v62 = vsel %vm942_vm3, %v1589_v61, -inf }
 0x6e7   : > { %1594 = vmax.xlane.f32.xlu0 %v1593_v62 }
 0x6e9   : > { %v1479_v63 = vpop.f32.mrb[32].mxu1  ;;  %v1529_v0 = vpop.f32.mrb[16].mxu0 }
 0x6ea   : > { %v1586_v2 = vmul.f32 0.35355338, %v1479_v63  ;;  %v1587_v3 = vmul.f32 0.35355338, %v1529_v0  ;;  %v6137_v4 = vpop.f32.mrb[33].mxu1  ;;  %v6143_v5 = vpop.f32.mrb[17].mxu0 }
 0x6eb   : > { %v1482_v6 = vpop.f32.mrb[34].mxu1  ;;  %v1532_v7 = vpop.f32.mrb[18].mxu0 }
 0x6ec   : > { %v6138_v8 = vpop.f32.mrb[35].mxu1  ;;  %v6144_v9 = vpop.f32.mrb[19].mxu0  ;;  %v1591_v10 = vadd.f32 %v1587_v3, %v7246_v1  ;;  %v1590_v11 = vadd.f32 %v1586_v2, %v7246_v1 }
 0x6ee   : > { %v1599_v12 = vsel %vm942_vm3, %v1591_v10, -inf  ;;  %v1596_v13 = vsel %vm942_vm3, %v1590_v11, -inf }
 0x6ef   : > { %1600 = vmax.xlane.f32.xlu0 %v1599_v12  ;;  %1597 = vmax.xlane.f32.xlu1 %v1596_v13 }
 0x6f1   : > { %v1579_v14 = vpop.f32.mrb[36].mxu1 }
 0x6f2   : > { %v1588_v15 = vmul.f32 0.35355338, %v1579_v14  ;;  %v6149_v16 = vpop.f32.mrb[37].mxu1 }
 0x6f3   : > { %v1582_v17 = vpop.f32.mrb[38].mxu1 }
 0x6f4   : > { %v6150_v18 = vpop.f32.mrb[39].mxu1  ;;  %v1592_v19 = vadd.f32 %v1588_v15, %v7246_v1 }
 0x6f6   : > { %v1602_v20 = vsel %vm942_vm3, %v1592_v19, -inf }
 0x6f7   : > { %1603 = vmax.xlane.f32.xlu0 %v1602_v20 }
 0x700   : > { %1689 = vrot.lane.b32.xlu1 %v7208_v49, %s8256_s27 }
 0x704   : > { %1737 = vrot.lane.b32.xlu1 %v7214_v50, %s8256_s27 }
 0x708   : > { %1785 = vrot.lane.b32.xlu1 %v7218_v52, %s8256_s27 }
 0x774   : > { %v1595_v21 = vpop.xlane.xlu0 %1594 }
 0x775   : > { %v1605_v22 = vsub.f32 %v1589_v61, %v1595_v21 }
 0x777   : > { %v1609_v23 = vmul.f32 1.442695, %v1605_v22 }
 0x779   : > { %6710 = vpow2.f32 %v1609_v23 }
 0x77c   : > { %v1598_v24 = vpop.xlane.xlu1 %1597  ;;  %v1601_v36 = vpop.xlane.xlu0 %1600 }
 0x77d   : > { %v1606_v25 = vsub.f32 %v1590_v11, %v1598_v24  ;;  %v1607_v40 = vsub.f32 %v1591_v10, %v1601_v36 }
 0x77f   : > { %v1611_v26 = vmul.f32 1.442695, %v1606_v25  ;;  %v1613_v42 = vmul.f32 1.442695, %v1607_v40 }
 0x780   : > { %v1690_v27 = vpop.permute.xlu1 %1689 }
 0x781   : > { %v1695_v29 = vsel %vm1197_vm5, %v1690_v27, 0  ;;  %6712 = vpow2.f32 %v1611_v26 }
 0x782   : > { %6158 = vmatpush3.bf16.msra.mxu1 %v1695_v29  ;;  %6714 = vpow2.f32 %v1613_v42 }
 0x783   : > { %v6711_v30 = vpop.eup %6710  ;;  %6169 = vmatprep.subr.bf16.mxu1 %v6929_v37 }
 0x784   : > { %v1617_v32 = vsel %vm942_vm3, %v6711_v30, 0.0  ;;  %v1604_v43 = vpop.xlane.xlu0 %1603  ;;  %v1738_v56 = vpop.permute.xlu1 %1737 }
 0x785   : > { %1618 = vadd.xlane.f32.xlu0 %v1617_v32  ;;  %v1608_v45 = vsub.f32 %v1592_v19, %v1604_v43  ;;  %v1743_v2 = vsel %vm1197_vm5, %v1738_v56, 0 }
 0x787   : > { %v1615_v47 = vmul.f32 1.442695, %v1608_v45 }
 0x788   : > { %v1786_v59 = vpop.permute.xlu1 %1785 }
 0x789   : > { %6716 = vpow2.f32 %v1615_v47  ;;  %v1791_v6 = vsel %vm1197_vm5, %v1786_v59, 0 }
 0x78b   : > { %v6713_v34 = vpop.eup %6712 }
 0x78c   : > { %v1620_v35 = vsel %vm942_vm3, %v6713_v34, 0.0  ;;  %v6715_v48 = vpop.eup %6714 }
 0x78d   : > { %1621 = vadd.xlane.f32.xlu1 %v1620_v35  ;;  %v1623_v53 = vsel %vm942_vm3, %v6715_v48, 0.0 }
 0x793   : > { %v6717_v54 = vpop.eup %6716 }
 0x794   : > { %v1626_v55 = vsel %vm942_vm3, %v6717_v54, 0.0 }
 0x79b   : > { %1641 = vrot.lane.b32.xlu0 %v7206_v46, %s8256_s27  ;;  %s8289_s27 = smov 64  }
 0x79e   : > { %1885 = vrot.lane.b32.xlu1 %v7208_v49, %s8248_s28 }
 0x7ba   : > { %1624 = vadd.xlane.f32.xlu0 %v1623_v53 }
 0x7c2   : > { %1627 = vadd.xlane.f32.xlu1 %v1626_v55 }
 0x7d0   : > { %1835 = vrot.lane.b32.xlu0 %v7206_v46, %s8248_s28 }
 0x7d3   : > { %1883 = vrot.lane.b32.xlu1 %v7208_v49, %s8240_s23 }
 0x7d4   : > { %1833 = vrot.lane.b32.xlu0 %v7206_v46, %s8240_s23 }
 0x7d7   : > { %1985 = vrot.lane.b32.xlu1 %v7218_v52, %s8248_s28 }
 0x7d8   : > { %1935 = vrot.lane.b32.xlu0 %v7214_v50, %s8248_s28  ;;  %s8250_s28 = smov 16  }
 0x7db   : > { %1983 = vrot.lane.b32.xlu1 %v7218_v52, %s8240_s23 }
 0x7dc   : > { %1933 = vrot.lane.b32.xlu0 %v7214_v50, %s8240_s23  ;;  %s8246_s23 = smov 72  }
 0x812   : > { %v1619_v57 = vpop.xlane.xlu0 %1618 }
 0x813   : > { %6718 = vrcp.f32 %v1619_v57 }
 0x816   : > { %v1642_v58 = vpop.permute.xlu0 %1641 }
 0x817   : > { %v1647_v60 = vsel %vm1197_vm5, %v1642_v58, 0 }
 0x818   : > { %6152 = vmatpush3.bf16.msra.mxu0 %v1647_v60 }
 0x819   : > { %6163 = vmatprep.subr.bf16.mxu0 %v6929_v37 }
 0x81a   : > { %v1622_v61 = vpop.xlane.xlu1 %1621 }
 0x81b   : > { %6720 = vrcp.f32 %v1622_v61 }
 0x81d   : > { %v6719_v62 = vpop.eup %6718 }
 0x81e   : > { %v1633_v63 = vmul.f32 %v6719_v62, %v6711_v30  ;;  %v1886_v8 = vpop.permute.xlu1 %1885 }
 0x81f   : > { %v1891_v22 = vsel %vm942_vm3, %v1886_v8, 0 }
 0x820   : > { %v1637_v0 = vpack.c.bf16 %v1633_v63, %v1633_v63 }
 0x822   : > { %6154 = vmatmul.mubr.msk.bf16.vlgmr.msra.gmra.mrb[20].mxu0 %vm942_vm3, %v1637_v0 }
 0x823   : > { %6164 = vmatpush3.bf16.msra.mxu0 %v1743_v2  ;;  %6165 = vmatprep.mubr.msk.bf16.mxu0 %vm6930_vm2, %v6929_v37 }
 0x824   : > { %6175 = vmatprep.subr.bf16.mxu0 %v6929_v37 }
 0x825   : > { %v6721_v3 = vpop.eup %6720 }
 0x826   : > { %v1634_v4 = vmul.f32 %v6721_v3, %v6713_v34 }
 0x828   : > { %v1638_v5 = vpack.c.bf16 %v1634_v4, %v1634_v4 }
 0x82a   : > { %6160 = vmatmul.mubr.msk.bf16.vlgmr.msra.gmra.mrb[40].mxu1 %vm942_vm3, %v1638_v5 }
 0x82b   : > { %6170 = vmatpush3.bf16.msra.mxu1 %v1791_v6  ;;  %6171 = vmatprep.mubr.msk.bf16.mxu1 %vm6930_vm2, %v6929_v37 }
 0x82c   : > { %6181 = vmatprep.subr.bf16.mxu1 %v6929_v37 }
 0x847   : > { %v1625_v7 = vpop.xlane.xlu0 %1624 }
 0x848   : > { %6722 = vrcp.f32 %v1625_v7 }
 0x84b   : > { %v1836_v9 = vpop.permute.xlu0 %1835 }
 0x84c   : > { %v1841_v15 = vsel %vm942_vm3, %v1836_v9, 0 }
 0x84f   : > { %v1628_v10 = vpop.xlane.xlu1 %1627  ;;  %v1834_v14 = vpop.permute.xlu0 %1833 }
 0x850   : > { %6724 = vrcp.f32 %v1628_v10 }
 0x852   : > { %v6723_v11 = vpop.eup %6722 }
 0x853   : > { %v1635_v12 = vmul.f32 %v6723_v11, %v6715_v48  ;;  %v1936_v17 = vpop.permute.xlu0 %1935  ;;  %v1884_v20 = vpop.permute.xlu1 %1883 }
 0x854   : > { %v1941_v21 = vsel %vm942_vm3, %v1936_v17, 0 }
 0x855   : > { %v1639_v13 = vpack.c.bf16 %v1635_v12, %v1635_v12 }
 0x857   : > { %6166 = vmatmul.mubr.msk.bf16.vlgmr.msra.gmra.mrb[24].mxu0 %vm942_vm3, %v1639_v13  ;;  %v1986_v23 = vpop.permute.xlu1 %1985  ;;  %v1934_v24 = vpop.permute.xlu0 %1933 }
 0x858   : > { %6176 = vmatpush3.bf16.xpose.msra.mxu0 %v1841_v15  ;;  %6177 = vmatprep.mubr.msk.bf16.mxu0 %vm6930_vm2, %v6929_v37  ;;  %v1991_v25 = vsel %vm942_vm3, %v1986_v23, 0 }
 0x859   : > { %6187 = vmatprep.subr.bf16.mxu0 %v6929_v37 }
 0x85a   : > { %v6725_v16 = vpop.eup %6724 }
 0x85b   : > { %v1636_v18 = vmul.f32 %v6725_v16, %v6717_v54  ;;  %v1984_v26 = vpop.permute.xlu1 %1983 }
 0x85d   : > { %v1640_v19 = vpack.c.bf16 %v1636_v18, %v1636_v18 }
 0x85f   : > { %6178 = vmatmul.mubr.msk.bf16.vlgmr.msra.gmra.mrb[28].mxu0 %vm942_vm3, %v1834_v14  ;;  %6172 = vmatmul.mubr.msk.bf16.vlgmr.msra.gmra.mrb[44].mxu1 %vm942_vm3, %v1640_v19 }
 0x860   : > { %6188 = vmatpush3.bf16.xpose.msra.mxu0 %v1941_v21  ;;  %6182 = vmatpush3.bf16.xpose.msra.mxu1 %v1891_v22 }
 0x861   : > { %6183 = vmatprep.mubr.msk.bf16.mxu1 %vm6930_vm2, %v6929_v37  ;;  %6189 = vmatprep.mubr.msk.bf16.mxu0 %vm6930_vm2, %v6929_v37 }
 0x862   : > { %6193 = vmatprep.subr.bf16.mxu1 %v6929_v37  ;;  %6199 = vmatprep.subr.bf16.mxu0 %v6929_v37 }
 0x867   : > { %6190 = vmatmul.mubr.msk.bf16.vlgmr.msra.gmra.mrb[32].mxu0 %vm942_vm3, %v1934_v24  ;;  %6184 = vmatmul.mubr.msk.bf16.vlgmr.msra.gmra.mrb[48].mxu1 %vm942_vm3, %v1884_v20 }
 0x868   : > { %6201 = vmatprep.mubr.msk.bf16.mxu0 %vm6930_vm2, %v6929_v37  ;;  %6194 = vmatpush3.bf16.xpose.msra.mxu1 %v1991_v25 }
 0x869   : > { %6195 = vmatprep.mubr.msk.bf16.mxu1 %vm6930_vm2, %v6929_v37  ;;  %6205 = vmatprep.subr.bf16.mxu1 %v6929_v37 }
 0x86f   : > { %6196 = vmatmul.mubr.msk.bf16.vlgmr.msra.gmra.mrb[52].mxu1 %vm942_vm3, %v1984_v26 }
 0x870   : > { %6207 = vmatprep.mubr.msk.bf16.mxu1 %vm6930_vm2, %v6929_v37 }
 0x8f5   : > { %v7408_v27 = vpop.f32.mrb[20].mxu0 }
 0x8f6   : > { %v6155_v29 = vpop.f32.mrb[21].mxu0 }
 0x8f7   : > { %v1686_v30 = vpop.f32.mrb[22].mxu0 }
 0x8f8   : > { %v6156_v32 = vpop.f32.mrb[23].mxu0 }
 0x8fd   : > { %v7410_v34 = vpop.f32.mrb[40].mxu1 }
 0x8fe   : > { %v6592_v35 = vpack.i.bf16 %v7410_v34, %v7408_v27  ;;  %v6161_v36 = vpop.f32.mrb[41].mxu1 }
 0x8ff   : > { %v1734_v40 = vpop.f32.mrb[42].mxu1 }
 0x900   : > { %v6162_v42 = vpop.f32.mrb[43].mxu1 }
 0x92a   : > { %v7414_v43 = vpop.f32.mrb[24].mxu0 }
 0x92b   : > { %v6167_v45 = vpop.f32.mrb[25].mxu0 }
 0x92c   : > { %v1782_v47 = vpop.f32.mrb[26].mxu0 }
 0x92d   : > { %v6168_v48 = vpop.f32.mrb[27].mxu0 }
 0x932   : > { %v1877_v53 = vpop.f32.mrb[28].mxu0  ;;  %v7416_v54 = vpop.f32.mrb[44].mxu1 }
 0x933   : > { %v2033_v55 = vmul.f32 0.35355338, %v1877_v53  ;;  %v6179_v56 = vpop.f32.mrb[29].mxu0  ;;  %v6597_v57 = vpack.i.bf16 %v7416_v54, %v7414_v43  ;;  %v6173_v58 = vpop.f32.mrb[45].mxu1 }
 0x934   : > { %v1880_v59 = vpop.f32.mrb[30].mxu0  ;;  %v1830_v60 = vpop.f32.mrb[46].mxu1 }
 0x935   : > { %v6180_v61 = vpop.f32.mrb[31].mxu0  ;;  %v2037_v62 = vadd.f32 %v2033_v55, %v7246_v1  ;;  %v6174_v63 = vpop.f32.mrb[47].mxu1 }
 0x937   : > { %v2041_v0 = vsel %vm942_vm3, %v2037_v62, -inf }
 0x938   : > { %2042 = vmax.xlane.f32.xlu0 %v2041_v0 }
 0x93a   : > { %v1977_v2 = vpop.f32.mrb[32].mxu0  ;;  %v1927_v3 = vpop.f32.mrb[48].mxu1 }
 0x93b   : > { %v2035_v4 = vmul.f32 0.35355338, %v1977_v2  ;;  %v6191_v5 = vpop.f32.mrb[33].mxu0  ;;  %v2034_v6 = vmul.f32 0.35355338, %v1927_v3  ;;  %v6185_v7 = vpop.f32.mrb[49].mxu1 }
 0x93c   : > { %v1980_v8 = vpop.f32.mrb[34].mxu0  ;;  %v1930_v9 = vpop.f32.mrb[50].mxu1 }
 0x93d   : > { %v6192_v10 = vpop.f32.mrb[35].mxu0  ;;  %v2039_v11 = vadd.f32 %v2035_v4, %v7246_v1  ;;  %v6186_v12 = vpop.f32.mrb[51].mxu1  ;;  %v2038_v13 = vadd.f32 %v2034_v6, %v7246_v1 }
 0x93f   : > { %v2047_v14 = vsel %vm942_vm3, %v2039_v11, -inf  ;;  %v2044_v15 = vsel %vm942_vm3, %v2038_v13, -inf }
 0x940   : > { %2048 = vmax.xlane.f32.xlu0 %v2047_v14  ;;  %2045 = vmax.xlane.f32.xlu1 %v2044_v15 }
 0x942   : > { %v2027_v16 = vpop.f32.mrb[52].mxu1 }
 0x943   : > { %v2036_v17 = vmul.f32 0.35355338, %v2027_v16  ;;  %v6197_v18 = vpop.f32.mrb[53].mxu1 }
 0x944   : > { %v2030_v19 = vpop.f32.mrb[54].mxu1 }
 0x945   : > { %v6198_v20 = vpop.f32.mrb[55].mxu1  ;;  %v2040_v21 = vadd.f32 %v2036_v17, %v7246_v1 }
 0x947   : > { %v2050_v22 = vsel %vm942_vm3, %v2040_v21, -inf }
 0x948   : > { %2051 = vmax.xlane.f32.xlu0 %v2050_v22 }
 0x951   : > { %2137 = vrot.lane.b32.xlu1 %v7208_v49, %s8242_s24 }
 0x955   : > { %2185 = vrot.lane.b32.xlu1 %v7214_v50, %s8242_s24 }
 0x959   : > { %2233 = vrot.lane.b32.xlu1 %v7218_v52, %s8242_s24 }
 0x9c5   : > { %v2043_v23 = vpop.xlane.xlu0 %2042 }
 0x9c6   : > { %v2053_v24 = vsub.f32 %v2037_v62, %v2043_v23 }
 0x9c8   : > { %v2057_v25 = vmul.f32 1.442695, %v2053_v24 }
 0x9ca   : > { %6726 = vpow2.f32 %v2057_v25 }
 0x9cd   : > { %v2046_v26 = vpop.xlane.xlu1 %2045  ;;  %v2049_v48 = vpop.xlane.xlu0 %2048 }
 0x9ce   : > { %v2054_v29 = vsub.f32 %v2038_v13, %v2046_v26  ;;  %v2055_v53 = vsub.f32 %v2039_v11, %v2049_v48 }
 0x9d0   : > { %v2059_v30 = vmul.f32 1.442695, %v2054_v29  ;;  %v2061_v55 = vmul.f32 1.442695, %v2055_v53 }
 0x9d1   : > { %v2138_v32 = vpop.permute.xlu1 %2137 }
 0x9d2   : > { %6728 = vpow2.f32 %v2059_v30  ;;  %v2143_v36 = vsel %vm1197_vm5, %v2138_v32, 0 }
 0x9d3   : > { %6206 = vmatpush3.bf16.msra.mxu1 %v2143_v36  ;;  %6730 = vpow2.f32 %v2061_v55 }
 0x9d4   : > { %v6727_v40 = vpop.eup %6726  ;;  %6217 = vmatprep.subr.bf16.mxu1 %v6929_v37 }
 0x9d5   : > { %v2065_v42 = vsel %vm942_vm3, %v6727_v40, 0.0  ;;  %v2052_v56 = vpop.xlane.xlu0 %2051  ;;  %v2186_v0 = vpop.permute.xlu1 %2185 }
 0x9d6   : > { %2066 = vadd.xlane.f32.xlu0 %v2065_v42  ;;  %v2056_v58 = vsub.f32 %v2040_v21, %v2052_v56  ;;  %v2191_v10 = vsel %vm1197_vm5, %v2186_v0, 0 }
 0x9d8   : > { %v2063_v59 = vmul.f32 1.442695, %v2056_v58 }
 0x9d9   : > { %v2234_v4 = vpop.permute.xlu1 %2233 }
 0x9da   : > { %6732 = vpow2.f32 %v2063_v59  ;;  %v2239_v14 = vsel %vm1197_vm5, %v2234_v4, 0 }
 0x9dc   : > { %v6729_v45 = vpop.eup %6728 }
 0x9dd   : > { %v2068_v47 = vsel %vm942_vm3, %v6729_v45, 0.0  ;;  %v6731_v60 = vpop.eup %6730 }
 0x9de   : > { %2069 = vadd.xlane.f32.xlu1 %v2068_v47  ;;  %v2071_v61 = vsel %vm942_vm3, %v6731_v60, 0.0 }
 0x9e4   : > { %v6733_v62 = vpop.eup %6732 }
 0x9e5   : > { %v2074_v63 = vsel %vm942_vm3, %v6733_v62, 0.0 }
 0x9ec   : > { %2089 = vrot.lane.b32.xlu0 %v7206_v46, %s8242_s24  ;;  %s8244_s24 = smov 104  }
 0x9ef   : > { %2333 = vrot.lane.b32.xlu1 %v7208_v49, %s8246_s23 }
 0xa0b   : > { %2072 = vadd.xlane.f32.xlu0 %v2071_v61 }
 0xa13   : > { %2075 = vadd.xlane.f32.xlu1 %v2074_v63 }
 0xa21   : > { %2283 = vrot.lane.b32.xlu0 %v7206_v46, %s8246_s23 }
 0xa24   : > { %2331 = vrot.lane.b32.xlu1 %v7208_v49, %s8244_s24 }
 0xa25   : > { %2281 = vrot.lane.b32.xlu0 %v7206_v46, %s8244_s24 }
 0xa28   : > { %2433 = vrot.lane.b32.xlu1 %v7218_v52, %s8246_s23 }
 0xa29   : > { %2383 = vrot.lane.b32.xlu0 %v7214_v50, %s8246_s23  ;;  %s8252_s23 = smov 8  }
 0xa2c   : > { %2431 = vrot.lane.b32.xlu1 %v7218_v52, %s8244_s24 }
 0xa2d   : > { %2381 = vrot.lane.b32.xlu0 %v7214_v50, %s8244_s24  ;;  %s8254_s24 = smov 40  }
 0xa63   : > { %v2067_v2 = vpop.xlane.xlu0 %2066 }
 0xa64   : > { %6734 = vrcp.f32 %v2067_v2 }
 0xa67   : > { %v2090_v3 = vpop.permute.xlu0 %2089 }
 0xa68   : > { %v2095_v5 = vsel %vm1197_vm5, %v2090_v3, 0 }
 0xa69   : > { %6200 = vmatpush3.bf16.msra.mxu0 %v2095_v5 }
 0xa6a   : > { %6211 = vmatprep.subr.bf16.mxu0 %v6929_v37 }
 0xa6b   : > { %v2070_v6 = vpop.xlane.xlu1 %2069 }
 0xa6c   : > { %6736 = vrcp.f32 %v2070_v6 }
 0xa6e   : > { %v6735_v7 = vpop.eup %6734 }
 0xa6f   : > { %v2081_v8 = vmul.f32 %v6735_v7, %v6727_v40  ;;  %v2334_v16 = vpop.permute.xlu1 %2333 }
 0xa70   : > { %v2339_v36 = vsel %vm942_vm3, %v2334_v16, 0 }
 0xa71   : > { %v2085_v9 = vpack.c.bf16 %v2081_v8, %v2081_v8 }
 0xa73   : > { %6202 = vmatmul.mubr.msk.bf16.vlgmr.msra.gmra.mrb[36].mxu0 %vm942_vm3, %v2085_v9 }
 0xa74   : > { %6212 = vmatpush3.bf16.msra.mxu0 %v2191_v10  ;;  %6213 = vmatprep.mubr.msk.bf16.mxu0 %vm6930_vm2, %v6929_v37 }
 0xa75   : > { %6223 = vmatprep.subr.bf16.mxu0 %v6929_v37 }
 0xa76   : > { %v6737_v11 = vpop.eup %6736 }
 0xa77   : > { %v2082_v12 = vmul.f32 %v6737_v11, %v6729_v45 }
 0xa79   : > { %v2086_v13 = vpack.c.bf16 %v2082_v12, %v2082_v12 }
 0xa7b   : > { %6208 = vmatmul.mubr.msk.bf16.vlgmr.msra.gmra.mrb[56].mxu1 %vm942_vm3, %v2086_v13 }
 0xa7c   : > { %6218 = vmatpush3.bf16.msra.mxu1 %v2239_v14  ;;  %6219 = vmatprep.mubr.msk.bf16.mxu1 %vm6930_vm2, %v6929_v37 }
 0xa7d   : > { %6229 = vmatprep.subr.bf16.mxu1 %v6929_v37 }
 0xa98   : > { %v2073_v15 = vpop.xlane.xlu0 %2072 }
 0xa99   : > { %6738 = vrcp.f32 %v2073_v15 }
 0xa9c   : > { %v2284_v17 = vpop.permute.xlu0 %2283 }
 0xa9d   : > { %v2289_v23 = vsel %vm942_vm3, %v2284_v17, 0 }
 0xaa0   : > { %v2076_v18 = vpop.xlane.xlu1 %2075  ;;  %v2282_v22 = vpop.permute.xlu0 %2281 }
 0xaa1   : > { %6740 = vrcp.f32 %v2076_v18 }
 0xaa3   : > { %v6739_v19 = vpop.eup %6738 }
 0xaa4   : > { %v2083_v20 = vmul.f32 %v6739_v19, %v6731_v60  ;;  %v2384_v25 = vpop.permute.xlu0 %2383  ;;  %v2332_v30 = vpop.permute.xlu1 %2331 }
 0xaa5   : > { %v2389_v32 = vsel %vm942_vm3, %v2384_v25, 0 }
 0xaa6   : > { %v2087_v21 = vpack.c.bf16 %v2083_v20, %v2083_v20 }
 0xaa8   : > { %6214 = vmatmul.mubr.msk.bf16.vlgmr.msra.gmra.mrb[40].mxu0 %vm942_vm3, %v2087_v21  ;;  %v2434_v40 = vpop.permute.xlu1 %2433  ;;  %v2382_v42 = vpop.permute.xlu0 %2381 }
 0xaa9   : > { %6224 = vmatpush3.bf16.xpose.msra.mxu0 %v2289_v23  ;;  %6225 = vmatprep.mubr.msk.bf16.mxu0 %vm6930_vm2, %v6929_v37  ;;  %v2439_v45 = vsel %vm942_vm3, %v2434_v40, 0 }
 0xaaa   : > { %6235 = vmatprep.subr.bf16.mxu0 %v6929_v37 }
 0xaab   : > { %v6741_v24 = vpop.eup %6740 }
 0xaac   : > { %v2084_v26 = vmul.f32 %v6741_v24, %v6733_v62  ;;  %v2432_v47 = vpop.permute.xlu1 %2431 }
 0xaae   : > { %v2088_v29 = vpack.c.bf16 %v2084_v26, %v2084_v26 }
 0xab0   : > { %6226 = vmatmul.mubr.msk.bf16.vlgmr.msra.gmra.mrb[44].mxu0 %vm942_vm3, %v2282_v22  ;;  %6220 = vmatmul.mubr.msk.bf16.vlgmr.msra.gmra.mrb[60].mxu1 %vm942_vm3, %v2088_v29 }
 0xab1   : > { %6236 = vmatpush3.bf16.xpose.msra.mxu0 %v2389_v32  ;;  %6230 = vmatpush3.bf16.xpose.msra.mxu1 %v2339_v36 }
 0xab2   : > { %6231 = vmatprep.mubr.msk.bf16.mxu1 %vm6930_vm2, %v6929_v37  ;;  %6237 = vmatprep.mubr.msk.bf16.mxu0 %vm6930_vm2, %v6929_v37 }
 0xab3   : > { %6241 = vmatprep.subr.bf16.mxu1 %v6929_v37  ;;  %6247 = vmatprep.subr.bf16.mxu0 %v6929_v37 }
 0xab8   : > { %6238 = vmatmul.mubr.msk.bf16.vlgmr.msra.gmra.mrb[48].mxu0 %vm942_vm3, %v2382_v42  ;;  %6232 = vmatmul.mubr.msk.bf16.vlgmr.msra.gmra.mrb[64].mxu1 %vm942_vm3, %v2332_v30 }
 0xab9   : > { %6249 = vmatprep.mubr.msk.bf16.mxu0 %vm6930_vm2, %v6929_v37  ;;  %6242 = vmatpush3.bf16.xpose.msra.mxu1 %v2439_v45 }
 0xaba   : > { %6243 = vmatprep.mubr.msk.bf16.mxu1 %vm6930_vm2, %v6929_v37  ;;  %6253 = vmatprep.subr.bf16.mxu1 %v6929_v37 }
 0xac0   : > { %6244 = vmatmul.mubr.msk.bf16.vlgmr.msra.gmra.mrb[68].mxu1 %vm942_vm3, %v2432_v47 }
 0xac1   : > { %6255 = vmatprep.mubr.msk.bf16.mxu1 %vm6930_vm2, %v6929_v37 }
 0xb46   : > { %v7496_v48 = vpop.f32.mrb[36].mxu0 }
 0xb47   : > { %v6203_v53 = vpop.f32.mrb[37].mxu0 }
 0xb48   : > { %v2134_v55 = vpop.f32.mrb[38].mxu0 }
 0xb49   : > { %v6204_v56 = vpop.f32.mrb[39].mxu0 }
 0xb4e   : > { %v7498_v58 = vpop.f32.mrb[56].mxu1 }
 0xb4f   : > { %v6602_v59 = vpack.i.bf16 %v7498_v58, %v7496_v48  ;;  %v6209_v60 = vpop.f32.mrb[57].mxu1 }
 0xb50   : > { %v2182_v61 = vpop.f32.mrb[58].mxu1 }
 0xb51   : > { %v6210_v62 = vpop.f32.mrb[59].mxu1 }
 0xb7b   : > { %v7502_v63 = vpop.f32.mrb[40].mxu0 }
 0xb7c   : > { %v6215_v0 = vpop.f32.mrb[41].mxu0 }
 0xb7d   : > { %v2230_v2 = vpop.f32.mrb[42].mxu0 }
 0xb7e   : > { %v6216_v3 = vpop.f32.mrb[43].mxu0 }
 0xb83   : > { %v2325_v4 = vpop.f32.mrb[44].mxu0  ;;  %v7504_v5 = vpop.f32.mrb[60].mxu1 }
 0xb84   : > { %v2481_v6 = vmul.f32 0.35355338, %v2325_v4  ;;  %v6227_v7 = vpop.f32.mrb[45].mxu0  ;;  %v6607_v8 = vpack.i.bf16 %v7504_v5, %v7502_v63  ;;  %v6221_v9 = vpop.f32.mrb[61].mxu1 }
 0xb85   : > { %v2328_v10 = vpop.f32.mrb[46].mxu0  ;;  %v2278_v11 = vpop.f32.mrb[62].mxu1 }
 0xb86   : > { %v6228_v12 = vpop.f32.mrb[47].mxu0  ;;  %v2485_v13 = vadd.f32 %v2481_v6, %v7246_v1  ;;  %v6222_v14 = vpop.f32.mrb[63].mxu1 }
 0xb88   : > { %v2489_v15 = vsel %vm942_vm3, %v2485_v13, -inf }
 0xb89   : > { %2490 = vmax.xlane.f32.xlu0 %v2489_v15 }
 0xb8b   : > { %v2425_v16 = vpop.f32.mrb[48].mxu0  ;;  %v2375_v17 = vpop.f32.mrb[64].mxu1 }
 0xb8c   : > { %v2483_v18 = vmul.f32 0.35355338, %v2425_v16  ;;  %v6239_v19 = vpop.f32.mrb[49].mxu0  ;;  %v2482_v20 = vmul.f32 0.35355338, %v2375_v17  ;;  %v6233_v21 = vpop.f32.mrb[65].mxu1 }
 0xb8d   : > { %v2428_v22 = vpop.f32.mrb[50].mxu0  ;;  %v2378_v23 = vpop.f32.mrb[66].mxu1 }
 0xb8e   : > { %v6240_v24 = vpop.f32.mrb[51].mxu0  ;;  %v2487_v25 = vadd.f32 %v2483_v18, %v7246_v1  ;;  %v6234_v26 = vpop.f32.mrb[67].mxu1  ;;  %v2486_v29 = vadd.f32 %v2482_v20, %v7246_v1 }
 0xb90   : > { %v2495_v30 = vsel %vm942_vm3, %v2487_v25, -inf  ;;  %v2492_v32 = vsel %vm942_vm3, %v2486_v29, -inf }
 0xb91   : > { %2496 = vmax.xlane.f32.xlu0 %v2495_v30  ;;  %2493 = vmax.xlane.f32.xlu1 %v2492_v32 }
 0xb93   : > { %v2475_v36 = vpop.f32.mrb[68].mxu1 }
 0xb94   : > { %v2484_v40 = vmul.f32 0.35355338, %v2475_v36  ;;  %v6245_v42 = vpop.f32.mrb[69].mxu1 }
 0xb95   : > { %v2478_v45 = vpop.f32.mrb[70].mxu1 }
 0xb96   : > { %v6246_v47 = vpop.f32.mrb[71].mxu1  ;;  %v2488_v53 = vadd.f32 %v2484_v40, %v7246_v1  ;;  %v6666_v40 = vld [vmem:[%s8219_s7] sm:$0xff]  }
 0xb98   : > { %v2498_v55 = vsel %vm942_vm3, %v2488_v53, -inf }
 0xb99   : > { %2499 = vmax.xlane.f32.xlu0 %v2498_v55 }
 0xc16   : > { %v2491_v56 = vpop.xlane.xlu0 %2490 }
 0xc17   : > { %v2501_v60 = vsub.f32 %v2485_v13, %v2491_v56 }
 0xc19   : > { %v2505_v61 = vmul.f32 1.442695, %v2501_v60 }
 0xc1b   : > { %6742 = vpow2.f32 %v2505_v61 }
 0xc1e   : > { %v2497_v62 = vpop.xlane.xlu0 %2496  ;;  %v2494_v2 = vpop.xlane.xlu1 %2493 }
 0xc1f   : > { %v2503_v0 = vsub.f32 %v2487_v25, %v2497_v62  ;;  %v2502_v3 = vsub.f32 %v2486_v29, %v2494_v2 }
 0xc21   : > { %v2509_v4 = vmul.f32 1.442695, %v2503_v0  ;;  %v2507_v6 = vmul.f32 1.442695, %v2502_v3  ;;  %v6667_v0 = vld [vmem:[%s8219_s7 + $0x8] sm:$0xff]  }
 0xc23   : > { %6744 = vpow2.f32 %v2509_v4 }
 0xc24   : > { %6746 = vpow2.f32 %v2507_v6 }
 0xc25   : > { %v6743_v7 = vpop.eup %6742 }
 0xc26   : > { %v2513_v9 = vsel %vm942_vm3, %v6743_v7, 0.0  ;;  %v2500_v14 = vpop.xlane.xlu0 %2499 }
 0xc27   : > { %2514 = vadd.xlane.f32.xlu0 %v2513_v9 }
 0xc2d   : > { %v6745_v10 = vpop.eup %6744 }
 0xc2e   : > { %v6747_v11 = vpop.eup %6746  ;;  %v2519_v12 = vsel %vm942_vm3, %v6745_v10, 0.0 }
 0xc2f   : > { %v2516_v13 = vsel %vm942_vm3, %v6747_v11, 0.0  ;;  %2520 = vadd.xlane.f32.xlu0 %v2519_v12 }
 0xc30   : > { %2517 = vadd.xlane.f32.xlu1 %v2516_v13 }
 0xc41   : > { %2585 = vrot.lane.b32.xlu1 %v7208_v49, %s8254_s24  ;;  %v2504_v49 = vsub.f32 %v2488_v53, %v2500_v14 }
 0xc43   : > { %v2511_v15 = vmul.f32 1.442695, %v2504_v49 }
 0xc45   : > { %2633 = vrot.lane.b32.xlu1 %v7214_v50, %s8254_s24  ;;  %2537 = vrot.lane.b32.xlu0 %v7206_v46, %s8254_s24  ;;  %6748 = vpow2.f32 %v2511_v15 }
 0xc49   : > { %6593 = vrot.lane.b32.xlu0 %v6592_v35, %s8252_s23 }
 0xc4d   : > { %6603 = vrot.lane.b32.xlu0 %v6602_v59, %s8250_s28 }
 0xc4f   : > { %v6749_v50 = vpop.eup %6748 }
 0xc50   : > { %v2522_v16 = vsel %vm942_vm3, %v6749_v50, 0.0 }
 0xc69   : > { %2523 = vadd.xlane.f32.xlu1 %v2522_v16 }
 0xc7a   : > { %2681 = vrot.lane.b32.xlu1 %v7218_v52, %s8254_s24  ;;  %s8260_s24 = smov 24  }
 0xc7e   : > { %6598 = vrot.lane.b32.xlu1 %v6597_v57, %s8252_s23  ;;  %s8291_s23 = smov 120  }
 0xc82   : > { %6608 = vrot.lane.b32.xlu1 %v6607_v8, %s8250_s28  ;;  %s8290_s28 = smov 88  }
 0xcb4   : > { %v2515_v46 = vpop.xlane.xlu0 %2514 }
 0xcb5   : > { %6750 = vrcp.f32 %v2515_v46 }
 0xcbc   : > { %v2521_v27 = vpop.xlane.xlu0 %2520 }
 0xcbd   : > { %v2518_v34 = vpop.xlane.xlu1 %2517  ;;  %6752 = vrcp.f32 %v2521_v27 }
 0xcbe   : > { %6754 = vrcp.f32 %v2518_v34 }
 0xcbf   : > { %v6751_v35 = vpop.eup %6750 }
 0xcc0   : > { %v2538_v48 = vpop.permute.xlu0 %2537  ;;  %v2529_v58 = vmul.f32 %v6751_v35, %v6743_v7 }
 0xcc1   : > { %v2586_v52 = vpop.permute.xlu1 %2585  ;;  %v2543_v59 = vsel %vm1197_vm5, %v2538_v48, 0 }
 0xcc2   : > { %v2591_v43 = vsel %vm1197_vm5, %v2586_v52, 0  ;;  %6248 = vmatpush3.bf16.msra.mxu0 %v2543_v59  ;;  %v2533_v54 = vpack.c.bf16 %v2529_v58, %v2529_v58 }
 0xcc3   : > { %6254 = vmatpush3.bf16.msra.mxu1 %v2591_v43  ;;  %6259 = vmatprep.subr.bf16.mxu0 %v6929_v37 }
 0xcc4   : > { %6265 = vmatprep.subr.bf16.mxu1 %v6929_v37  ;;  %v6594_v9 = vpop.permute.xlu0 %6593 }
 0xcc5   : > { %v2634_v57 = vpop.permute.xlu1 %2633  ;;  %6250 = vmatmul.mubr.msk.bf16.vlgmr.msra.gmra.mrb[52].mxu0 %vm942_vm3, %v2533_v54  ;;  %v6595_v12 = vunpack.i.l.bf16 %v6594_v9 }
 0xcc6   : > { %v2639_v63 = vsel %vm1197_vm5, %v2634_v57, 0  ;;  %6261 = vmatprep.mubr.msk.bf16.mxu0 %vm6930_vm2, %v6929_v37 }
 0xcc7   : > { %v6753_v5 = vpop.eup %6752  ;;  %6260 = vmatpush3.bf16.msra.mxu0 %v2639_v63 }
 0xcc8   : > { %v6755_v8 = vpop.eup %6754  ;;  %v2531_v17 = vmul.f32 %v6753_v5, %v6745_v10  ;;  %6271 = vmatprep.subr.bf16.mxu0 %v6666_v40  ;;  %v6604_v10 = vpop.permute.xlu0 %6603 }
 0xcc9   : > { %v2530_v18 = vmul.f32 %v6755_v8, %v6747_v11  ;;  %v6596_v11 = vunpack.i.h.bf16 %v6594_v9  ;;  %v6606_v13 = vunpack.i.h.bf16 %v6604_v10  ;;  %v6605_v14 = vunpack.i.l.bf16 %v6604_v10 }
 0xcca   : > { %v2535_v19 = vpack.c.bf16 %v2531_v17, %v2531_v17 }
 0xccb   : > { %v2534_v20 = vpack.c.bf16 %v2530_v18, %v2530_v18  ;;  %v2778_v15 = vsel %vm942_vm3, %v7326_v39, %v6596_v11 }
 0xccc   : > { %v2783_v34 = vsel %vm2781_vm6, %v2778_v15, %v6606_v13  ;;  %v6668_v15 = vld [vmem:[%s8223_s11] sm:$0xff]  }
 0xccd   : > { %6256 = vmatmul.mubr.msk.bf16.vlgmr.msra.gmra.mrb[72].mxu1 %vm942_vm3, %v2534_v20  ;;  %6262 = vmatmul.mubr.msk.bf16.vlgmr.msra.gmra.mrb[56].mxu0 %vm942_vm3, %v2535_v19 }
 0xcce   : > { %6267 = vmatprep.mubr.msk.bf16.mxu1 %vm6930_vm2, %v6929_v37  ;;  %6272 = vmatpush3.bf16.msra.mxu0 %v6666_v40 }
 0xccf   : > { %6273 = vmatprep.subr.bf16.mxu0 %v6667_v0 }
 0xcd2   : > { %6274 = vmatpush3.bf16.msra.mxu0 %v6667_v0 }
 0xcf6   : > { %v2524_v21 = vpop.xlane.xlu1 %2523 }
 0xcf7   : > { %6756 = vrcp.f32 %v2524_v21 }
 0xcfa   : > { %v2682_v22 = vpop.permute.xlu1 %2681 }
 0xcfb   : > { %v2687_v23 = vsel %vm1197_vm5, %v2682_v22, 0 }
 0xcfc   : > { %6266 = vmatpush3.bf16.msra.mxu1 %v2687_v23 }
 0xcfd   : > { %6279 = vmatprep.subr.bf16.mxu1 %v6668_v15 }
 0xcfe   : > { %v6599_v52 = vpop.permute.xlu1 %6598 }
 0xcff   : > { %v6601_v43 = vunpack.i.h.bf16 %v6599_v52  ;;  %v6600_v39 = vunpack.i.l.bf16 %v6599_v52 }
 0xd01   : > { %v6757_v24 = vpop.eup %6756  ;;  %v2780_v63 = vsel %vm942_vm3, %v7330_v51, %v6601_v43  ;;  %v2779_v5 = vsel %vm942_vm3, %v7328_v44, %v6600_v39  ;;  %v5792_v51 = vld [vmem:[%s8220_s8] ss:$0 sm:$0xff] }
 0xd02   : > { %v2532_v25 = vmul.f32 %v6757_v24, %v6749_v50  ;;  %v2777_v50 = vsel %vm942_vm3, %v7324_v33, %v6595_v12  ;;  %v6609_v59 = vpop.permute.xlu1 %6608 }
 0xd03   : > { %v2782_v27 = vsel %vm2781_vm6, %v2777_v50, %v6605_v14  ;;  %v6611_v54 = vunpack.i.h.bf16 %v6609_v59  ;;  %v6610_v57 = vunpack.i.l.bf16 %v6609_v59  ;;  %v6669_v50 = vld [vmem:[%s8223_s11 + $0x8] sm:$0xff]  }
 0xd04   : > { %v2536_v26 = vpack.c.bf16 %v2532_v25, %v2532_v25 }
 0xd05   : > { %v2784_v18 = vsel %vm2781_vm6, %v2779_v5, %v6610_v57  ;;  %v2785_v19 = vsel %vm2781_vm6, %v2780_v63, %v6611_v54 }
 0xd06   : > { %6268 = vmatmul.mubr.msk.bf16.vlgmr.msra.gmra.mrb[76].mxu1 %vm942_vm3, %v2536_v26 }
 0xd07   : > { %6280 = vmatpush3.bf16.msra.mxu1 %v6668_v15 }
 0xd08   : > { %6281 = vmatprep.subr.bf16.mxu1 %v6669_v50 }
 0xd0b   : > { %6282 = vmatpush3.bf16.msra.mxu1 %v6669_v50 }
 0xd98   : > { %v2579_v29 = vpop.f32.mrb[52].mxu0 }
 0xd99   : > { %v6251_v30 = vpop.f32.mrb[53].mxu0 }
 0xd9a   : > { %v2582_v32 = vpop.f32.mrb[54].mxu0 }
 0xd9b   : > { %v6252_v36 = vpop.f32.mrb[55].mxu0 }
 0xda0   : > { %v2627_v42 = vpop.f32.mrb[72].mxu1  ;;  %v2675_v45 = vpop.f32.mrb[56].mxu0 }
 0xda1   : > { %v6612_v47 = vpack.i.bf16 %v2627_v42, %v2579_v29  ;;  %v6257_v53 = vpop.f32.mrb[73].mxu1  ;;  %v6263_v55 = vpop.f32.mrb[57].mxu0 }
 0xda2   : > { %v2630_v56 = vpop.f32.mrb[74].mxu1  ;;  %v2678_v60 = vpop.f32.mrb[58].mxu0 }
 0xda3   : > { %6613 = vrot.lane.b32.xlu0 %v6612_v47, %s8260_s24  ;;  %v6258_v61 = vpop.f32.mrb[75].mxu1  ;;  %v6264_v62 = vpop.f32.mrb[59].mxu0 }
 0xdd9   : > { %v2723_v2 = vpop.f32.mrb[76].mxu1 }
 0xdda   : > { %v6617_v3 = vpack.i.bf16 %v2723_v2, %v2675_v45  ;;  %v6269_v4 = vpop.f32.mrb[77].mxu1 }
 0xddb   : > { %v2726_v6 = vpop.f32.mrb[78].mxu1 }
 0xddc   : > { %6618 = vrot.lane.b32.xlu1 %v6617_v3, %s8260_s24  ;;  %v6270_v7 = vpop.f32.mrb[79].mxu1  ;;  %s8295_s24 = smov 48  }
 0xe15   : > { %v6614_v49 = vpop.permute.xlu0 %6613 }
 0xe16   : > { %v6616_v16 = vunpack.i.h.bf16 %v6614_v49  ;;  %v6615_v46 = vunpack.i.l.bf16 %v6614_v49 }
 0xe18   : > { %v2788_v35 = vsel %vm2786_vm7, %v2783_v34, %v6616_v16  ;;  %v2787_v48 = vsel %vm2786_vm7, %v2782_v27, %v6615_v46 }
 0xe19   : > { %v2795_v58 = vpack.c.bf16 %v2788_v35, %v2787_v48 }
 0xe1b   : > { %6275 = vmatprep.mubr.msk.bf16.mxu0 %vm781_vm1, %v2795_v58 }
 0xe4e   : > { %v6619_v33 = vpop.permute.xlu1 %6618 }
 0xe4f   : > { %v6621_v8 = vunpack.i.h.bf16 %v6619_v33  ;;  %v6620_v17 = vunpack.i.l.bf16 %v6619_v33  ;;  %v5793_v33 = vld [vmem:[%s8221_s9] ss:$0 sm:$0xff] }
 0xe51   : > { %v2790_v20 = vsel %vm2786_vm7, %v2785_v19, %v6621_v8  ;;  %v2789_v21 = vsel %vm2786_vm7, %v2784_v18, %v6620_v17  ;;  %v5794_v19 = vld [vmem:[%s8222_s10] ss:$0 sm:$0xff] }
 0xe52   : > { %v2796_v22 = vpack.c.bf16 %v2790_v20, %v2789_v21 }
 0xe54   : > { %6276 = vmatmul.mubr.msk.bf16.vlgmr.msra.gmra.mrb[60].mxu0 %vm781_vm1, %v2796_v22 }
 0xf27   : > { %v6277_v23 = vpop.f32.mrb[60].mxu0 }
 0xf28   : > { %v2849_v24 = vpop.f32.mrb[61].mxu0  ;;  %v2866_v44 = vadd.f32 %v6277_v23, %v7167_v38 }
 0xf29   : > { %v2864_v25 = vadd.f32 %v2849_v24, %v7153_v28  ;;  %v6278_v26 = vpop.f32.mrb[62].mxu0 }
 0xf2a   : > { %v2852_v29 = vpop.f32.mrb[63].mxu0  ;;  %v7592_v36 = vadd.f32 %v5792_v51, %v2866_v44  ;;  %v2867_v40 = vadd.f32 %v6278_v26, %v7169_v41 }
 0xf2b   : > { %v7589_v30 = vadd.f32 %v5792_v51, %v2864_v25  ;;  %v2865_v32 = vadd.f32 %v2852_v29, %v7155_v31 }
 0xf2c   : > { %v7601_v28 = vadd.f32 %v5792_v51, %v2867_v40  ;;  %v2887_v47 = vsel %vm781_vm1, %v7592_v36, 0.0 }
 0xf2d   : > { %v7595_v42 = vadd.f32 %v5792_v51, %v2865_v32  ;;  %v2881_v45 = vsel %vm781_vm1, %v7589_v30, 0.0 }
 0xf2e   : > { %2882 = vadd.xlane.f32.xlu0 %v2881_v45  ;;  %v2890_v31 = vsel %vm781_vm1, %v7601_v28, 0.0  ;;  %v6670_v45 = vld [vmem:[%s8225_s13] sm:$0xff]  }
 0xf2f   : > { %v2884_v38 = vsel %vm781_vm1, %v7595_v42, 0.0  ;;  %6287 = vmatprep.subr.bf16.mxu0 %v6670_v45 }
 0xf30   : > { %2885 = vadd.xlane.f32.xlu1 %v2884_v38  ;;  %6288 = vmatpush3.bf16.msra.mxu0 %v6670_v45  ;;  %v6671_v38 = vld [vmem:[%s8225_s13 + $0x8] sm:$0xff]  }
 0xf31   : > { %6289 = vmatprep.subr.bf16.mxu0 %v6671_v38 }
 0xf32   : > { %2888 = vadd.xlane.f32.xlu0 %v2887_v47  ;;  %v6672_v47 = vld [vmem:[%s8225_s13 + $0x10] sm:$0xff]  }
 0xf34   : > { %6290 = vmatpush3.bf16.msra.mxu0 %v6671_v38 }
 0xf35   : > { %6291 = vmatprep.subr.bf16.mxu0 %v6672_v47 }
 0xf36   : > { %2891 = vadd.xlane.f32.xlu0 %v2890_v31  ;;  %v6673_v31 = vld [vmem:[%s8225_s13 + $0x18] sm:$0xff]  }
 0xf38   : > { %6292 = vmatpush3.bf16.msra.mxu0 %v6672_v47 }
 0xf39   : > { %6293 = vmatprep.subr.bf16.mxu0 %v6673_v31 }
 0xf3c   : > { %6294 = vmatpush3.bf16.msra.mxu0 %v6673_v31 }
 0xf3d   : > { %6313 = vmatprep.subr.bf16.mxu0 %v6929_v37 }
 0xfbb   : > { %v2883_v41 = vpop.xlane.xlu0 %2882 }
 0xfbc   : > { %v2893_v53 = vmul.f32 0.03125, %v2883_v41  ;;  %v5795_v41 = vld [vmem:[%s8224_s12] ss:$0 sm:$0xff] }
 0xfbd   : > { %v2886_v55 = vpop.xlane.xlu1 %2885 }
 0xfbe   : > { %v2897_v56 = vsub.f32 %v7589_v30, %v2893_v53  ;;  %v2894_v60 = vmul.f32 0.03125, %v2886_v55 }
 0xfbf   : > { %v2889_v61 = vpop.xlane.xlu0 %2888 }
 0xfc0   : > { %v2898_v62 = vsub.f32 %v7595_v42, %v2894_v60  ;;  %v2895_v0 = vmul.f32 0.03125, %v2889_v61  ;;  %v2901_v2 = vmul.f32 %v2897_v56, %v2897_v56 }
 0xfc2   : > { %v2899_v3 = vsub.f32 %v7592_v36, %v2895_v0  ;;  %v2905_v4 = vsel %vm781_vm1, %v2901_v2, 0.0  ;;  %v2902_v6 = vmul.f32 %v2898_v62, %v2898_v62 }
 0xfc3   : > { %2906 = vadd.xlane.f32.xlu0 %v2905_v4  ;;  %v2892_v7 = vpop.xlane.xlu0 %2891 }
 0xfc4   : > { %v2896_v9 = vmul.f32 0.03125, %v2892_v7  ;;  %v2908_v10 = vsel %vm781_vm1, %v2902_v6, 0.0  ;;  %v2903_v11 = vmul.f32 %v2899_v3, %v2899_v3 }
 0xfc5   : > { %2909 = vadd.xlane.f32.xlu1 %v2908_v10 }
 0xfc6   : > { %v2900_v12 = vsub.f32 %v7601_v28, %v2896_v9  ;;  %v2911_v13 = vsel %vm781_vm1, %v2903_v11, 0.0 }
 0xfc7   : > { %2912 = vadd.xlane.f32.xlu0 %v2911_v13 }
 0xfc8   : > { %v2904_v14 = vmul.f32 %v2900_v12, %v2900_v12 }
 0xfca   : > { %v2914_v49 = vsel %vm781_vm1, %v2904_v14, 0.0 }
 0xfcb   : > { %2915 = vadd.xlane.f32.xlu1 %v2914_v49 }
0x1050   : > { %v2907_v16 = vpop.xlane.xlu0 %2906 }
0x1051   : > { %v2917_v46 = vmul.f32 0.03125, %v2907_v16 }
0x1052   : > { %v2910_v27 = vpop.xlane.xlu1 %2909 }
0x1053   : > { %v2921_v34 = vadd.f32 1e-12, %v2917_v46  ;;  %v2918_v35 = vmul.f32 0.03125, %v2910_v27 }
0x1054   : > { %v2913_v48 = vpop.xlane.xlu0 %2912 }
0x1055   : > { %6758 = vrsqrt.f32 %v2921_v34  ;;  %v2922_v58 = vadd.f32 1e-12, %v2918_v35  ;;  %v2919_v52 = vmul.f32 0.03125, %v2913_v48 }
0x1057   : > { %6760 = vrsqrt.f32 %v2922_v58  ;;  %v2923_v59 = vadd.f32 1e-12, %v2919_v52 }
0x1058   : > { %v2916_v43 = vpop.xlane.xlu1 %2915 }
0x1059   : > { %6762 = vrsqrt.f32 %v2923_v59  ;;  %v2920_v39 = vmul.f32 0.03125, %v2916_v43 }
0x105b   : > { %v2924_v54 = vadd.f32 1e-12, %v2920_v39  ;;  %v5806_v39 = vld [vmem:[%s8226_s14] ss:$0 sm:$0xff] }
0x105d   : > { %6764 = vrsqrt.f32 %v2924_v54 }
0x105f   : > { %v6759_v57 = vpop.eup %6758 }
0x1060   : > { %v2929_v63 = vmul.f32 %v6759_v57, %v2897_v56 }
0x1061   : > { %v6761_v5 = vpop.eup %6760 }
0x1062   : > { %v2930_v8 = vmul.f32 %v6761_v5, %v2898_v62  ;;  %v2939_v17 = vmul.f32 %v5793_v33, %v2929_v63 }
0x1063   : > { %v6763_v18 = vpop.eup %6762 }
0x1064   : > { %v2931_v20 = vmul.f32 %v6763_v18, %v2899_v3  ;;  %v2940_v21 = vmul.f32 %v5793_v33, %v2930_v8  ;;  %v2949_v22 = vadd.f32 %v5794_v19, %v2939_v17 }
0x1066   : > { %v2950_v23 = vadd.f32 %v5794_v19, %v2940_v21  ;;  %v2941_v25 = vmul.f32 %v5793_v33, %v2931_v20 }
0x1067   : > { %v6765_v51 = vpop.eup %6764 }
0x1068   : > { %v2932_v24 = vmul.f32 %v6765_v51, %v2900_v12  ;;  %v2957_v44 = vpack.c.bf16 %v2950_v23, %v2949_v22  ;;  %v2951_v29 = vadd.f32 %v5794_v19, %v2941_v25 }
0x106a   : > { %6283 = vmatprep.mubr.msk.bf16.mxu1 %vm781_vm1, %v2957_v44  ;;  %v2942_v26 = vmul.f32 %v5793_v33, %v2932_v24 }
0x106c   : > { %v2952_v32 = vadd.f32 %v5794_v19, %v2942_v26 }
0x106e   : > { %v2958_v40 = vpack.c.bf16 %v2952_v32, %v2951_v29 }
0x1070   : > { %6284 = vmatmul.mubr.msk.bf16.vlgmr.msra.gmra.mrb[80].mxu1 %vm781_vm1, %v2958_v40 }
0x1143   : > { %v6285_v53 = vpop.f32.mrb[80].mxu1 }
0x1144   : > { %v3027_v55 = vadd.f32 %v6285_v53, %v5795_v41  ;;  %v3018_v56 = vpop.f32.mrb[81].mxu1 }
0x1145   : > { %v3019_v60 = vadd.f32 %v5795_v41, %v3018_v56  ;;  %v6286_v61 = vpop.f32.mrb[82].mxu1 }
0x1146   : > { %v3039_v62 = vmul.f32 0.70710677, %v3027_v55  ;;  %v3030_v0 = vadd.f32 %v6286_v61, %v5795_v41  ;;  %v3021_v2 = vpop.f32.mrb[83].mxu1  ;;  %v3035_v49 = vmul.f32 0.5, %v3027_v55 }
0x1147   : > { %v3037_v3 = vmul.f32 0.70710677, %v3019_v60  ;;  %v3022_v4 = vadd.f32 %v5795_v41, %v3021_v2  ;;  %v3033_v16 = vmul.f32 0.5, %v3019_v60 }
0x1148   : > { %6766 = verf.f32 %v3039_v62  ;;  %v3040_v6 = vmul.f32 0.70710677, %v3030_v0  ;;  %v3036_v15 = vmul.f32 0.5, %v3030_v0  ;;  %v6674_v62 = vld [vmem:[%s8285_s5 + $0x10] sm:$0xff]   ;;  %v6675_v0 = vld [vmem:[%s8285_s5 + $0x18] sm:$0xff]  }
0x1149   : > { %6768 = verf.f32 %v3037_v3  ;;  %v3038_v7 = vmul.f32 0.70710677, %v3022_v4  ;;  %v3034_v46 = vmul.f32 0.5, %v3022_v4  ;;  %6299 = vmatprep.subr.bf16.mxu1 %v6674_v62 }
0x114a   : > { %6770 = verf.f32 %v3040_v6  ;;  %6300 = vmatpush3.bf16.msra.mxu1 %v6674_v62 }
0x114b   : > { %6772 = verf.f32 %v3038_v7  ;;  %6301 = vmatprep.subr.bf16.mxu1 %v6675_v0 }
0x114e   : > { %6302 = vmatpush3.bf16.msra.mxu1 %v6675_v0 }
0x114f   : > { %6307 = vmatprep.subr.bf16.mxu1 %v6929_v37 }
0x1152   : > { %v6767_v9 = vpop.eup %6766 }
0x1153   : > { %v6769_v10 = vpop.eup %6768  ;;  %v3047_v11 = vadd.f32 1.0, %v6767_v9 }
0x1154   : > { %v6771_v12 = vpop.eup %6770  ;;  %v3045_v13 = vadd.f32 1.0, %v6769_v10 }
0x1155   : > { %v6773_v14 = vpop.eup %6772  ;;  %v3048_v50 = vadd.f32 1.0, %v6771_v12  ;;  %v3051_v34 = vmul.f32 %v3047_v11, %v3035_v49 }
0x1156   : > { %v3046_v27 = vadd.f32 1.0, %v6773_v14  ;;  %v3049_v48 = vmul.f32 %v3045_v13, %v3033_v16 }
0x1157   : > { %v3052_v35 = vmul.f32 %v3048_v50, %v3036_v15  ;;  %v5809_v50 = vld [vmem:[%s8286_s22 + $0x1] ss:$0 sm:$0xff] }
0x1158   : > { %v3050_v58 = vmul.f32 %v3046_v27, %v3034_v46 }
0x1159   : > { %v3062_v52 = vpack.c.bf16 %v3052_v35, %v3051_v34 }
0x115a   : > { %v3061_v59 = vpack.c.bf16 %v3050_v58, %v3049_v48  ;;  %v5810_v48 = vld [vmem:[%s8287_s4 + $0x1] ss:$0 sm:$0xff]  ;;  %s5900_s4 = sshll.u32 %s7068_s1, 6 }
0x115b   : > { %s8170_s5 = scalar_lea.hbm %s8231_s19, %s5900_s4 }
0x115c   : > { %6295 = vmatprep.mubr.msk.bf16.mxu0 %vm723_vm0, %v3061_v59 }
0x115d   : > { %6296 = vmatmul.mubr.msk.bf16.vlgmr.msra.gmra.mrb[64].mxu0 %vm723_vm0, %v3062_v52 }
0x115e   : > { %6315 = vmatprep.mubr.msk.bf16.mxu0 %vm6930_vm2, %v6929_v37 }
0x1230   : > { %v6297_v43 = vpop.f32.mrb[64].mxu0 }
0x1231   : > { %v3127_v54 = vpop.f32.mrb[65].mxu0  ;;  %v3144_v57 = vadd.f32 %v6297_v43, %v7592_v36 }
0x1232   : > { %v3142_v33 = vadd.f32 %v3127_v54, %v7589_v30  ;;  %v6298_v63 = vpop.f32.mrb[66].mxu0 }
0x1233   : > { %v3130_v5 = vpop.f32.mrb[67].mxu0  ;;  %v3145_v17 = vadd.f32 %v6298_v63, %v7601_v28  ;;  %v7658_v19 = vadd.f32 %v5806_v39, %v3144_v57 }
0x1234   : > { %v7654_v8 = vadd.f32 %v5806_v39, %v3142_v33  ;;  %v3143_v18 = vadd.f32 %v3130_v5, %v7595_v42 }
0x1235   : > { %v7664_v22 = vadd.f32 %v5806_v39, %v3145_v17  ;;  %v3167_v36 = vsel %vm781_vm1, %v7658_v19, 0.0 }
0x1236   : > { %v7660_v20 = vadd.f32 %v5806_v39, %v3143_v18  ;;  %v3161_v21 = vsel %vm781_vm1, %v7654_v8, 0.0 }
0x1237   : > { %3162 = vadd.xlane.f32.xlu0 %v3161_v21  ;;  %v3170_v42 = vsel %vm781_vm1, %v7664_v22, 0.0  ;;  %v5816_v21 = vld [vmem:[%s8218_s6 + $0x1] ss:$0 sm:$0xff] }
0x1238   : > { %v3164_v30 = vsel %vm781_vm1, %v7660_v20, 0.0 }
0x1239   : > { %3165 = vadd.xlane.f32.xlu1 %v3164_v30 }
0x123b   : > { %3168 = vadd.xlane.f32.xlu0 %v3167_v36 }
0x123d   : > { %3171 = vadd.xlane.f32.xlu1 %v3170_v42 }
0x12c4   : > { %v3163_v28 = vpop.xlane.xlu0 %3162 }
0x12c5   : > { %v3173_v23 = vmul.f32 0.03125, %v3163_v28 }
0x12c6   : > { %v3166_v51 = vpop.xlane.xlu1 %3165 }
0x12c7   : > { %v3177_v24 = vsub.f32 %v7654_v8, %v3173_v23  ;;  %v3174_v44 = vmul.f32 0.03125, %v3166_v51 }
0x12c8   : > { %v3169_v25 = vpop.xlane.xlu0 %3168 }
0x12c9   : > { %v3178_v26 = vsub.f32 %v7660_v20, %v3174_v44  ;;  %v3175_v29 = vmul.f32 0.03125, %v3169_v25  ;;  %v3181_v32 = vmul.f32 %v3177_v24, %v3177_v24 }
0x12ca   : > { %v3172_v40 = vpop.xlane.xlu1 %3171 }
0x12cb   : > { %v3179_v45 = vsub.f32 %v7658_v19, %v3175_v29  ;;  %v3176_v38 = vmul.f32 0.03125, %v3172_v40  ;;  %v3185_v47 = vsel %vm781_vm1, %v3181_v32, 0.0  ;;  %v3182_v31 = vmul.f32 %v3178_v26, %v3178_v26 }
0x12cc   : > { %3186 = vadd.xlane.f32.xlu0 %v3185_v47 }
0x12cd   : > { %v3180_v41 = vsub.f32 %v7664_v22, %v3176_v38  ;;  %v3188_v53 = vsel %vm781_vm1, %v3182_v31, 0.0  ;;  %v3183_v55 = vmul.f32 %v3179_v45, %v3179_v45 }
0x12ce   : > { %3189 = vadd.xlane.f32.xlu1 %v3188_v53 }
0x12cf   : > { %v3191_v56 = vsel %vm781_vm1, %v3183_v55, 0.0  ;;  %v3184_v60 = vmul.f32 %v3180_v41, %v3180_v41 }
0x12d0   : > { %3192 = vadd.xlane.f32.xlu0 %v3191_v56 }
0x12d1   : > { %v3194_v61 = vsel %vm781_vm1, %v3184_v60, 0.0 }
0x12d2   : > { %3195 = vadd.xlane.f32.xlu1 %v3194_v61 }
0x1359   : > { %v3187_v2 = vpop.xlane.xlu0 %3186 }
0x135a   : > { %v3197_v3 = vmul.f32 0.03125, %v3187_v2 }
0x135b   : > { %v3190_v4 = vpop.xlane.xlu1 %3189 }
0x135c   : > { %v3201_v6 = vadd.f32 1e-12, %v3197_v3  ;;  %v3198_v7 = vmul.f32 0.03125, %v3190_v4 }
0x135d   : > { %v3193_v9 = vpop.xlane.xlu0 %3192 }
0x135e   : > { %6774 = vrsqrt.f32 %v3201_v6  ;;  %v3202_v10 = vadd.f32 1e-12, %v3198_v7  ;;  %v3199_v11 = vmul.f32 0.03125, %v3193_v9 }
0x135f   : > { %v3196_v12 = vpop.xlane.xlu1 %3195 }
0x1360   : > { %6776 = vrsqrt.f32 %v3202_v10  ;;  %v3203_v13 = vadd.f32 1e-12, %v3199_v11  ;;  %v3200_v14 = vmul.f32 0.03125, %v3196_v12 }
0x1362   : > { %6778 = vrsqrt.f32 %v3203_v13  ;;  %v3204_v49 = vadd.f32 1e-12, %v3200_v14 }
0x1364   : > { %6780 = vrsqrt.f32 %v3204_v49 }
0x1368   : > { %v6775_v15 = vpop.eup %6774 }
0x1369   : > { %v3209_v16 = vmul.f32 %v6775_v15, %v3177_v24 }
0x136a   : > { %v6777_v46 = vpop.eup %6776 }
0x136b   : > { %v3210_v27 = vmul.f32 %v6777_v46, %v3178_v26  ;;  %v3219_v34 = vmul.f32 %v5809_v50, %v3209_v16 }
0x136c   : > { %v6779_v35 = vpop.eup %6778 }
0x136d   : > { %v3211_v58 = vmul.f32 %v6779_v35, %v3179_v45  ;;  %v3220_v52 = vmul.f32 %v5809_v50, %v3210_v27  ;;  %v3229_v54 = vadd.f32 %v5810_v48, %v3219_v34 }
0x136e   : > { %v6781_v59 = vpop.eup %6780 }
0x136f   : > { %v3221_v43 = vmul.f32 %v5809_v50, %v3211_v58  ;;  %v3212_v39 = vmul.f32 %v6781_v59, %v3180_v41  ;;  %v3230_v57 = vadd.f32 %v5810_v48, %v3220_v52 }
0x1371   : > { %v3222_v33 = vmul.f32 %v5809_v50, %v3212_v39  ;;  %v3238_v63 = vpack.c.bf16 %v3230_v57, %v3229_v54  ;;  %v3231_v5 = vadd.f32 %v5810_v48, %v3221_v43 }
0x1373   : > { %6303 = vmatprep.mubr.msk.bf16.mxu1 %vm781_vm1, %v3238_v63  ;;  %v3232_v17 = vadd.f32 %v5810_v48, %v3222_v33 }
0x1375   : > { %v3239_v18 = vpack.c.bf16 %v3232_v17, %v3231_v5 }
0x1377   : > { %6304 = vmatmul.mubr.msk.bf16.vlgmr.msra.gmra.mrb[84].mxu1 %vm781_vm1, %v3239_v18 }
0x1378   : > { %6309 = vmatprep.mubr.msk.bf16.mxu1 %vm6930_vm2, %v6929_v37 }
0x144a   : > { %v6305_v30 = vpop.f32.mrb[84].mxu1 }
0x144b   : > { %v3300_v36 = vpop.f32.mrb[85].mxu1  ;;  %v3309_v44 = vadd.f32 %v6305_v30, %v5816_v21 }
0x144c   : > { %v3301_v42 = vadd.f32 %v5816_v21, %v3300_v36  ;;  %v6306_v28 = vpop.f32.mrb[86].mxu1 }
0x144d   : > { %v3303_v23 = vpop.f32.mrb[87].mxu1  ;;  %v7708_v26 = vpack.c.bf16 %v3309_v44, %v3309_v44  ;;  %v3312_v29 = vadd.f32 %v6306_v28, %v5816_v21 }
0x144e   : > { %v7700_v51 = vpack.c.bf16 %v3301_v42, %v3301_v42  ;;  %v3304_v24 = vadd.f32 %v5816_v21, %v3303_v23 }
0x144f   : > { %v7712_v32 = vpack.c.bf16 %v3312_v29, %v3312_v29 }
0x1450   : > { %v7702_v25 = vpack.c.bf16 %v3304_v24, %v3304_v24  ;;  %3320 = vrot.lane.b32.xlu0 %v7700_v51, %s8288_s0 }
0x1452   : > { %3369 = vrot.lane.b32.xlu1 %v7702_v25, %s8288_s0 }
0x1456   : > { %3418 = vrot.lane.b32.xlu1 %v7708_v26, %s8288_s0 }
0x145a   : > { %3467 = vrot.lane.b32.xlu1 %v7712_v32, %s8288_s0  ;;  %s8296_s0 = smov 72  }
0x14c2   : > { %v3321_v40 = vpop.permute.xlu0 %3320 }
0x14c3   : > { %v3326_v45 = vsel %vm942_vm3, %v3321_v40, 0 }
0x14c4   : > { %v3370_v38 = vpop.permute.xlu1 %3369  ;;  %6308 = vmatpush3.bf16.xpose.msra.mxu1 %v3326_v45 }
0x14c5   : > { %v3375_v47 = vsel %vm942_vm3, %v3370_v38, 0  ;;  %6319 = vmatprep.subr.bf16.mxu1 %v6929_v37 }
0x14c6   : > { %6314 = vmatpush3.bf16.xpose.msra.mxu0 %v3375_v47 }
0x14c7   : > { %6325 = vmatprep.subr.bf16.mxu0 %v6929_v37 }
0x14c8   : > { %v3419_v31 = vpop.permute.xlu1 %3418 }
0x14c9   : > { %v3424_v41 = vsel %vm942_vm3, %v3419_v31, 0 }
0x14cb   : > { %6310 = vmatmul.mubr.msk.bf16.vlgmr.msra.gmra.mrb[88].mxu1 %vm942_vm3, %v7700_v51 }
0x14cc   : > { %v3468_v53 = vpop.permute.xlu1 %3467  ;;  %6320 = vmatpush3.bf16.xpose.msra.mxu1 %v3424_v41  ;;  %6321 = vmatprep.mubr.msk.bf16.mxu1 %vm6930_vm2, %v6929_v37 }
0x14cd   : > { %v3473_v55 = vsel %vm942_vm3, %v3468_v53, 0  ;;  %6316 = vmatmul.mubr.msk.bf16.vlgmr.msra.gmra.mrb[68].mxu0 %vm942_vm3, %v7702_v25  ;;  %6331 = vmatprep.subr.bf16.mxu1 %v6929_v37 }
0x14ce   : > { %6326 = vmatpush3.bf16.xpose.msra.mxu0 %v3473_v55  ;;  %6327 = vmatprep.mubr.msk.bf16.mxu0 %vm6930_vm2, %v6929_v37 }
0x14cf   : > { %6337 = vmatprep.subr.bf16.mxu0 %v6929_v37 }
0x14d3   : > { %6322 = vmatmul.mubr.msk.bf16.vlgmr.msra.gmra.mrb[92].mxu1 %vm942_vm3, %v7708_v26 }
0x14d4   : > { %6333 = vmatprep.mubr.msk.bf16.mxu1 %vm6930_vm2, %v6929_v37 }
0x14d5   : > { %6328 = vmatmul.mubr.msk.bf16.vlgmr.msra.gmra.mrb[72].mxu0 %vm942_vm3, %v7712_v32 }
0x14d6   : > { %6339 = vmatprep.mubr.msk.bf16.mxu0 %vm6930_vm2, %v6929_v37 }
0x159e   : > { %v3362_v56 = vpop.f32.mrb[88].mxu1 }
0x159f   : > { %v3515_v60 = vmul.f32 0.35355338, %v3362_v56  ;;  %v6311_v61 = vpop.f32.mrb[89].mxu1 }
0x15a0   : > { %v3365_v62 = vpop.f32.mrb[90].mxu1  ;;  %v3411_v0 = vpop.f32.mrb[68].mxu0 }
0x15a1   : > { %v3519_v2 = vadd.f32 %v3515_v60, %v7246_v1  ;;  %v3516_v3 = vmul.f32 0.35355338, %v3411_v0  ;;  %v6312_v4 = vpop.f32.mrb[91].mxu1  ;;  %v6317_v6 = vpop.f32.mrb[69].mxu0 }
0x15a2   : > { %v3414_v7 = vpop.f32.mrb[70].mxu0 }
0x15a3   : > { %v3520_v9 = vadd.f32 %v3516_v3, %v7246_v1  ;;  %v6318_v10 = vpop.f32.mrb[71].mxu0  ;;  %v3523_v11 = vsel %vm942_vm3, %v3519_v2, -inf }
0x15a4   : > { %3524 = vmax.xlane.f32.xlu0 %v3523_v11 }
0x15a5   : > { %v3526_v12 = vsel %vm942_vm3, %v3520_v9, -inf }
0x15a6   : > { %3527 = vmax.xlane.f32.xlu1 %v3526_v12  ;;  %v3460_v13 = vpop.f32.mrb[92].mxu1 }
0x15a7   : > { %v3517_v14 = vmul.f32 0.35355338, %v3460_v13  ;;  %v6323_v49 = vpop.f32.mrb[93].mxu1 }
0x15a8   : > { %v3463_v15 = vpop.f32.mrb[94].mxu1  ;;  %v3509_v50 = vpop.f32.mrb[72].mxu0 }
0x15a9   : > { %v3521_v16 = vadd.f32 %v3517_v14, %v7246_v1  ;;  %v3518_v46 = vmul.f32 0.35355338, %v3509_v50  ;;  %v6324_v27 = vpop.f32.mrb[95].mxu1  ;;  %v6329_v34 = vpop.f32.mrb[73].mxu0 }
0x15aa   : > { %v3512_v35 = vpop.f32.mrb[74].mxu0 }
0x15ab   : > { %v3522_v48 = vadd.f32 %v3518_v46, %v7246_v1  ;;  %v6330_v58 = vpop.f32.mrb[75].mxu0  ;;  %v3529_v52 = vsel %vm942_vm3, %v3521_v16, -inf }
0x15ac   : > { %3530 = vmax.xlane.f32.xlu0 %v3529_v52 }
0x15ad   : > { %v3532_v59 = vsel %vm942_vm3, %v3522_v48, -inf }
0x15b0   : > { %3533 = vmax.xlane.f32.xlu0 %v3532_v59 }
0x15b7   : > { %3619 = vrot.lane.b32.xlu1 %v7702_v25, %s8289_s27 }
0x15bb   : > { %3667 = vrot.lane.b32.xlu1 %v7708_v26, %s8289_s27 }
0x15bf   : > { %3715 = vrot.lane.b32.xlu1 %v7712_v32, %s8289_s27 }
0x1631   : > { %v3525_v43 = vpop.xlane.xlu0 %3524 }
0x1632   : > { %v3535_v39 = vsub.f32 %v3519_v2, %v3525_v43 }
0x1633   : > { %v3528_v54 = vpop.xlane.xlu1 %3527 }
0x1634   : > { %v3539_v57 = vmul.f32 1.442695, %v3535_v39  ;;  %v3536_v33 = vsub.f32 %v3520_v9, %v3528_v54 }
0x1636   : > { %6782 = vpow2.f32 %v3539_v57  ;;  %v3541_v63 = vmul.f32 1.442695, %v3536_v33 }
0x1637   : > { %v3620_v5 = vpop.permute.xlu1 %3619 }
0x1638   : > { %6784 = vpow2.f32 %v3541_v63  ;;  %v3625_v17 = vsel %vm1197_vm5, %v3620_v5, 0 }
0x1639   : > { %6338 = vmatpush3.bf16.msra.mxu0 %v3625_v17  ;;  %v3531_v42 = vpop.xlane.xlu0 %3530 }
0x163a   : > { %6349 = vmatprep.subr.bf16.mxu0 %v6929_v37  ;;  %v3537_v23 = vsub.f32 %v3521_v16, %v3531_v42 }
0x163b   : > { %v3668_v31 = vpop.permute.xlu1 %3667 }
0x163c   : > { %v3543_v44 = vmul.f32 1.442695, %v3537_v23  ;;  %v3673_v4 = vsel %vm1197_vm5, %v3668_v31, 0 }
0x163d   : > { %v3534_v28 = vpop.xlane.xlu0 %3533 }
0x163e   : > { %v3538_v24 = vsub.f32 %v3522_v48, %v3534_v28  ;;  %6786 = vpow2.f32 %v3543_v44 }
0x163f   : > { %v3716_v41 = vpop.permute.xlu1 %3715 }
0x1640   : > { %v6783_v18 = vpop.eup %6782  ;;  %v3545_v29 = vmul.f32 1.442695, %v3538_v24  ;;  %v3721_v7 = vsel %vm1197_vm5, %v3716_v41, 0 }
0x1641   : > { %v3547_v21 = vsel %vm942_vm3, %v6783_v18, 0.0 }
0x1642   : > { %v6785_v30 = vpop.eup %6784  ;;  %3548 = vadd.xlane.f32.xlu0 %v3547_v21  ;;  %6788 = vpow2.f32 %v3545_v29 }
0x1643   : > { %v3550_v36 = vsel %vm942_vm3, %v6785_v30, 0.0 }
0x1644   : > { %3551 = vadd.xlane.f32.xlu1 %v3550_v36 }
0x1648   : > { %v6787_v40 = vpop.eup %6786 }
0x1649   : > { %v3553_v38 = vsel %vm942_vm3, %v6787_v40, 0.0 }
0x164c   : > { %v6789_v45 = vpop.eup %6788 }
0x164d   : > { %v3556_v47 = vsel %vm942_vm3, %v6789_v45, 0.0 }
0x1655   : > { %3815 = vrot.lane.b32.xlu1 %v7702_v25, %s8290_s28 }
0x1658   : > { %3571 = vrot.lane.b32.xlu0 %v7700_v51, %s8289_s27  ;;  %s8297_s27 = smov 104  }
0x1677   : > { %3554 = vadd.xlane.f32.xlu0 %v3553_v38 }
0x1679   : > { %3557 = vadd.xlane.f32.xlu1 %v3556_v47 }
0x168a   : > { %3813 = vrot.lane.b32.xlu1 %v7702_v25, %s8291_s23 }
0x168d   : > { %3765 = vrot.lane.b32.xlu0 %v7700_v51, %s8290_s28 }
0x168e   : > { %3915 = vrot.lane.b32.xlu1 %v7712_v32, %s8290_s28 }
0x1691   : > { %3763 = vrot.lane.b32.xlu0 %v7700_v51, %s8291_s23 }
0x1692   : > { %3913 = vrot.lane.b32.xlu1 %v7712_v32, %s8291_s23 }
0x1695   : > { %3865 = vrot.lane.b32.xlu0 %v7708_v26, %s8290_s28  ;;  %s8298_s28 = smov 40  }
0x1699   : > { %3863 = vrot.lane.b32.xlu0 %v7708_v26, %s8291_s23  ;;  %s8299_s23 = smov 8  }
0x16cf   : > { %v3549_v53 = vpop.xlane.xlu0 %3548 }
0x16d0   : > { %6790 = vrcp.f32 %v3549_v53 }
0x16d1   : > { %v3552_v55 = vpop.xlane.xlu1 %3551 }
0x16d2   : > { %6792 = vrcp.f32 %v3552_v55 }
0x16d3   : > { %v3572_v56 = vpop.permute.xlu0 %3571 }
0x16d4   : > { %v3577_v60 = vsel %vm1197_vm5, %v3572_v56, 0 }
0x16d5   : > { %6332 = vmatpush3.bf16.msra.mxu1 %v3577_v60  ;;  %v3816_v9 = vpop.permute.xlu1 %3815 }
0x16d6   : > { %6343 = vmatprep.subr.bf16.mxu1 %v6929_v37  ;;  %v3821_v35 = vsel %vm942_vm3, %v3816_v9, 0 }
0x16da   : > { %v6791_v61 = vpop.eup %6790 }
0x16db   : > { %v3563_v62 = vmul.f32 %v6791_v61, %v6783_v18 }
0x16dc   : > { %v6793_v0 = vpop.eup %6792 }
0x16dd   : > { %v3564_v2 = vmul.f32 %v6793_v0, %v6785_v30  ;;  %v3567_v3 = vpack.c.bf16 %v3563_v62, %v3563_v62 }
0x16df   : > { %6334 = vmatmul.mubr.msk.bf16.vlgmr.msra.gmra.mrb[96].mxu1 %vm942_vm3, %v3567_v3  ;;  %v3568_v6 = vpack.c.bf16 %v3564_v2, %v3564_v2 }
0x16e0   : > { %6344 = vmatpush3.bf16.msra.mxu1 %v3673_v4  ;;  %6345 = vmatprep.mubr.msk.bf16.mxu1 %vm6930_vm2, %v6929_v37 }
0x16e1   : > { %6340 = vmatmul.mubr.msk.bf16.vlgmr.msra.gmra.mrb[76].mxu0 %vm942_vm3, %v3568_v6  ;;  %6355 = vmatprep.subr.bf16.mxu1 %v6929_v37 }
0x16e2   : > { %6350 = vmatpush3.bf16.msra.mxu0 %v3721_v7  ;;  %6351 = vmatprep.mubr.msk.bf16.mxu0 %vm6930_vm2, %v6929_v37 }
0x16e3   : > { %6361 = vmatprep.subr.bf16.mxu0 %v6929_v37 }
0x1704   : > { %v3555_v10 = vpop.xlane.xlu0 %3554 }
0x1705   : > { %6794 = vrcp.f32 %v3555_v10 }
0x1706   : > { %v3558_v11 = vpop.xlane.xlu1 %3557 }
0x1707   : > { %6796 = vrcp.f32 %v3558_v11 }
0x1708   : > { %v3766_v12 = vpop.permute.xlu0 %3765 }
0x1709   : > { %v3771_v46 = vsel %vm942_vm3, %v3766_v12, 0 }
0x170a   : > { %v3814_v34 = vpop.permute.xlu1 %3813 }
0x170c   : > { %v3764_v16 = vpop.permute.xlu0 %3763 }
0x170e   : > { %v3916_v58 = vpop.permute.xlu1 %3915 }
0x170f   : > { %v6795_v13 = vpop.eup %6794  ;;  %v3921_v59 = vsel %vm942_vm3, %v3916_v58, 0 }
0x1710   : > { %v3565_v14 = vmul.f32 %v6795_v13, %v6787_v40  ;;  %v3866_v48 = vpop.permute.xlu0 %3865 }
0x1711   : > { %v6797_v49 = vpop.eup %6796  ;;  %v3871_v52 = vsel %vm942_vm3, %v3866_v48, 0 }
0x1712   : > { %v3566_v15 = vmul.f32 %v6797_v49, %v6789_v45  ;;  %v3569_v50 = vpack.c.bf16 %v3565_v14, %v3565_v14  ;;  %v3914_v39 = vpop.permute.xlu1 %3913 }
0x1714   : > { %6346 = vmatmul.mubr.msk.bf16.vlgmr.msra.gmra.mrb[100].mxu1 %vm942_vm3, %v3569_v50  ;;  %v3570_v27 = vpack.c.bf16 %v3566_v15, %v3566_v15  ;;  %v3864_v43 = vpop.permute.xlu0 %3863 }
0x1715   : > { %6356 = vmatpush3.bf16.xpose.msra.mxu1 %v3771_v46  ;;  %6357 = vmatprep.mubr.msk.bf16.mxu1 %vm6930_vm2, %v6929_v37 }
0x1716   : > { %6352 = vmatmul.mubr.msk.bf16.vlgmr.msra.gmra.mrb[80].mxu0 %vm942_vm3, %v3570_v27  ;;  %6367 = vmatprep.subr.bf16.mxu1 %v6929_v37 }
0x1717   : > { %6362 = vmatpush3.bf16.xpose.msra.mxu0 %v3821_v35  ;;  %6363 = vmatprep.mubr.msk.bf16.mxu0 %vm6930_vm2, %v6929_v37 }
0x1718   : > { %6373 = vmatprep.subr.bf16.mxu0 %v6929_v37 }
0x171c   : > { %6358 = vmatmul.mubr.msk.bf16.vlgmr.msra.gmra.mrb[104].mxu1 %vm942_vm3, %v3764_v16 }
0x171d   : > { %6368 = vmatpush3.bf16.xpose.msra.mxu1 %v3871_v52  ;;  %6369 = vmatprep.mubr.msk.bf16.mxu1 %vm6930_vm2, %v6929_v37 }
0x171e   : > { %6364 = vmatmul.mubr.msk.bf16.vlgmr.msra.gmra.mrb[84].mxu0 %vm942_vm3, %v3814_v34  ;;  %6379 = vmatprep.subr.bf16.mxu1 %v6929_v37 }
0x171f   : > { %6374 = vmatpush3.bf16.xpose.msra.mxu0 %v3921_v59  ;;  %6375 = vmatprep.mubr.msk.bf16.mxu0 %vm6930_vm2, %v6929_v37 }
0x1720   : > { %6385 = vmatprep.subr.bf16.mxu0 %v6929_v37 }
0x1724   : > { %6370 = vmatmul.mubr.msk.bf16.vlgmr.msra.gmra.mrb[108].mxu1 %vm942_vm3, %v3864_v43 }
0x1725   : > { %6381 = vmatprep.mubr.msk.bf16.mxu1 %vm6930_vm2, %v6929_v37 }
0x1726   : > { %6376 = vmatmul.mubr.msk.bf16.vlgmr.msra.gmra.mrb[88].mxu0 %vm942_vm3, %v3914_v39 }
0x1727   : > { %6387 = vmatprep.mubr.msk.bf16.mxu0 %vm6930_vm2, %v6929_v37 }
0x17b2   : > { %v7816_v54 = vpop.f32.mrb[96].mxu1 }
0x17b3   : > { %v6335_v57 = vpop.f32.mrb[97].mxu1 }
0x17b4   : > { %v3616_v33 = vpop.f32.mrb[98].mxu1  ;;  %v7818_v63 = vpop.f32.mrb[76].mxu0 }
0x17b5   : > { %v6336_v5 = vpop.f32.mrb[99].mxu1  ;;  %v6341_v17 = vpop.f32.mrb[77].mxu0 }
0x17b6   : > { %v3664_v18 = vpop.f32.mrb[78].mxu0 }
0x17b7   : > { %v6342_v21 = vpop.f32.mrb[79].mxu0 }
0x17e7   : > { %v7820_v30 = vpop.f32.mrb[100].mxu1 }
0x17e8   : > { %v6347_v36 = vpop.f32.mrb[101].mxu1 }
0x17e9   : > { %v3712_v42 = vpop.f32.mrb[102].mxu1  ;;  %v7822_v28 = vpop.f32.mrb[80].mxu0 }
0x17ea   : > { %v6348_v23 = vpop.f32.mrb[103].mxu1  ;;  %v6353_v24 = vpop.f32.mrb[81].mxu0 }
0x17eb   : > { %v3760_v44 = vpop.f32.mrb[82].mxu0 }
0x17ec   : > { %v6354_v29 = vpop.f32.mrb[83].mxu0 }
0x17ef   : > { %v3807_v40 = vpop.f32.mrb[104].mxu1 }
0x17f0   : > { %v3963_v45 = vmul.f32 0.35355338, %v3807_v40  ;;  %v6359_v38 = vpop.f32.mrb[105].mxu1 }
0x17f1   : > { %v3810_v47 = vpop.f32.mrb[106].mxu1  ;;  %v3857_v31 = vpop.f32.mrb[84].mxu0 }
0x17f2   : > { %v3967_v41 = vadd.f32 %v3963_v45, %v7246_v1  ;;  %v3964_v53 = vmul.f32 0.35355338, %v3857_v31  ;;  %v6360_v55 = vpop.f32.mrb[107].mxu1  ;;  %v6365_v56 = vpop.f32.mrb[85].mxu0 }
0x17f3   : > { %v3860_v60 = vpop.f32.mrb[86].mxu0 }
0x17f4   : > { %v3968_v61 = vadd.f32 %v3964_v53, %v7246_v1  ;;  %v6366_v62 = vpop.f32.mrb[87].mxu0  ;;  %v3971_v0 = vsel %vm942_vm3, %v3967_v41, -inf }
0x17f5   : > { %3972 = vmax.xlane.f32.xlu0 %v3971_v0 }
0x17f6   : > { %v3974_v2 = vsel %vm942_vm3, %v3968_v61, -inf }
0x17f7   : > { %3975 = vmax.xlane.f32.xlu1 %v3974_v2  ;;  %v3907_v3 = vpop.f32.mrb[108].mxu1 }
0x17f8   : > { %v3965_v4 = vmul.f32 0.35355338, %v3907_v3  ;;  %v6371_v6 = vpop.f32.mrb[109].mxu1 }
0x17f9   : > { %v3910_v7 = vpop.f32.mrb[110].mxu1  ;;  %v3957_v9 = vpop.f32.mrb[88].mxu0 }
0x17fa   : > { %v3969_v10 = vadd.f32 %v3965_v4, %v7246_v1  ;;  %v3966_v11 = vmul.f32 0.35355338, %v3957_v9  ;;  %v6372_v12 = vpop.f32.mrb[111].mxu1  ;;  %v6377_v13 = vpop.f32.mrb[89].mxu0 }
0x17fb   : > { %v3960_v14 = vpop.f32.mrb[90].mxu0 }
0x17fc   : > { %v3970_v49 = vadd.f32 %v3966_v11, %v7246_v1  ;;  %v6378_v15 = vpop.f32.mrb[91].mxu0  ;;  %v3977_v50 = vsel %vm942_vm3, %v3969_v10, -inf }
0x17fd   : > { %3978 = vmax.xlane.f32.xlu0 %v3977_v50 }
0x17fe   : > { %v3980_v16 = vsel %vm942_vm3, %v3970_v49, -inf }
0x1801   : > { %3981 = vmax.xlane.f32.xlu0 %v3980_v16 }
0x1808   : > { %4067 = vrot.lane.b32.xlu1 %v7702_v25, %s8292_s20 }
0x180c   : > { %4115 = vrot.lane.b32.xlu1 %v7708_v26, %s8292_s20 }
0x1810   : > { %4163 = vrot.lane.b32.xlu1 %v7712_v32, %s8292_s20 }
0x1882   : > { %v3973_v46 = vpop.xlane.xlu0 %3972 }
0x1883   : > { %v3983_v27 = vsub.f32 %v3967_v41, %v3973_v46 }
0x1884   : > { %v3976_v34 = vpop.xlane.xlu1 %3975 }
0x1885   : > { %v3987_v35 = vmul.f32 1.442695, %v3983_v27  ;;  %v3984_v48 = vsub.f32 %v3968_v61, %v3976_v34 }
0x1887   : > { %6798 = vpow2.f32 %v3987_v35  ;;  %v3989_v58 = vmul.f32 1.442695, %v3984_v48 }
0x1888   : > { %v4068_v52 = vpop.permute.xlu1 %4067 }
0x1889   : > { %6800 = vpow2.f32 %v3989_v58  ;;  %v4073_v59 = vsel %vm1197_vm5, %v4068_v52, 0 }
0x188a   : > { %6386 = vmatpush3.bf16.msra.mxu0 %v4073_v59  ;;  %v3979_v5 = vpop.xlane.xlu0 %3978 }
0x188b   : > { %6397 = vmatprep.subr.bf16.mxu0 %v6929_v37  ;;  %v3985_v18 = vsub.f32 %v3969_v10, %v3979_v5 }
0x188c   : > { %v4116_v40 = vpop.permute.xlu1 %4115 }
0x188d   : > { %v3991_v36 = vmul.f32 1.442695, %v3985_v18  ;;  %v4121_v62 = vsel %vm1197_vm5, %v4116_v40, 0 }
0x188e   : > { %v3982_v17 = vpop.xlane.xlu0 %3981 }
0x188f   : > { %v3986_v21 = vsub.f32 %v3970_v49, %v3982_v17  ;;  %6802 = vpow2.f32 %v3991_v36 }
0x1890   : > { %v4164_v45 = vpop.permute.xlu1 %4163 }
0x1891   : > { %v6799_v43 = vpop.eup %6798  ;;  %v3993_v42 = vmul.f32 1.442695, %v3986_v21  ;;  %v4169_v2 = vsel %vm1197_vm5, %v4164_v45, 0 }
0x1892   : > { %v3995_v39 = vsel %vm942_vm3, %v6799_v43, 0.0 }
0x1893   : > { %v6801_v57 = vpop.eup %6800  ;;  %3996 = vadd.xlane.f32.xlu0 %v3995_v39  ;;  %6804 = vpow2.f32 %v3993_v42 }
0x1894   : > { %v3998_v33 = vsel %vm942_vm3, %v6801_v57, 0.0 }
0x1895   : > { %3999 = vadd.xlane.f32.xlu1 %v3998_v33 }
0x1899   : > { %v6803_v23 = vpop.eup %6802 }
0x189a   : > { %v4001_v44 = vsel %vm942_vm3, %v6803_v23, 0.0 }
0x189d   : > { %v6805_v24 = vpop.eup %6804 }
0x189e   : > { %v4004_v29 = vsel %vm942_vm3, %v6805_v24, 0.0 }
0x18a6   : > { %4263 = vrot.lane.b32.xlu1 %v7702_v25, %s8293_s2 }
0x18a9   : > { %4019 = vrot.lane.b32.xlu0 %v7700_v51, %s8292_s20  ;;  %s8300_s20 = smov 16  }
0x18c8   : > { %4002 = vadd.xlane.f32.xlu0 %v4001_v44 }
0x18ca   : > { %4005 = vadd.xlane.f32.xlu1 %v4004_v29 }
0x18db   : > { %4261 = vrot.lane.b32.xlu1 %v7702_v25, %s8294_s26 }
0x18de   : > { %4213 = vrot.lane.b32.xlu0 %v7700_v51, %s8293_s2 }
0x18df   : > { %4363 = vrot.lane.b32.xlu1 %v7712_v32, %s8293_s2 }
0x18e2   : > { %4211 = vrot.lane.b32.xlu0 %v7700_v51, %s8294_s26 }
0x18e3   : > { %4361 = vrot.lane.b32.xlu1 %v7712_v32, %s8294_s26 }
0x18e6   : > { %4313 = vrot.lane.b32.xlu0 %v7708_v26, %s8293_s2 }
0x18ea   : > { %4311 = vrot.lane.b32.xlu0 %v7708_v26, %s8294_s26 }
0x1920   : > { %v3997_v38 = vpop.xlane.xlu0 %3996 }
0x1921   : > { %6806 = vrcp.f32 %v3997_v38 }
0x1922   : > { %v4000_v47 = vpop.xlane.xlu1 %3999 }
0x1923   : > { %6808 = vrcp.f32 %v4000_v47 }
0x1924   : > { %v4020_v31 = vpop.permute.xlu0 %4019 }
0x1925   : > { %v4025_v41 = vsel %vm1197_vm5, %v4020_v31, 0 }
0x1926   : > { %6380 = vmatpush3.bf16.msra.mxu1 %v4025_v41  ;;  %v4264_v3 = vpop.permute.xlu1 %4263 }
0x1927   : > { %6391 = vmatprep.subr.bf16.mxu1 %v6929_v37  ;;  %v4269_v16 = vsel %vm942_vm3, %v4264_v3, 0 }
0x192b   : > { %v6807_v53 = vpop.eup %6806 }
0x192c   : > { %v4011_v55 = vmul.f32 %v6807_v53, %v6799_v43 }
0x192d   : > { %v6809_v56 = vpop.eup %6808 }
0x192e   : > { %v4012_v60 = vmul.f32 %v6809_v56, %v6801_v57  ;;  %v4015_v61 = vpack.c.bf16 %v4011_v55, %v4011_v55 }
0x1930   : > { %6382 = vmatmul.mubr.msk.bf16.vlgmr.msra.gmra.mrb[112].mxu1 %vm942_vm3, %v4015_v61  ;;  %v4016_v0 = vpack.c.bf16 %v4012_v60, %v4012_v60 }
0x1931   : > { %6392 = vmatpush3.bf16.msra.mxu1 %v4121_v62  ;;  %6393 = vmatprep.mubr.msk.bf16.mxu1 %vm6930_vm2, %v6929_v37 }
0x1932   : > { %6388 = vmatmul.mubr.msk.bf16.vlgmr.msra.gmra.mrb[92].mxu0 %vm942_vm3, %v4016_v0  ;;  %6403 = vmatprep.subr.bf16.mxu1 %v6929_v37 }
0x1933   : > { %6398 = vmatpush3.bf16.msra.mxu0 %v4169_v2  ;;  %6399 = vmatprep.mubr.msk.bf16.mxu0 %vm6930_vm2, %v6929_v37 }
0x1934   : > { %6409 = vmatprep.subr.bf16.mxu0 %v6929_v37 }
0x1955   : > { %v4003_v4 = vpop.xlane.xlu0 %4002 }
0x1956   : > { %6810 = vrcp.f32 %v4003_v4 }
0x1957   : > { %v4006_v6 = vpop.xlane.xlu1 %4005 }
0x1958   : > { %6812 = vrcp.f32 %v4006_v6 }
0x1959   : > { %v4214_v7 = vpop.permute.xlu0 %4213 }
0x195a   : > { %v4219_v49 = vsel %vm942_vm3, %v4214_v7, 0 }
0x195b   : > { %v4262_v50 = vpop.permute.xlu1 %4261 }
0x195d   : > { %v4212_v14 = vpop.permute.xlu0 %4211 }
0x195f   : > { %v4364_v27 = vpop.permute.xlu1 %4363 }
0x1960   : > { %v6811_v9 = vpop.eup %6810  ;;  %v4369_v35 = vsel %vm942_vm3, %v4364_v27, 0 }
0x1961   : > { %v4013_v10 = vmul.f32 %v6811_v9, %v6803_v23  ;;  %v4314_v46 = vpop.permute.xlu0 %4313 }
0x1962   : > { %v6813_v11 = vpop.eup %6812  ;;  %v4319_v34 = vsel %vm942_vm3, %v4314_v46, 0 }
0x1963   : > { %v4014_v12 = vmul.f32 %v6813_v11, %v6805_v24  ;;  %v4017_v13 = vpack.c.bf16 %v4013_v10, %v4013_v10  ;;  %v4362_v58 = vpop.permute.xlu1 %4361 }
0x1965   : > { %6394 = vmatmul.mubr.msk.bf16.vlgmr.msra.gmra.mrb[116].mxu1 %vm942_vm3, %v4017_v13  ;;  %v4018_v15 = vpack.c.bf16 %v4014_v12, %v4014_v12  ;;  %v4312_v48 = vpop.permute.xlu0 %4311 }
0x1966   : > { %6404 = vmatpush3.bf16.xpose.msra.mxu1 %v4219_v49  ;;  %6405 = vmatprep.mubr.msk.bf16.mxu1 %vm6930_vm2, %v6929_v37 }
0x1967   : > { %6400 = vmatmul.mubr.msk.bf16.vlgmr.msra.gmra.mrb[96].mxu0 %vm942_vm3, %v4018_v15  ;;  %6415 = vmatprep.subr.bf16.mxu1 %v6929_v37 }
0x1968   : > { %6410 = vmatpush3.bf16.xpose.msra.mxu0 %v4269_v16  ;;  %6411 = vmatprep.mubr.msk.bf16.mxu0 %vm6930_vm2, %v6929_v37 }
0x1969   : > { %6421 = vmatprep.subr.bf16.mxu0 %v6929_v37 }
0x196d   : > { %6406 = vmatmul.mubr.msk.bf16.vlgmr.msra.gmra.mrb[120].mxu1 %vm942_vm3, %v4212_v14 }
0x196e   : > { %6416 = vmatpush3.bf16.xpose.msra.mxu1 %v4319_v34  ;;  %6417 = vmatprep.mubr.msk.bf16.mxu1 %vm6930_vm2, %v6929_v37 }
0x196f   : > { %6412 = vmatmul.mubr.msk.bf16.vlgmr.msra.gmra.mrb[100].mxu0 %vm942_vm3, %v4262_v50  ;;  %6427 = vmatprep.subr.bf16.mxu1 %v6929_v37 }
0x1970   : > { %6422 = vmatpush3.bf16.xpose.msra.mxu0 %v4369_v35  ;;  %6423 = vmatprep.mubr.msk.bf16.mxu0 %vm6930_vm2, %v6929_v37 }
0x1971   : > { %6433 = vmatprep.subr.bf16.mxu0 %v6929_v37 }
0x1975   : > { %6418 = vmatmul.mubr.msk.bf16.vlgmr.msra.gmra.mrb[124].mxu1 %vm942_vm3, %v4312_v48 }
0x1976   : > { %6429 = vmatprep.mubr.msk.bf16.mxu1 %vm6930_vm2, %v6929_v37 }
0x1977   : > { %6424 = vmatmul.mubr.msk.bf16.vlgmr.msra.gmra.mrb[104].mxu0 %vm942_vm3, %v4362_v58 }
0x1978   : > { %6435 = vmatprep.mubr.msk.bf16.mxu0 %vm6930_vm2, %v6929_v37 }
0x1a03   : > { %v7900_v52 = vpop.f32.mrb[112].mxu1 }
0x1a04   : > { %v6383_v59 = vpop.f32.mrb[113].mxu1 }
0x1a05   : > { %v4064_v43 = vpop.f32.mrb[114].mxu1  ;;  %v7902_v39 = vpop.f32.mrb[92].mxu0 }
0x1a06   : > { %v6622_v57 = vpack.i.bf16 %v7902_v39, %v7900_v52  ;;  %v6384_v33 = vpop.f32.mrb[115].mxu1  ;;  %v6389_v5 = vpop.f32.mrb[93].mxu0 }
0x1a07   : > { %v4112_v17 = vpop.f32.mrb[94].mxu0 }
0x1a08   : > { %v6390_v18 = vpop.f32.mrb[95].mxu0 }
0x1a38   : > { %v7906_v21 = vpop.f32.mrb[116].mxu1 }
0x1a39   : > { %v6395_v36 = vpop.f32.mrb[117].mxu1 }
0x1a3a   : > { %v4160_v42 = vpop.f32.mrb[118].mxu1  ;;  %v7908_v23 = vpop.f32.mrb[96].mxu0 }
0x1a3b   : > { %v6627_v24 = vpack.i.bf16 %v7908_v23, %v7906_v21  ;;  %v6396_v44 = vpop.f32.mrb[119].mxu1  ;;  %v6401_v29 = vpop.f32.mrb[97].mxu0 }
0x1a3c   : > { %v4208_v40 = vpop.f32.mrb[98].mxu0 }
0x1a3d   : > { %v6402_v45 = vpop.f32.mrb[99].mxu0 }
0x1a40   : > { %v4255_v38 = vpop.f32.mrb[120].mxu1 }
0x1a41   : > { %v4411_v47 = vmul.f32 0.35355338, %v4255_v38  ;;  %v6407_v31 = vpop.f32.mrb[121].mxu1 }
0x1a42   : > { %v4258_v41 = vpop.f32.mrb[122].mxu1  ;;  %v4305_v53 = vpop.f32.mrb[100].mxu0 }
0x1a43   : > { %v4415_v55 = vadd.f32 %v4411_v47, %v7246_v1  ;;  %v4412_v56 = vmul.f32 0.35355338, %v4305_v53  ;;  %v6408_v60 = vpop.f32.mrb[123].mxu1  ;;  %v6413_v61 = vpop.f32.mrb[101].mxu0 }
0x1a44   : > { %v4308_v62 = vpop.f32.mrb[102].mxu0 }
0x1a45   : > { %v4416_v0 = vadd.f32 %v4412_v56, %v7246_v1  ;;  %v6414_v2 = vpop.f32.mrb[103].mxu0  ;;  %v4419_v3 = vsel %vm942_vm3, %v4415_v55, -inf }
0x1a46   : > { %4420 = vmax.xlane.f32.xlu0 %v4419_v3 }
0x1a47   : > { %v4422_v4 = vsel %vm942_vm3, %v4416_v0, -inf }
0x1a48   : > { %4423 = vmax.xlane.f32.xlu1 %v4422_v4  ;;  %v4355_v6 = vpop.f32.mrb[124].mxu1 }
0x1a49   : > { %v4413_v7 = vmul.f32 0.35355338, %v4355_v6  ;;  %v6419_v9 = vpop.f32.mrb[125].mxu1 }
0x1a4a   : > { %v4358_v10 = vpop.f32.mrb[126].mxu1  ;;  %v4405_v11 = vpop.f32.mrb[104].mxu0 }
0x1a4b   : > { %v4417_v12 = vadd.f32 %v4413_v7, %v7246_v1  ;;  %v4414_v13 = vmul.f32 0.35355338, %v4405_v11  ;;  %v6420_v14 = vpop.f32.mrb[127].mxu1  ;;  %v6425_v49 = vpop.f32.mrb[105].mxu0 }
0x1a4c   : > { %v4408_v15 = vpop.f32.mrb[106].mxu0 }
0x1a4d   : > { %v4418_v50 = vadd.f32 %v4414_v13, %v7246_v1  ;;  %v6426_v16 = vpop.f32.mrb[107].mxu0  ;;  %v4425_v46 = vsel %vm942_vm3, %v4417_v12, -inf }
0x1a4e   : > { %4426 = vmax.xlane.f32.xlu0 %v4425_v46 }
0x1a4f   : > { %v4428_v27 = vsel %vm942_vm3, %v4418_v50, -inf }
0x1a52   : > { %4429 = vmax.xlane.f32.xlu0 %v4428_v27 }
0x1a59   : > { %4515 = vrot.lane.b32.xlu1 %v7702_v25, %s8295_s24 }
0x1a5d   : > { %4563 = vrot.lane.b32.xlu1 %v7708_v26, %s8295_s24 }
0x1a61   : > { %4611 = vrot.lane.b32.xlu1 %v7712_v32, %s8295_s24 }
0x1ad3   : > { %v4421_v34 = vpop.xlane.xlu0 %4420 }
0x1ad4   : > { %v4431_v35 = vsub.f32 %v4415_v55, %v4421_v34 }
0x1ad5   : > { %v4424_v48 = vpop.xlane.xlu1 %4423 }
0x1ad6   : > { %v4435_v58 = vmul.f32 1.442695, %v4431_v35  ;;  %v4432_v59 = vsub.f32 %v4416_v0, %v4424_v48 }
0x1ad8   : > { %6814 = vpow2.f32 %v4435_v58  ;;  %v4437_v43 = vmul.f32 1.442695, %v4432_v59 }
0x1ad9   : > { %v4516_v33 = vpop.permute.xlu1 %4515 }
0x1ada   : > { %6816 = vpow2.f32 %v4437_v43  ;;  %v4521_v5 = vsel %vm1197_vm5, %v4516_v33, 0 }
0x1adb   : > { %6434 = vmatpush3.bf16.msra.mxu0 %v4521_v5  ;;  %v4427_v44 = vpop.xlane.xlu0 %4426 }
0x1adc   : > { %6445 = vmatprep.subr.bf16.mxu0 %v6929_v37  ;;  %v4433_v40 = vsub.f32 %v4417_v12, %v4427_v44 }
0x1add   : > { %v4564_v56 = vpop.permute.xlu1 %4563 }
0x1ade   : > { %v4439_v38 = vmul.f32 1.442695, %v4433_v40  ;;  %v4569_v10 = vsel %vm1197_vm5, %v4564_v56, 0 }
0x1adf   : > { %v4430_v29 = vpop.xlane.xlu0 %4429 }
0x1ae0   : > { %v4434_v45 = vsub.f32 %v4418_v50, %v4430_v29  ;;  %6818 = vpow2.f32 %v4439_v38 }
0x1ae1   : > { %v4612_v60 = vpop.permute.xlu1 %4611 }
0x1ae2   : > { %v6815_v17 = vpop.eup %6814  ;;  %v4441_v47 = vmul.f32 1.442695, %v4434_v45  ;;  %v4617_v12 = vsel %vm1197_vm5, %v4612_v60, 0 }
0x1ae3   : > { %v4443_v18 = vsel %vm942_vm3, %v6815_v17, 0.0 }
0x1ae4   : > { %v6817_v36 = vpop.eup %6816  ;;  %4444 = vadd.xlane.f32.xlu0 %v4443_v18  ;;  %6820 = vpow2.f32 %v4441_v47 }
0x1ae5   : > { %v4446_v42 = vsel %vm942_vm3, %v6817_v36, 0.0 }
0x1ae6   : > { %4447 = vadd.xlane.f32.xlu1 %v4446_v42 }
0x1aea   : > { %v6819_v31 = vpop.eup %6818 }
0x1aeb   : > { %v4449_v53 = vsel %vm942_vm3, %v6819_v31, 0.0 }
0x1aee   : > { %v6821_v41 = vpop.eup %6820 }
0x1aef   : > { %v4452_v55 = vsel %vm942_vm3, %v6821_v41, 0.0 }
0x1af7   : > { %4711 = vrot.lane.b32.xlu1 %v7702_v25, %s8296_s0 }
0x1afa   : > { %4467 = vrot.lane.b32.xlu0 %v7700_v51, %s8295_s24  ;;  %s8301_s24 = smov 24  }
0x1b19   : > { %4450 = vadd.xlane.f32.xlu0 %v4449_v53 }
0x1b1b   : > { %4453 = vadd.xlane.f32.xlu1 %v4452_v55 }
0x1b2c   : > { %4709 = vrot.lane.b32.xlu1 %v7702_v25, %s8297_s27 }
0x1b2f   : > { %4661 = vrot.lane.b32.xlu0 %v7700_v51, %s8296_s0 }
0x1b30   : > { %4811 = vrot.lane.b32.xlu1 %v7712_v32, %s8296_s0 }
0x1b33   : > { %4659 = vrot.lane.b32.xlu0 %v7700_v51, %s8297_s27 }
0x1b34   : > { %4809 = vrot.lane.b32.xlu1 %v7712_v32, %s8297_s27 }
0x1b37   : > { %4761 = vrot.lane.b32.xlu0 %v7708_v26, %s8296_s0  ;;  %s596_s0 = sand.u32 1, %s6918_s30  }
0x1b3b   : > { %4759 = vrot.lane.b32.xlu0 %v7708_v26, %s8297_s27  ;;  %s5731_s27 = sshll.u32 %s596_s0, 2 }
0x1b71   : > { %v4445_v61 = vpop.xlane.xlu0 %4444 }
0x1b72   : > { %6822 = vrcp.f32 %v4445_v61 }
0x1b73   : > { %v4448_v62 = vpop.xlane.xlu1 %4447 }
0x1b74   : > { %6824 = vrcp.f32 %v4448_v62 }
0x1b75   : > { %v4468_v0 = vpop.permute.xlu0 %4467 }
0x1b76   : > { %v4473_v2 = vsel %vm1197_vm5, %v4468_v0, 0 }
0x1b77   : > { %6428 = vmatpush3.bf16.msra.mxu1 %v4473_v2  ;;  %v4712_v13 = vpop.permute.xlu1 %4711 }
0x1b78   : > { %6439 = vmatprep.subr.bf16.mxu1 %v6929_v37  ;;  %v4717_v43 = vsel %vm942_vm3, %v4712_v13, 0 }
0x1b7c   : > { %v6823_v3 = vpop.eup %6822 }
0x1b7d   : > { %v4459_v4 = vmul.f32 %v6823_v3, %v6815_v17 }
0x1b7e   : > { %v6825_v6 = vpop.eup %6824 }
0x1b7f   : > { %v4460_v7 = vmul.f32 %v6825_v6, %v6817_v36  ;;  %v4463_v9 = vpack.c.bf16 %v4459_v4, %v4459_v4 }
0x1b81   : > { %6430 = vmatmul.mubr.msk.bf16.vlgmr.msra.gmra.mrb[128].mxu1 %vm942_vm3, %v4463_v9  ;;  %v4464_v11 = vpack.c.bf16 %v4460_v7, %v4460_v7 }
0x1b82   : > { %6440 = vmatpush3.bf16.msra.mxu1 %v4569_v10  ;;  %6441 = vmatprep.mubr.msk.bf16.mxu1 %vm6930_vm2, %v6929_v37 }
0x1b83   : > { %6436 = vmatmul.mubr.msk.bf16.vlgmr.msra.gmra.mrb[108].mxu0 %vm942_vm3, %v4464_v11  ;;  %6451 = vmatprep.subr.bf16.mxu1 %v6929_v37 }
0x1b84   : > { %6446 = vmatpush3.bf16.msra.mxu0 %v4617_v12  ;;  %6447 = vmatprep.mubr.msk.bf16.mxu0 %vm6930_vm2, %v6929_v37 }
0x1b85   : > { %6457 = vmatprep.subr.bf16.mxu0 %v6929_v37 }
0x1ba6   : > { %v4451_v14 = vpop.xlane.xlu0 %4450 }
0x1ba7   : > { %6826 = vrcp.f32 %v4451_v14 }
0x1ba8   : > { %v4454_v49 = vpop.xlane.xlu1 %4453 }
0x1ba9   : > { %6828 = vrcp.f32 %v4454_v49 }
0x1baa   : > { %v4662_v15 = vpop.permute.xlu0 %4661 }
0x1bab   : > { %v4667_v48 = vsel %vm942_vm3, %v4662_v15, 0 }
0x1bac   : > { %v4710_v59 = vpop.permute.xlu1 %4709 }
0x1bae   : > { %v4660_v35 = vpop.permute.xlu0 %4659 }
0x1bb0   : > { %v4812_v5 = vpop.permute.xlu1 %4811 }
0x1bb1   : > { %v6827_v50 = vpop.eup %6826  ;;  %v4817_v18 = vsel %vm942_vm3, %v4812_v5, 0 }
0x1bb2   : > { %v4461_v16 = vmul.f32 %v6827_v50, %v6819_v31  ;;  %v4762_v33 = vpop.permute.xlu0 %4761 }
0x1bb3   : > { %v6829_v46 = vpop.eup %6828  ;;  %v4767_v17 = vsel %vm942_vm3, %v4762_v33, 0 }
0x1bb4   : > { %v4462_v27 = vmul.f32 %v6829_v46, %v6821_v41  ;;  %v4465_v34 = vpack.c.bf16 %v4461_v16, %v4461_v16  ;;  %v4810_v42 = vpop.permute.xlu1 %4809 }
0x1bb6   : > { %6442 = vmatmul.mubr.msk.bf16.vlgmr.msra.gmra.mrb[132].mxu1 %vm942_vm3, %v4465_v34  ;;  %v4466_v58 = vpack.c.bf16 %v4462_v27, %v4462_v27  ;;  %v4760_v36 = vpop.permute.xlu0 %4759 }
0x1bb7   : > { %6452 = vmatpush3.bf16.xpose.msra.mxu1 %v4667_v48  ;;  %6453 = vmatprep.mubr.msk.bf16.mxu1 %vm6930_vm2, %v6929_v37 }
0x1bb8   : > { %6448 = vmatmul.mubr.msk.bf16.vlgmr.msra.gmra.mrb[112].mxu0 %vm942_vm3, %v4466_v58  ;;  %6463 = vmatprep.subr.bf16.mxu1 %v6929_v37 }
0x1bb9   : > { %6458 = vmatpush3.bf16.xpose.msra.mxu0 %v4717_v43  ;;  %6459 = vmatprep.mubr.msk.bf16.mxu0 %vm6930_vm2, %v6929_v37 }
0x1bba   : > { %6469 = vmatprep.subr.bf16.mxu0 %v6929_v37 }
0x1bbe   : > { %6454 = vmatmul.mubr.msk.bf16.vlgmr.msra.gmra.mrb[136].mxu1 %vm942_vm3, %v4660_v35 }
0x1bbf   : > { %6464 = vmatpush3.bf16.xpose.msra.mxu1 %v4767_v17  ;;  %6465 = vmatprep.mubr.msk.bf16.mxu1 %vm6930_vm2, %v6929_v37 }
0x1bc0   : > { %6460 = vmatmul.mubr.msk.bf16.vlgmr.msra.gmra.mrb[116].mxu0 %vm942_vm3, %v4710_v59  ;;  %6475 = vmatprep.subr.bf16.mxu1 %v6929_v37 }
0x1bc1   : > { %6470 = vmatpush3.bf16.xpose.msra.mxu0 %v4817_v18  ;;  %6471 = vmatprep.mubr.msk.bf16.mxu0 %vm6930_vm2, %v6929_v37 }
0x1bc2   : > { %6481 = vmatprep.subr.bf16.mxu0 %v6929_v37 }
0x1bc6   : > { %6466 = vmatmul.mubr.msk.bf16.vlgmr.msra.gmra.mrb[140].mxu1 %vm942_vm3, %v4760_v36 }
0x1bc7   : > { %6477 = vmatprep.mubr.msk.bf16.mxu1 %vm6930_vm2, %v6929_v37 }
0x1bc8   : > { %6472 = vmatmul.mubr.msk.bf16.vlgmr.msra.gmra.mrb[120].mxu0 %vm942_vm3, %v4810_v42 }
0x1bc9   : > { %6483 = vmatprep.mubr.msk.bf16.mxu0 %vm6930_vm2, %v6929_v37 }
0x1c54   : > { %v7988_v44 = vpop.f32.mrb[128].mxu1 }
0x1c55   : > { %v6431_v29 = vpop.f32.mrb[129].mxu1 }
0x1c56   : > { %v4512_v40 = vpop.f32.mrb[130].mxu1  ;;  %v7990_v45 = vpop.f32.mrb[108].mxu0 }
0x1c57   : > { %v6632_v38 = vpack.i.bf16 %v7990_v45, %v7988_v44  ;;  %v6432_v47 = vpop.f32.mrb[131].mxu1  ;;  %v6437_v31 = vpop.f32.mrb[109].mxu0 }
0x1c58   : > { %v4560_v41 = vpop.f32.mrb[110].mxu0 }
0x1c59   : > { %v6438_v53 = vpop.f32.mrb[111].mxu0 }
0x1c89   : > { %v7994_v55 = vpop.f32.mrb[132].mxu1 }
0x1c8a   : > { %v6443_v56 = vpop.f32.mrb[133].mxu1 }
0x1c8b   : > { %v4608_v60 = vpop.f32.mrb[134].mxu1  ;;  %v7996_v61 = vpop.f32.mrb[112].mxu0 }
0x1c8c   : > { %v6637_v62 = vpack.i.bf16 %v7996_v61, %v7994_v55  ;;  %v6444_v0 = vpop.f32.mrb[135].mxu1  ;;  %v6449_v2 = vpop.f32.mrb[113].mxu0 }
0x1c8d   : > { %v4656_v3 = vpop.f32.mrb[114].mxu0 }
0x1c8e   : > { %v6450_v4 = vpop.f32.mrb[115].mxu0 }
0x1c91   : > { %v4703_v6 = vpop.f32.mrb[136].mxu1 }
0x1c92   : > { %v4859_v7 = vmul.f32 0.35355338, %v4703_v6  ;;  %v6455_v9 = vpop.f32.mrb[137].mxu1 }
0x1c93   : > { %v4706_v10 = vpop.f32.mrb[138].mxu1  ;;  %v4753_v11 = vpop.f32.mrb[116].mxu0 }
0x1c94   : > { %v4863_v12 = vadd.f32 %v4859_v7, %v7246_v1  ;;  %v4860_v13 = vmul.f32 0.35355338, %v4753_v11  ;;  %v6456_v14 = vpop.f32.mrb[139].mxu1  ;;  %v6461_v49 = vpop.f32.mrb[117].mxu0 }
0x1c95   : > { %v4756_v15 = vpop.f32.mrb[118].mxu0 }
0x1c96   : > { %v4864_v50 = vadd.f32 %v4860_v13, %v7246_v1  ;;  %v6462_v16 = vpop.f32.mrb[119].mxu0  ;;  %v4867_v46 = vsel %vm942_vm3, %v4863_v12, -inf }
0x1c97   : > { %4868 = vmax.xlane.f32.xlu0 %v4867_v46 }
0x1c98   : > { %v4870_v27 = vsel %vm942_vm3, %v4864_v50, -inf }
0x1c99   : > { %4871 = vmax.xlane.f32.xlu1 %v4870_v27  ;;  %v4803_v34 = vpop.f32.mrb[140].mxu1 }
0x1c9a   : > { %v4861_v35 = vmul.f32 0.35355338, %v4803_v34  ;;  %v6467_v48 = vpop.f32.mrb[141].mxu1 }
0x1c9b   : > { %v4806_v58 = vpop.f32.mrb[142].mxu1  ;;  %v4853_v59 = vpop.f32.mrb[120].mxu0 }
0x1c9c   : > { %v4865_v43 = vadd.f32 %v4861_v35, %v7246_v1  ;;  %v4862_v33 = vmul.f32 0.35355338, %v4853_v59  ;;  %v6468_v5 = vpop.f32.mrb[143].mxu1  ;;  %v6473_v17 = vpop.f32.mrb[121].mxu0  ;;  %v6676_v58 = vld [vmem:[%s8219_s7 + $0x10] sm:$0xff]  }
0x1c9d   : > { %v4856_v18 = vpop.f32.mrb[122].mxu0 }
0x1c9e   : > { %v4866_v36 = vadd.f32 %v4862_v33, %v7246_v1  ;;  %v6474_v42 = vpop.f32.mrb[123].mxu0  ;;  %v4873_v29 = vsel %vm942_vm3, %v4865_v43, -inf }
0x1c9f   : > { %4874 = vmax.xlane.f32.xlu0 %v4873_v29 }
0x1ca0   : > { %v4876_v40 = vsel %vm942_vm3, %v4866_v36, -inf }
0x1ca3   : > { %4877 = vmax.xlane.f32.xlu0 %v4876_v40 }
0x1d24   : > { %v4869_v47 = vpop.xlane.xlu0 %4868 }
0x1d25   : > { %v4879_v31 = vsub.f32 %v4863_v12, %v4869_v47 }
0x1d26   : > { %v4872_v41 = vpop.xlane.xlu1 %4871 }
0x1d27   : > { %v4883_v53 = vmul.f32 1.442695, %v4879_v31  ;;  %v4880_v56 = vsub.f32 %v4864_v50, %v4872_v41 }
0x1d29   : > { %6830 = vpow2.f32 %v4883_v53  ;;  %v4885_v60 = vmul.f32 1.442695, %v4880_v56  ;;  %v6677_v53 = vld [vmem:[%s8219_s7 + $0x18] sm:$0xff]  }
0x1d2b   : > { %6832 = vpow2.f32 %v4885_v60 }
0x1d2c   : > { %v4875_v0 = vpop.xlane.xlu0 %4874 }
0x1d2d   : > { %v4881_v2 = vsub.f32 %v4865_v43, %v4875_v0 }
0x1d2f   : > { %v4887_v3 = vmul.f32 1.442695, %v4881_v2 }
0x1d30   : > { %v4878_v11 = vpop.xlane.xlu0 %4877 }
0x1d31   : > { %6834 = vpow2.f32 %v4887_v3  ;;  %v4882_v12 = vsub.f32 %v4866_v36, %v4878_v11 }
0x1d33   : > { %v6831_v1 = vpop.eup %6830  ;;  %v4889_v13 = vmul.f32 1.442695, %v4882_v12 }
0x1d34   : > { %v4891_v4 = vsel %vm942_vm3, %v6831_v1, 0.0 }
0x1d35   : > { %v6833_v6 = vpop.eup %6832  ;;  %4892 = vadd.xlane.f32.xlu0 %v4891_v4  ;;  %6836 = vpow2.f32 %v4889_v13 }
0x1d36   : > { %v4894_v7 = vsel %vm942_vm3, %v6833_v6, 0.0 }
0x1d37   : > { %4895 = vadd.xlane.f32.xlu1 %v4894_v7 }
0x1d3b   : > { %v6835_v9 = vpop.eup %6834 }
0x1d3c   : > { %v4897_v10 = vsel %vm942_vm3, %v6835_v9, 0.0 }
0x1d3d   : > { %4898 = vadd.xlane.f32.xlu0 %v4897_v10 }
0x1d48   : > { %4963 = vrot.lane.b32.xlu1 %v7702_v25, %s8298_s28  ;;  %v6837_v25 = vpop.eup %6836 }
0x1d4c   : > { %5011 = vrot.lane.b32.xlu1 %v7708_v26, %s8298_s28  ;;  %v4900_v26 = vsel %vm942_vm3, %v6837_v25, 0.0 }
0x1d53   : > { %4915 = vrot.lane.b32.xlu0 %v7700_v51, %s8298_s28 }
0x1d57   : > { %6623 = vrot.lane.b32.xlu0 %v6622_v57, %s8299_s23 }
0x1d5b   : > { %6633 = vrot.lane.b32.xlu0 %v6632_v38, %s8300_s20 }
0x1d70   : > { %4901 = vadd.xlane.f32.xlu1 %v4900_v26 }
0x1d81   : > { %5059 = vrot.lane.b32.xlu1 %v7712_v32, %s8298_s28  ;;  %s5655_s28 = scalar_lea.sflag [#allocation3], %s596_s0 }
0x1d85   : > { %6628 = vrot.lane.b32.xlu1 %v6627_v24, %s8299_s23 }
0x1d89   : > { %6638 = vrot.lane.b32.xlu1 %v6637_v62, %s8300_s20  ;;  %s598_s20 = scalar_lea.vmem [#allocation2], %s5731_s27  ;;  %s6946_s27 = smov [#allocation2]  }
0x1d8a   : > { %s5668_s2 = sshll.u32 %s598_s20, 4  ;;  %s6868_s23 = sshll.u32 %s6946_s27, 4  ;;  %s8172_s2 = int_to_ptr.vmem [resolvable:$true] %s5668_s2  ;;  %s6869_s23 = int_to_ptr.vmem [resolvable:$false] %s6868_s23 }
0x1d8b   : > { %s6864_s1 = scalar_lea.vmem %s8172_s2, 64  ;;  %s6870_s26 = scalar_lea.vmem %s6869_s23, 128 }
0x1d8c   : > { %p6865_p11 = scmp.ne.s32.totalorder %s8172_s2, %s6864_s1  ;;  %p6871_p0 = scmp.lt.s32.totalorder %s8172_s2, %s6869_s23 }
0x1d8d   : > { %p6872_p1 = scmp.lt.s32.totalorder %s6870_s26, %s6864_s1 }
0x1d8e   : > { %p6866_p12 = pnand %p6865_p11, %p7085_p5 }
0x1d8f   : > { %p6873_p2 = por %p6872_p1, %p6871_p0 }
0x1d90   : > { %p6867_p13 = pneg %p6866_p12 }
0x1d92   : > { %p6874_p3 = pnand %p6873_p2, %p6867_p13 }
0x1dc2   : > { %v4893_v51 = vpop.xlane.xlu0 %4892 }
0x1dc3   : > { %6838 = vrcp.f32 %v4893_v51 }
0x1dc4   : > { %v4896_v52 = vpop.xlane.xlu1 %4895 }
0x1dc5   : > { %6840 = vrcp.f32 %v4896_v52 }
0x1dc8   : > { %v4964_v39 = vpop.permute.xlu1 %4963 }
0x1dc9   : > { %v4969_v57 = vsel %vm1197_vm5, %v4964_v39, 0 }
0x1dca   : > { %6482 = vmatpush3.bf16.msra.mxu0 %v4969_v57  ;;  %v4899_v44 = vpop.xlane.xlu0 %4898 }
0x1dcb   : > { %6842 = vrcp.f32 %v4899_v44  ;;  %6493 = vmatprep.subr.bf16.mxu0 %v6929_v37 }
0x1dcc   : > { %v5012_v55 = vpop.permute.xlu1 %5011 }
0x1dcd   : > { %v6839_v32 = vpop.eup %6838  ;;  %v5017_v14 = vsel %vm1197_vm5, %v5012_v55, 0 }
0x1dce   : > { %v4907_v21 = vmul.f32 %v6839_v32, %v6831_v1  ;;  %v4916_v23 = vpop.permute.xlu0 %4915 }
0x1dcf   : > { %v6841_v24 = vpop.eup %6840  ;;  %v4921_v45 = vsel %vm1197_vm5, %v4916_v23, 0 }
0x1dd0   : > { %v4908_v38 = vmul.f32 %v6841_v24, %v6833_v6  ;;  %6476 = vmatpush3.bf16.msra.mxu1 %v4921_v45  ;;  %v4911_v61 = vpack.c.bf16 %v4907_v21, %v4907_v21 }
0x1dd1   : > { %6487 = vmatprep.subr.bf16.mxu1 %v6929_v37 }
0x1dd2   : > { %v4912_v62 = vpack.c.bf16 %v4908_v38, %v4908_v38  ;;  %v6624_v1 = vpop.permute.xlu0 %6623 }
0x1dd3   : > { %6478 = vmatmul.mubr.msk.bf16.vlgmr.msra.gmra.mrb[144].mxu1 %vm942_vm3, %v4911_v61  ;;  %v6626_v6 = vunpack.i.h.bf16 %v6624_v1  ;;  %v6625_v7 = vunpack.i.l.bf16 %v6624_v1 }
0x1dd4   : > { %6484 = vmatmul.mubr.msk.bf16.vlgmr.msra.gmra.mrb[124].mxu0 %vm942_vm3, %v4912_v62  ;;  %6488 = vmatpush3.bf16.msra.mxu1 %v5017_v14 }
0x1dd5   : > { %v6843_v49 = vpop.eup %6842  ;;  %6489 = vmatprep.mubr.msk.bf16.mxu1 %vm6930_vm2, %v6929_v37  ;;  %6495 = vmatprep.mubr.msk.bf16.mxu0 %vm6930_vm2, %v6929_v37  ;;  %v5156_v12 = vsel %vm942_vm3, %v7818_v63, %v6626_v6  ;;  %v5155_v13 = vsel %vm942_vm3, %v7816_v54, %v6625_v7 }
0x1dd6   : > { %v4909_v15 = vmul.f32 %v6843_v49, %v6835_v9  ;;  %6499 = vmatprep.subr.bf16.mxu1 %v6676_v58  ;;  %v6634_v4 = vpop.permute.xlu0 %6633 }
0x1dd7   : > { %v6636_v9 = vunpack.i.h.bf16 %v6634_v4  ;;  %v6635_v10 = vunpack.i.l.bf16 %v6634_v4 }
0x1dd8   : > { %v4913_v50 = vpack.c.bf16 %v4909_v15, %v4909_v15 }
0x1dd9   : > { %v5159_v51 = vsel %vm2781_vm6, %v5155_v13, %v6635_v10  ;;  %v5160_v52 = vsel %vm2781_vm6, %v5156_v12, %v6636_v9  ;;  %v6679_v12 = vld [vmem:[%s8223_s11 + $0x18] sm:$0xff]  }
0x1ddb   : > { %6490 = vmatmul.mubr.msk.bf16.vlgmr.msra.gmra.mrb[148].mxu1 %vm942_vm3, %v4913_v50 }
0x1ddc   : > { %6500 = vmatpush3.bf16.msra.mxu1 %v6676_v58 }
0x1ddd   : > { %6501 = vmatprep.subr.bf16.mxu1 %v6677_v53 }
0x1de0   : > { %6502 = vmatpush3.bf16.msra.mxu1 %v6677_v53 }
0x1dfd   : > { %v4902_v16 = vpop.xlane.xlu1 %4901 }
0x1dfe   : > { %6844 = vrcp.f32 %v4902_v16 }
0x1e01   : > { %v5060_v46 = vpop.permute.xlu1 %5059 }
0x1e02   : > { %v5065_v27 = vsel %vm1197_vm5, %v5060_v46, 0 }
0x1e03   : > { %6494 = vmatpush3.bf16.msra.mxu0 %v5065_v27 }
0x1e05   : > { %v6629_v32 = vpop.permute.xlu1 %6628 }
0x1e06   : > { %v6631_v23 = vunpack.i.h.bf16 %v6629_v32  ;;  %v6630_v63 = vunpack.i.l.bf16 %v6629_v32 }
0x1e08   : > { %v6845_v34 = vpop.eup %6844  ;;  %v5158_v38 = vsel %vm942_vm3, %v7822_v28, %v6631_v23  ;;  %v5157_v55 = vsel %vm942_vm3, %v7820_v30, %v6630_v63  ;;  %v5862_v28 = vld [vmem:[%s8220_s8 + $0x1] ss:$0 sm:$0xff] }
0x1e09   : > { %v4910_v35 = vmul.f32 %v6845_v34, %v6837_v25  ;;  %v6639_v21 = vpop.permute.xlu1 %6638 }
0x1e0a   : > { %v6641_v24 = vunpack.i.h.bf16 %v6639_v21  ;;  %v6640_v45 = vunpack.i.l.bf16 %v6639_v21 }
0x1e0b   : > { %v4914_v48 = vpack.c.bf16 %v4910_v35, %v4910_v35 }
0x1e0c   : > { %v5161_v14 = vsel %vm2781_vm6, %v5157_v55, %v6640_v45  ;;  %v5162_v49 = vsel %vm2781_vm6, %v5158_v38, %v6641_v24  ;;  %v5865_v45 = vld [vmem:[%s8221_s9 + $0x1] ss:$0 sm:$0xff] }
0x1e0d   : > { %6496 = vmatmul.mubr.msk.bf16.vlgmr.msra.gmra.mrb[128].mxu0 %vm942_vm3, %v4914_v48 }
0x1ea6   : > { %v4957_v59 = vpop.f32.mrb[144].mxu1 }
0x1ea7   : > { %v6479_v43 = vpop.f32.mrb[145].mxu1  ;;  %v5005_v33 = vpop.f32.mrb[124].mxu0 }
0x1ea8   : > { %v6642_v5 = vpack.i.bf16 %v5005_v33, %v4957_v59  ;;  %v4960_v17 = vpop.f32.mrb[146].mxu1  ;;  %v6485_v18 = vpop.f32.mrb[125].mxu0 }
0x1ea9   : > { %v6480_v36 = vpop.f32.mrb[147].mxu1  ;;  %v5008_v42 = vpop.f32.mrb[126].mxu0 }
0x1eaa   : > { %v6486_v29 = vpop.f32.mrb[127].mxu0  ;;  %6643 = vrot.lane.b32.xlu0 %v6642_v5, %s8301_s24 }
0x1eae   : > { %v5053_v40 = vpop.f32.mrb[148].mxu1 }
0x1eaf   : > { %v6491_v47 = vpop.f32.mrb[149].mxu1 }
0x1eb0   : > { %v5056_v31 = vpop.f32.mrb[150].mxu1 }
0x1eb1   : > { %v6492_v41 = vpop.f32.mrb[151].mxu1 }
0x1ee0   : > { %v5101_v56 = vpop.f32.mrb[128].mxu0 }
0x1ee1   : > { %v6647_v60 = vpack.i.bf16 %v5101_v56, %v5053_v40  ;;  %v6497_v0 = vpop.f32.mrb[129].mxu0 }
0x1ee2   : > { %v5104_v2 = vpop.f32.mrb[130].mxu0 }
0x1ee3   : > { %v6498_v3 = vpop.f32.mrb[131].mxu0  ;;  %6648 = vrot.lane.b32.xlu1 %v6647_v60, %s8301_s24 }
0x1f1c   : > { %v6644_v11 = vpop.permute.xlu0 %6643 }
0x1f1d   : > { %v6646_v25 = vunpack.i.h.bf16 %v6644_v11  ;;  %v6645_v26 = vunpack.i.l.bf16 %v6644_v11  ;;  %v6678_v11 = vld [vmem:[%s8223_s11 + $0x10] sm:$0xff]  }
0x1f1e   : > { %6507 = vmatprep.subr.bf16.mxu0 %v6678_v11 }
0x1f1f   : > { %v5164_v39 = vsel %vm2786_vm7, %v5160_v52, %v6646_v25  ;;  %v5163_v57 = vsel %vm2786_vm7, %v5159_v51, %v6645_v26  ;;  %6508 = vmatpush3.bf16.msra.mxu0 %v6678_v11 }
0x1f20   : > { %v5172_v44 = vpack.c.bf16 %v5164_v39, %v5163_v57  ;;  %6509 = vmatprep.subr.bf16.mxu0 %v6679_v12 }
0x1f22   : > { %6503 = vmatprep.mubr.msk.bf16.mxu1 %vm781_vm1, %v5172_v44 }
0x1f23   : > { %6510 = vmatpush3.bf16.msra.mxu0 %v6679_v12 }
0x1f24   : > { %6527 = vmatprep.subr.bf16.mxu0 %v6929_v37 }
0x1f55   : > { %v6649_v54 = vpop.permute.xlu1 %6648 }
0x1f56   : > { %v6651_v61 = vunpack.i.h.bf16 %v6649_v54  ;;  %v6650_v62 = vunpack.i.l.bf16 %v6649_v54 }
0x1f58   : > { %v5166_v15 = vsel %vm2786_vm7, %v5162_v49, %v6651_v61  ;;  %v5165_v50 = vsel %vm2786_vm7, %v5161_v14, %v6650_v62  ;;  %v5866_v14 = vld [vmem:[%s8222_s10 + $0x1] ss:$0 sm:$0xff] }
0x1f59   : > { %v5173_v16 = vpack.c.bf16 %v5166_v15, %v5165_v50 }
0x1f5b   : > { %6504 = vmatmul.mubr.msk.bf16.vlgmr.msra.gmra.mrb[152].mxu1 %vm781_vm1, %v5173_v16 }
0x202e   : > { %v6505_v46 = vpop.f32.mrb[152].mxu1 }
0x202f   : > { %v5226_v27 = vpop.f32.mrb[153].mxu1  ;;  %v5243_v30 = vadd.f32 %v6505_v46, %v7658_v19 }
0x2030   : > { %v5241_v34 = vadd.f32 %v5226_v27, %v7654_v8  ;;  %v6506_v35 = vpop.f32.mrb[154].mxu1 }
0x2031   : > { %v5229_v48 = vpop.f32.mrb[155].mxu1  ;;  %v8084_v43 = vadd.f32 %v5862_v28, %v5243_v30  ;;  %v5244_v33 = vadd.f32 %v6506_v35, %v7664_v22 }
0x2032   : > { %v8081_v58 = vadd.f32 %v5862_v28, %v5241_v34  ;;  %v5242_v59 = vadd.f32 %v5229_v48, %v7660_v20 }
0x2033   : > { %v8093_v8 = vadd.f32 %v5862_v28, %v5244_v33  ;;  %v5267_v18 = vsel %vm781_vm1, %v8084_v43, 0.0  ;;  %v6680_v33 = vld [vmem:[%s8225_s13 + $0x20] sm:$0xff]  }
0x2034   : > { %v8087_v5 = vadd.f32 %v5862_v28, %v5242_v59  ;;  %v5261_v17 = vsel %vm781_vm1, %v8081_v58, 0.0  ;;  %6515 = vmatprep.subr.bf16.mxu1 %v6680_v33 }
0x2035   : > { %5262 = vadd.xlane.f32.xlu0 %v5261_v17  ;;  %v5270_v20 = vsel %vm781_vm1, %v8093_v8, 0.0  ;;  %6516 = vmatpush3.bf16.msra.mxu1 %v6680_v33  ;;  %v6681_v17 = vld [vmem:[%s8225_s13 + $0x28] sm:$0xff]  }
0x2036   : > { %v5264_v19 = vsel %vm781_vm1, %v8087_v5, 0.0  ;;  %6517 = vmatprep.subr.bf16.mxu1 %v6681_v17 }
0x2037   : > { %5265 = vadd.xlane.f32.xlu1 %v5264_v19  ;;  %v6682_v19 = vld [vmem:[%s8225_s13 + $0x30] sm:$0xff]  }
0x2039   : > { %5268 = vadd.xlane.f32.xlu0 %v5267_v18  ;;  %6518 = vmatpush3.bf16.msra.mxu1 %v6681_v17  ;;  %v6683_v18 = vld [vmem:[%s8225_s13 + $0x38] sm:$0xff]  }
0x203a   : > { %6519 = vmatprep.subr.bf16.mxu1 %v6682_v19 }
0x203d   : > { %5271 = vadd.xlane.f32.xlu0 %v5270_v20  ;;  %6520 = vmatpush3.bf16.msra.mxu1 %v6682_v19  ;;  %v5872_v20 = vld [vmem:[%s8224_s12 + $0x1] ss:$0 sm:$0xff] }
0x203e   : > { %6521 = vmatprep.subr.bf16.mxu1 %v6683_v18 }
0x2041   : > { %6522 = vmatpush3.bf16.msra.mxu1 %v6683_v18  ;;  %v5893_v18 = vld [vmem:[%s8227_s15] ss:$0 sm:$0xff] }
0x20c2   : > { %v5263_v22 = vpop.xlane.xlu0 %5262 }
0x20c3   : > { %v5273_v36 = vmul.f32 0.03125, %v5263_v22 }
0x20c4   : > { %v5266_v42 = vpop.xlane.xlu1 %5265 }
0x20c5   : > { %v5277_v29 = vsub.f32 %v8081_v58, %v5273_v36  ;;  %v5274_v40 = vmul.f32 0.03125, %v5266_v42 }
0x20c6   : > { %v5269_v47 = vpop.xlane.xlu0 %5268 }
0x20c7   : > { %v5278_v31 = vsub.f32 %v8087_v5, %v5274_v40  ;;  %v5275_v41 = vmul.f32 0.03125, %v5269_v47  ;;  %v5281_v53 = vmul.f32 %v5277_v29, %v5277_v29 }
0x20c9   : > { %v5279_v56 = vsub.f32 %v8084_v43, %v5275_v41  ;;  %v5285_v60 = vsel %vm781_vm1, %v5281_v53, 0.0  ;;  %v5282_v0 = vmul.f32 %v5278_v31, %v5278_v31 }
0x20ca   : > { %5286 = vadd.xlane.f32.xlu0 %v5285_v60  ;;  %v5272_v2 = vpop.xlane.xlu0 %5271 }
0x20cb   : > { %v5276_v3 = vmul.f32 0.03125, %v5272_v2  ;;  %v5288_v1 = vsel %vm781_vm1, %v5282_v0, 0.0  ;;  %v5283_v4 = vmul.f32 %v5279_v56, %v5279_v56 }
0x20cc   : > { %5289 = vadd.xlane.f32.xlu1 %v5288_v1 }
0x20cd   : > { %v5280_v6 = vsub.f32 %v8093_v8, %v5276_v3  ;;  %v5291_v7 = vsel %vm781_vm1, %v5283_v4, 0.0 }
0x20ce   : > { %5292 = vadd.xlane.f32.xlu0 %v5291_v7 }
0x20cf   : > { %v5284_v9 = vmul.f32 %v5280_v6, %v5280_v6 }
0x20d1   : > { %v5294_v10 = vsel %vm781_vm1, %v5284_v9, 0.0 }
0x20d2   : > { %5295 = vadd.xlane.f32.xlu1 %v5294_v10 }
0x2157   : > { %v5287_v13 = vpop.xlane.xlu0 %5286 }
0x2158   : > { %v5297_v25 = vmul.f32 0.03125, %v5287_v13 }
0x2159   : > { %v5290_v26 = vpop.xlane.xlu1 %5289 }
0x215a   : > { %v5301_v51 = vadd.f32 1e-12, %v5297_v25  ;;  %v5298_v52 = vmul.f32 0.03125, %v5290_v26 }
0x215b   : > { %v5293_v39 = vpop.xlane.xlu0 %5292 }
0x215c   : > { %6846 = vrsqrt.f32 %v5301_v51  ;;  %v5302_v57 = vadd.f32 1e-12, %v5298_v52  ;;  %v5299_v44 = vmul.f32 0.03125, %v5293_v39 }
0x215e   : > { %6848 = vrsqrt.f32 %v5302_v57  ;;  %v5303_v32 = vadd.f32 1e-12, %v5299_v44 }
0x215f   : > { %v5296_v21 = vpop.xlane.xlu1 %5295 }
0x2160   : > { %6850 = vrsqrt.f32 %v5303_v32  ;;  %v5300_v23 = vmul.f32 0.03125, %v5296_v21 }
0x2162   : > { %v5304_v63 = vadd.f32 1e-12, %v5300_v23 }
0x2164   : > { %6852 = vrsqrt.f32 %v5304_v63  ;;  %v5892_v63 = vld [vmem:[%s8226_s14 + $0x1] ss:$0 sm:$0xff] }
0x2166   : > { %v6847_v24 = vpop.eup %6846 }
0x2167   : > { %v5309_v54 = vmul.f32 %v6847_v24, %v5277_v29 }
0x2168   : > { %v6849_v38 = vpop.eup %6848 }
0x2169   : > { %v5310_v55 = vmul.f32 %v6849_v38, %v5278_v31  ;;  %v5319_v61 = vmul.f32 %v5865_v45, %v5309_v54 }
0x216a   : > { %v6851_v62 = vpop.eup %6850 }
0x216b   : > { %v5311_v49 = vmul.f32 %v6851_v62, %v5279_v56  ;;  %v5320_v15 = vmul.f32 %v5865_v45, %v5310_v55  ;;  %v5329_v50 = vadd.f32 %v5866_v14, %v5319_v61 }
0x216d   : > { %v5330_v16 = vadd.f32 %v5866_v14, %v5320_v15  ;;  %v5321_v28 = vmul.f32 %v5865_v45, %v5311_v49 }
0x216e   : > { %v6853_v46 = vpop.eup %6852 }
0x216f   : > { %v5312_v27 = vmul.f32 %v6853_v46, %v5280_v6  ;;  %v5338_v30 = vpack.c.bf16 %v5330_v16, %v5329_v50  ;;  %v5331_v35 = vadd.f32 %v5866_v14, %v5321_v28 }
0x2171   : > { %v5322_v34 = vmul.f32 %v5865_v45, %v5312_v27  ;;  %6511 = vmatprep.mubr.msk.bf16.mxu0 %vm781_vm1, %v5338_v30 }
0x2173   : > { %v5332_v48 = vadd.f32 %v5866_v14, %v5322_v34 }
0x2175   : > { %v5339_v59 = vpack.c.bf16 %v5332_v48, %v5331_v35  ;;  %v6684_v35 = vld [vmem:[%s8229_s17] sm:$0xff]   ;;  %v6685_v48 = vld [vmem:[%s8229_s17 + $0x8] sm:$0xff]  }
0x2177   : > { %6512 = vmatmul.mubr.msk.bf16.vlgmr.msra.gmra.mrb[132].mxu0 %vm781_vm1, %v5339_v59 }
0x2178   : > { %6531 = vmatprep.mubr.msk.bf16.mxu0 %vm6930_vm2, %v6929_v37  ;;  %6528 = vmatpush3.bf16.msra.mxu0 %v6684_v35 }
0x2179   : > { %6529 = vmatprep.subr.bf16.mxu0 %v6929_v37  ;;  %v5895_v37 = vld [vmem:[%s8230_s18] ss:$0 sm:$0xff] }
0x217c   : > { %6530 = vmatpush3.bf16.msra.mxu0 %v6685_v48 }
0x224a   : > { %v6513_v22 = vpop.f32.mrb[132].mxu0 }
0x224b   : > { %v5409_v36 = vadd.f32 %v6513_v22, %v5872_v20  ;;  %v5400_v42 = vpop.f32.mrb[133].mxu0  ;;  %v5894_v22 = vld [vmem:[%s8228_s16] ss:$0 sm:$0xff] }
0x224c   : > { %v5401_v29 = vadd.f32 %v5872_v20, %v5400_v42  ;;  %v6514_v40 = vpop.f32.mrb[134].mxu0 }
0x224d   : > { %v5421_v47 = vmul.f32 0.70710677, %v5409_v36  ;;  %v5412_v31 = vadd.f32 %v6514_v40, %v5872_v20  ;;  %v5403_v41 = vpop.f32.mrb[135].mxu0  ;;  %v5417_v9 = vmul.f32 0.5, %v5409_v36 }
0x224e   : > { %v5419_v53 = vmul.f32 0.70710677, %v5401_v29  ;;  %v5404_v56 = vadd.f32 %v5872_v20, %v5403_v41  ;;  %v5415_v12 = vmul.f32 0.5, %v5401_v29 }
0x224f   : > { %6854 = verf.f32 %v5421_v47  ;;  %v5422_v60 = vmul.f32 0.70710677, %v5412_v31  ;;  %v5418_v10 = vmul.f32 0.5, %v5412_v31 }
0x2250   : > { %6856 = verf.f32 %v5419_v53  ;;  %v5420_v0 = vmul.f32 0.70710677, %v5404_v56  ;;  %v5416_v13 = vmul.f32 0.5, %v5404_v56 }
0x2251   : > { %6858 = verf.f32 %v5422_v60 }
0x2252   : > { %6860 = verf.f32 %v5420_v0 }
0x2259   : > { %v6855_v2 = vpop.eup %6854 }
0x225a   : > { %v6857_v3 = vpop.eup %6856  ;;  %v5429_v1 = vadd.f32 1.0, %v6855_v2 }
0x225b   : > { %v6859_v4 = vpop.eup %6858  ;;  %v5427_v6 = vadd.f32 1.0, %v6857_v3 }
0x225c   : > { %v6861_v7 = vpop.eup %6860  ;;  %v5430_v11 = vadd.f32 1.0, %v6859_v4  ;;  %v5433_v26 = vmul.f32 %v5429_v1, %v5417_v9 }
0x225d   : > { %v5428_v25 = vadd.f32 1.0, %v6861_v7  ;;  %v5431_v52 = vmul.f32 %v5427_v6, %v5415_v12 }
0x225e   : > { %v5434_v51 = vmul.f32 %v5430_v11, %v5418_v10 }
0x225f   : > { %v5432_v39 = vmul.f32 %v5428_v25, %v5416_v13 }
0x2260   : > { %v5445_v57 = vpack.c.bf16 %v5434_v51, %v5433_v26 }
0x2261   : > { %v5444_v44 = vpack.c.bf16 %v5432_v39, %v5431_v52 }
0x2263   : > { %6523 = vmatprep.mubr.msk.bf16.mxu1 %vm723_vm0, %v5444_v44 }
0x2264   : > { %6524 = vmatmul.mubr.msk.bf16.vlgmr.msra.gmra.mrb[156].mxu1 %vm723_vm0, %v5445_v57 }
0x2337   : > { %v6525_v32 = vpop.f32.mrb[156].mxu1 }
0x2338   : > { %v5527_v21 = vadd.f32 %v6525_v32, %v8084_v43  ;;  %v5510_v23 = vpop.f32.mrb[157].mxu1 }
0x2339   : > { %v6526_v24 = vpop.f32.mrb[158].mxu1  ;;  %v5525_v38 = vadd.f32 %v5510_v23, %v8081_v58 }
0x233a   : > { %v5528_v45 = vadd.f32 %v6526_v24, %v8093_v8  ;;  %v5513_v54 = vpop.f32.mrb[159].mxu1  ;;  %v5539_v61 = vadd.f32 %v5892_v63, %v5527_v21 }
0x233b   : > { %v5526_v55 = vadd.f32 %v5513_v54, %v8087_v5  ;;  %v5537_v49 = vadd.f32 %v5892_v63, %v5525_v38 }
0x233c   : > { %v5540_v62 = vadd.f32 %v5892_v63, %v5528_v45  ;;  %v5545_v43 = vrot.slane %v5539_v61, 6 }
0x233d   : > { %v5538_v14 = vadd.f32 %v5892_v63, %v5526_v55 }
0x233e   : > { %v5548_v50 = vrot.slane %v5540_v62, 5 }
0x233f   : > { %v5542_v15 = vrot.slane %v5538_v14, 7 }
0x2341   : > { %v5551_v16 = vsel %vm5550_vm8, %v5537_v49, %v5542_v15 }
0x2342   : > { %v5553_v46 = vsel %vm5552_vm9, %v5551_v16, %v5545_v43 }
0x2343   : > { %v5555_v28 = vsel %vm5554_vm10, %v5553_v46, %v5548_v50 }
0x2344   : > { %v5559_v8 = vsel %vm5558_vm11, %v5555_v28, 0.0 }
0x2345   : > { %5560 = vadd.xlane.f32.xlu0 %v5559_v8 }
0x23d2   : > { %v5561_v27 = vpop.xlane.xlu0 %5560 }
0x23d3   : > { %v5562_v58 = vmul.f32 0.03125, %v5561_v27 }
0x23d5   : > { %v5563_v30 = vsub.f32 %v5555_v28, %v5562_v58 }
0x23d7   : > { %v5564_v5 = vmul.f32 %v5563_v30, %v5563_v30 }
0x23d9   : > { %v5565_v34 = vsel %vm5558_vm11, %v5564_v5, 0.0 }
0x23da   : > { %5566 = vadd.xlane.f32.xlu1 %v5565_v34 }
0x2467   : > { %v5567_v59 = vpop.xlane.xlu1 %5566 }
0x2468   : > { %v5568_v33 = vmul.f32 0.03125, %v5567_v59 }
0x246a   : > { %v5569_v17 = vadd.f32 1e-12, %v5568_v33 }
0x246c   : > { %6862 = vrsqrt.f32 %v5569_v17 }
0x2476   : > { %v6863_v19 = vpop.eup %6862 }
0x2477   : > { %v5571_v20 = vmul.f32 %v6863_v19, %v5563_v30 }
0x2479   : > { %v5578_v36 = vmul.f32 %v5893_v18, %v5571_v20 }
0x247b   : > { %v5585_v42 = vadd.f32 %v5894_v22, %v5578_v36 }
0x247d   : > { %v5590_v29 = vpack.c.bf16 %v5585_v42, %v5585_v42 }
0x247f   : > { %6532 = vmatmul.mubr.msk.bf16.vlgmr.msra.gmra.mrb[136].mxu0 %vm781_vm1, %v5590_v29 }
0x2552   : > { %v5647_v40 = vpop.f32.mrb[136].mxu0 }
0x2553   : > { %v5648_v47 = vadd.f32 %v5895_v37, %v5647_v40  ;;  %v6533_v31 = vpop.f32.mrb[137].mxu0 }
0x2554   : > { %v5650_v41 = vpop.f32.mrb[138].mxu0 }
0x2555   : > { %5653 = vst [vmem:[%s598_s20] sm:$0xf] %v5648_v47  ;;  %v6534_v53 = vpop.f32.mrb[139].mxu0 }
0x2556   : > { %6877 = shalt.err (!%p6874_p3)
}
0x2557   : > { %s6878_s4 = scalar_lea.hbm %s8170_s5, 64  ;;  %s6882_s24 = scalar_lea.hbm %s8231_s19, 128 }
0x2558   : > { %p6879_p4 = scmp.ne.s32.totalorder %s8170_s5, %s6878_s4  ;;  %p6883_p9 = scmp.lt.u32.totalorder %s8170_s5, %s8231_s19 }
0x2559   : > { %p6884_p10 = scmp.lt.u32.totalorder %s6882_s24, %s6878_s4  ;;  %p6886_p12 = scmp.lt.u32.totalorder %s6878_s4, %s8170_s5 }
0x255a   : > { %p6880_p7 = pnand %p6879_p4, %p7085_p5 }
0x255b   : > { %p6885_p11 = por %p6884_p10, %p6883_p9 }
0x255c   : > { %p6881_p8 = pneg %p6880_p7 }
0x255d   : > { %p6887_p13 = por %p6886_p12, %p6885_p11 }
0x255f   : > { %p6888_p0 = pnand %p6887_p13, %p6881_p8 }
0x2561   : > { %6891 = shalt.err (!%p6888_p0)
}
0x2562   : > { %6535 = dma.vmem_to_hbm [thread:$0]  (%p7085_p5), %s8172_s2, 64, %s8170_s5, %s5655_s28  }
0x2563 PF: > { %s8302_s1 = sld [smem:[#allocation5_spill]]  ;;  %p6541_p1 = scmp.ge.s32.totalorder %s6926_s21, 2 }
0x2565   : > { %p6538_p2 = pnand %p6541_p1, %p7089_p6 }
0x2569   : > { %s5680_s0 = sand.u32 1, %s8302_s1  }
0x256a   : > { %s5681_s20 = scalar_lea.sflag [#allocation3], %s5680_s0 }
0x256b   : > { %6909 = dma.done.wait (!%p6538_p2), %s5681_s20, 64  }
0x256c   : > { %6911 = vsyncadd (!%p6538_p2), %s5681_s20, 4294967232  ;;  %s8304_s21 = sld [smem:[#allocation7_spill]]  ;;  %s8305_s4 = sld [smem:[#allocation6_spill]] }
0x256d   : > { %s8306_s20 = sld [smem:[#allocation8_spill]]  ;;  %s8307_s0 = smov %s6918_s30 }
0x2572   : > { %p29_p3 = scmp.ge.s32.totalorder %s8304_s21, 4   ;;  %s8308_s30 = smov %s8305_s4 }
0x2574   :  { %31 = sbr.rel (!%p29_p3) target bundleno = 10 (0xa), region = 143 }
0x257b   :  { %5686 = vsyncpa [#allocation3], 1 }
0x257c   :  { %5688 = vsyncpa [#allocation3 + $0x1], 1 }

</bundles_post_ra>
